<compile_context>
chip_gen: v7x
topology: tpu7x:2x2x1
jax: 0.10.0
libtpu: 0.0.40
codegen_flags: <defaults>
</compile_context>

<pallas_src>
import functools

import jax
import jax.numpy as jnp
import numpy as np
from jax.experimental import pallas as pl
from jax.experimental.pallas import tpu as pltpu


def _bilinear_x2_matrix(n_in: int) -> np.ndarray:
    """(n_in, 2*n_in) matrix M with out = in @ M == 1-D bilinear x2 upsample
    (PyTorch Upsample(scale_factor=2, mode='bilinear', align_corners=False))."""
    n_out = 2 * n_in
    dst = np.arange(n_out)
    src = np.maximum((dst + 0.5) * 0.5 - 0.5, 0.0)
    i0 = np.floor(src).astype(np.int64)
    frac = (src - i0).astype(np.float32)
    i1 = np.minimum(i0 + 1, n_in - 1)
    i0 = np.minimum(i0, n_in - 1)
    m = np.zeros((n_in, n_out), dtype=np.float32)
    m[i0, dst] += 1.0 - frac
    m[i1, dst] += frac
    return m


def _skip_upsample_kernel(w_ref, bw_ref, xm_ref, xp_ref, xn_ref, y_ref, o_ref):
    # w_ref : SMEM (Cout, Cin)         1x1 conv weight
    # bw_ref: VMEM (W, 2W)             width interpolation matrix (constant)
    # xm_ref: VMEM (1, Cin, TH, W)     input row-slab
    # xp_ref: VMEM (1, 1, Cin, 1, W)   row above the slab (edge-clamped)
    # xn_ref: VMEM (1, 1, Cin, 1, W)   row below the slab (edge-clamped)
    # y_ref : VMEM (1, Cout, 2TH, 2W)  skip connection
    # o_ref : VMEM (1, Cout, 2TH, 2W)
    cout, cin = w_ref.shape
    _, _, th, w = xm_ref.shape

    xm = xm_ref[0].astype(jnp.float32)      # (Cin, TH, W)
    xp = xp_ref[0, 0].astype(jnp.float32)   # (Cin, 1, W)
    xn = xn_ref[0, 0].astype(jnp.float32)   # (Cin, 1, W)

    # ---- 1x1 conv (channel mix) first: commutes with bilinear upsample. ----
    # Tiny channel counts -> unrolled VPU broadcast-FMA with SMEM scalars.
    def conv1x1(x):                          # (Cin, R, W) -> (Cout, R, W)
        outs = []
        for co in range(cout):
            acc = w_ref[co, 0] * x[0]
            for ci in range(1, cin):
                acc = acc + w_ref[co, ci] * x[ci]
            outs.append(acc)
        return jnp.stack(outs, axis=0)

    zm = conv1x1(xm)                         # (Cout, TH, W)
    zp = conv1x1(xp)[:, 0, :]                # (Cout, W)   halo row above
    zn = conv1x1(xn)[:, 0, :]                # (Cout, W)   halo row below

    # ---- W-direction bilinear x2 FIRST: one MXU matmul on TH rows ----
    # (doing width before the H interleave halves the MXU work vs. H-first).
    bw = bw_ref[...]                         # (W, 2W)
    zmw = jnp.dot(zm.reshape(cout * th, w), bw,          # layout no-op reshape
                  preferred_element_type=jnp.float32)     # (TH % 8 == 0)
    zmw = zmw.reshape(cout, th, 2 * w)                    # (Cout, TH, 2W)
    zpw = jnp.dot(zp, bw, preferred_element_type=jnp.float32)[:, None, :]
    znw = jnp.dot(zn, bw, preferred_element_type=jnp.float32)[:, None, :]
    # zpw / znw: (Cout, 1, 2W)

    # ---- H-direction bilinear x2 (align_corners=False), shifted-row combos ----
    #   out[2k]   = 0.25 * z[k-1] + 0.75 * z[k]
    #   out[2k+1] = 0.75 * z[k]   + 0.25 * z[k+1]   (halo rows at tile edges)
    h_prev = jnp.concatenate([zpw, zmw[:, : th - 1, :]], axis=1)   # z[k-1]
    h_next = jnp.concatenate([zmw[:, 1:, :], znw], axis=1)         # z[k+1]
    even_rows = 0.75 * zmw + 0.25 * h_prev
    odd_rows = 0.75 * zmw + 0.25 * h_next
    up = jnp.stack([even_rows, odd_rows], axis=2)                  # (Cout, TH, 2, 2W)
    up = up.reshape(cout, 2 * th, 2 * w)                           # row interleave

    # ---- skip connection + full-block store ----
    o_ref[0] = (up + y_ref[0].astype(jnp.float32)).astype(o_ref.dtype)


def _pick_tile_h(h, w, cin, cout, itemsize=4, budget_bytes=16 * 1024 * 1024):
    """Largest H-tile that divides H, respects (8,128) sublane tiling and keeps
    the double-buffered working set under `budget_bytes` (safe on v5e/v6e/v7x)."""
    cands = [d for d in range(h, 0, -1) if h % d == 0 and (d % 8 == 0 or d == h)]
    for th in cands:
        x_tile = cin * th * w * itemsize
        yo_tiles = 2 * cout * (2 * th) * (2 * w) * itemsize   # y-tile + out-tile
        if 2 * (x_tile + yo_tiles) <= budget_bytes:           # double-buffered
            return th
    return cands[-1]


@functools.partial(jax.jit, static_argnames=("tile_h",))
def skip_upsample(x, y, weight, tile_h=None):
    """SkipUpSample forward: bilinear x2 upsample + 1x1 conv (no bias) + skip add.

    x: (N, Cin, H, W), y: (N, Cout, 2H, 2W), weight: (Cout, Cin).  NCHW throughout.
    """
    n, cin, h, w = x.shape
    cout = weight.shape[0]
    assert y.shape == (n, cout, 2 * h, 2 * w), y.shape

    th = _pick_tile_h(h, w, cin, cout) if tile_h is None else int(tile_h)
    assert h % th == 0 and (th % 8 == 0 or th == h), (h, th)
    n_tiles = h // th

    # Single-row halos for each H-tile (edge-clamped => also encodes the
    # replicate-at-border rule of align_corners=False).  Tiny gather in XLA.
    starts = np.arange(n_tiles) * th
    prev_rows = np.maximum(starts - 1, 0)
    next_rows = np.minimum(starts + th, h - 1)
    xp_all = jnp.transpose(x[:, :, prev_rows, :], (0, 2, 1, 3))[:, :, :, None, :]
    xn_all = jnp.transpose(x[:, :, next_rows, :], (0, 2, 1, 3))[:, :, :, None, :]
    # -> (N, n_tiles, Cin, 1, W)

    bw = jnp.asarray(_bilinear_x2_matrix(w))       # (W, 2W)
    w_f32 = weight.astype(jnp.float32)             # (Cout, Cin), lives in SMEM

    return pl.pallas_call(
        _skip_upsample_kernel,
        out_shape=jax.ShapeDtypeStruct((n, cout, 2 * h, 2 * w), y.dtype),
        grid_spec=pltpu.PrefetchScalarGridSpec(
            num_scalar_prefetch=0,
            grid=(n, n_tiles),
            in_specs=[
                pl.BlockSpec(memory_space=pltpu.MemorySpace.SMEM),              # weight
                pl.BlockSpec((w, 2 * w), lambda b, i: (0, 0)),                  # Bw (const)
                pl.BlockSpec((1, cin, th, w), lambda b, i: (b, 0, i, 0)),       # x slab
                pl.BlockSpec((1, 1, cin, 1, w), lambda b, i: (b, i, 0, 0, 0)),  # halo above
                pl.BlockSpec((1, 1, cin, 1, w), lambda b, i: (b, i, 0, 0, 0)),  # halo below
                pl.BlockSpec((1, cout, 2 * th, 2 * w), lambda b, i: (b, 0, i, 0)),  # y slab
            ],
            out_specs=pl.BlockSpec((1, cout, 2 * th, 2 * w),
                                   lambda b, i: (b, 0, i, 0)),
        ),
        compiler_params=pltpu.CompilerParams(
            dimension_semantics=("parallel", "parallel"),
            vmem_limit_bytes=48 * 1024 * 1024,
        ),
    )(w_f32, bw, x, xp_all, xn_all, y)


if __name__ == "__main__":
    key = jax.random.PRNGKey(0)
    kx, ky, kw = jax.random.split(key, 3)

    N, C_IN, C_OUT, H, W = 2, 4, 8, 16, 16
    x = jax.random.normal(kx, (N, C_IN, H, W), dtype=jnp.float32)
    y = jax.random.normal(ky, (N, C_OUT, 2 * H, 2 * W), dtype=jnp.float32)
    weight = jax.random.normal(kw, (C_OUT, C_IN), dtype=jnp.float32) * (1.0 / C_IN) ** 0.5

    # Run with explicit H-tiling (2 tiles -> exercises the halo path) ...
    out = skip_upsample(x, y, weight, tile_h=8)
    out = jax.block_until_ready(out)
    # ... and with the automatic tile choice.
    out_auto = skip_upsample(x, y, weight)
    out_auto = jax.block_until_ready(out_auto)

    # Pure-JAX reference: bilinear x2 (align_corners=False) via interpolation
    # matrices, then 1x1 conv, then skip add.
    A = jnp.asarray(_bilinear_x2_matrix(H))   # (H, 2H)
    B = jnp.asarray(_bilinear_x2_matrix(W))   # (W, 2W)
    up_ref = jnp.einsum('hr,nchw,ws->ncrs', A, x, B)
    ref = jnp.einsum('oc,ncrs->nors', weight, up_ref) + y

    assert out.shape == (N, C_OUT, 2 * H, 2 * W)
    assert jnp.allclose(out, ref, atol=1e-4, rtol=1e-4), float(jnp.max(jnp.abs(out - ref)))
    assert jnp.allclose(out_auto, ref, atol=1e-4, rtol=1e-4), float(jnp.max(jnp.abs(out_auto - ref)))

    print("KERNEL_OK")
</pallas_src>

<mosaic_0001>
module attributes {stable_mosaic.version = 11 : i64} {
  func.func @_skip_upsample_kernel(%arg0: i32, %arg1: i32, %arg2: memref<8x4xf32, #tpu.memory_space<smem>>, %arg3: memref<16x32xf32, #tpu.memory_space<vmem>>, %arg4: memref<1x4x8x16xf32, #tpu.memory_space<vmem>>, %arg5: memref<1x1x4x1x16xf32, #tpu.memory_space<vmem>>, %arg6: memref<1x1x4x1x16xf32, #tpu.memory_space<vmem>>, %arg7: memref<1x8x16x32xf32, #tpu.memory_space<vmem>>, %arg8: memref<1x8x16x32xf32, #tpu.memory_space<vmem>>) attributes {dimension_semantics = [#tpu.dimension_semantics<parallel>, #tpu.dimension_semantics<parallel>], iteration_bounds = array<i64: 2, 2>, scalar_prefetch = 0 : i64, scratch_operands = 0 : i64, tpu.core_type = #tpu.core_type<tc>, window_params = [{transform_indices = @transform_0, window_bounds = array<i64: 8, 4>}, {pipeline_mode = #tpu.pipeline_mode<synchronous>, transform_indices = @transform_1, window_bounds = array<i64: 16, 32>}, {transform_indices = @transform_2, window_bounds = array<i64: 1, 4, 8, 16>}, {transform_indices = @transform_3, window_bounds = array<i64: 1, 1, 4, 1, 16>}, {transform_indices = @transform_4, window_bounds = array<i64: 1, 1, 4, 1, 16>}, {transform_indices = @transform_5, window_bounds = array<i64: 1, 8, 16, 32>}, {transform_indices = @transform_6, window_bounds = array<i64: 1, 8, 16, 32>}]} {
    %c0 = arith.constant 0 : index
    %c0_0 = arith.constant 0 : index
    %c0_1 = arith.constant 0 : index
    %c0_2 = arith.constant 0 : index
    %0 = vector.load %arg4[%c0, %c0_0, %c0_1, %c0_2] : memref<1x4x8x16xf32, #tpu.memory_space<vmem>>, vector<1x4x8x16xf32>
    %1 = vector.shape_cast %0 : vector<1x4x8x16xf32> to vector<4x8x16xf32>
    %c0_3 = arith.constant 0 : index
    %c0_4 = arith.constant 0 : index
    %c0_5 = arith.constant 0 : index
    %c0_6 = arith.constant 0 : index
    %c0_7 = arith.constant 0 : index
    %2 = vector.load %arg5[%c0_3, %c0_4, %c0_5, %c0_6, %c0_7] : memref<1x1x4x1x16xf32, #tpu.memory_space<vmem>>, vector<1x1x4x1x16xf32>
    %3 = vector.shape_cast %2 : vector<1x1x4x1x16xf32> to vector<4x1x16xf32>
    %c0_8 = arith.constant 0 : index
    %c0_9 = arith.constant 0 : index
    %c0_10 = arith.constant 0 : index
    %c0_11 = arith.constant 0 : index
    %c0_12 = arith.constant 0 : index
    %4 = vector.load %arg6[%c0_8, %c0_9, %c0_10, %c0_11, %c0_12] : memref<1x1x4x1x16xf32, #tpu.memory_space<vmem>>, vector<1x1x4x1x16xf32>
    %5 = vector.shape_cast %4 : vector<1x1x4x1x16xf32> to vector<4x1x16xf32>
    %c0_13 = arith.constant 0 : index
    %c0_14 = arith.constant 0 : index
    %6 = memref.load %arg2[%c0_13, %c0_14] : memref<8x4xf32, #tpu.memory_space<smem>>
    %7 = vector.extract_strided_slice %1 {offsets = [0, 0, 0], sizes = [1, 8, 16], strides = [1, 1, 1]} : vector<4x8x16xf32> to vector<1x8x16xf32>
    %8 = vector.shape_cast %7 : vector<1x8x16xf32> to vector<8x16xf32>
    %9 = vector.broadcast %6 : f32 to vector<8x16xf32>
    %10 = arith.mulf %9, %8 : vector<8x16xf32>
    %c0_15 = arith.constant 0 : index
    %c1 = arith.constant 1 : index
    %11 = memref.load %arg2[%c0_15, %c1] : memref<8x4xf32, #tpu.memory_space<smem>>
    %12 = vector.extract_strided_slice %1 {offsets = [1, 0, 0], sizes = [1, 8, 16], strides = [1, 1, 1]} : vector<4x8x16xf32> to vector<1x8x16xf32>
    %13 = vector.shape_cast %12 : vector<1x8x16xf32> to vector<8x16xf32>
    %14 = vector.broadcast %11 : f32 to vector<8x16xf32>
    %15 = arith.mulf %14, %13 : vector<8x16xf32>
    %16 = arith.addf %10, %15 : vector<8x16xf32>
    %c0_16 = arith.constant 0 : index
    %c2 = arith.constant 2 : index
    %17 = memref.load %arg2[%c0_16, %c2] : memref<8x4xf32, #tpu.memory_space<smem>>
    %18 = vector.extract_strided_slice %1 {offsets = [2, 0, 0], sizes = [1, 8, 16], strides = [1, 1, 1]} : vector<4x8x16xf32> to vector<1x8x16xf32>
    %19 = vector.shape_cast %18 : vector<1x8x16xf32> to vector<8x16xf32>
    %20 = vector.broadcast %17 : f32 to vector<8x16xf32>
    %21 = arith.mulf %20, %19 : vector<8x16xf32>
    %22 = arith.addf %16, %21 : vector<8x16xf32>
    %c0_17 = arith.constant 0 : index
    %c3 = arith.constant 3 : index
    %23 = memref.load %arg2[%c0_17, %c3] : memref<8x4xf32, #tpu.memory_space<smem>>
    %24 = vector.extract_strided_slice %1 {offsets = [3, 0, 0], sizes = [1, 8, 16], strides = [1, 1, 1]} : vector<4x8x16xf32> to vector<1x8x16xf32>
    %25 = vector.shape_cast %24 : vector<1x8x16xf32> to vector<8x16xf32>
    %26 = vector.broadcast %23 : f32 to vector<8x16xf32>
    %27 = arith.mulf %26, %25 : vector<8x16xf32>
    %28 = arith.addf %22, %27 : vector<8x16xf32>
    %c1_18 = arith.constant 1 : index
    %c0_19 = arith.constant 0 : index
    %29 = memref.load %arg2[%c1_18, %c0_19] : memref<8x4xf32, #tpu.memory_space<smem>>
    %30 = vector.extract_strided_slice %1 {offsets = [0, 0, 0], sizes = [1, 8, 16], strides = [1, 1, 1]} : vector<4x8x16xf32> to vector<1x8x16xf32>
    %31 = vector.shape_cast %30 : vector<1x8x16xf32> to vector<8x16xf32>
    %32 = vector.broadcast %29 : f32 to vector<8x16xf32>
    %33 = arith.mulf %32, %31 : vector<8x16xf32>
    %c1_20 = arith.constant 1 : index
    %c1_21 = arith.constant 1 : index
    %34 = memref.load %arg2[%c1_20, %c1_21] : memref<8x4xf32, #tpu.memory_space<smem>>
    %35 = vector.extract_strided_slice %1 {offsets = [1, 0, 0], sizes = [1, 8, 16], strides = [1, 1, 1]} : vector<4x8x16xf32> to vector<1x8x16xf32>
    %36 = vector.shape_cast %35 : vector<1x8x16xf32> to vector<8x16xf32>
    %37 = vector.broadcast %34 : f32 to vector<8x16xf32>
    %38 = arith.mulf %37, %36 : vector<8x16xf32>
    %39 = arith.addf %33, %38 : vector<8x16xf32>
    %c1_22 = arith.constant 1 : index
    %c2_23 = arith.constant 2 : index
    %40 = memref.load %arg2[%c1_22, %c2_23] : memref<8x4xf32, #tpu.memory_space<smem>>
    %41 = vector.extract_strided_slice %1 {offsets = [2, 0, 0], sizes = [1, 8, 16], strides = [1, 1, 1]} : vector<4x8x16xf32> to vector<1x8x16xf32>
    %42 = vector.shape_cast %41 : vector<1x8x16xf32> to vector<8x16xf32>
    %43 = vector.broadcast %40 : f32 to vector<8x16xf32>
    %44 = arith.mulf %43, %42 : vector<8x16xf32>
    %45 = arith.addf %39, %44 : vector<8x16xf32>
    %c1_24 = arith.constant 1 : index
    %c3_25 = arith.constant 3 : index
    %46 = memref.load %arg2[%c1_24, %c3_25] : memref<8x4xf32, #tpu.memory_space<smem>>
    %47 = vector.extract_strided_slice %1 {offsets = [3, 0, 0], sizes = [1, 8, 16], strides = [1, 1, 1]} : vector<4x8x16xf32> to vector<1x8x16xf32>
    %48 = vector.shape_cast %47 : vector<1x8x16xf32> to vector<8x16xf32>
    %49 = vector.broadcast %46 : f32 to vector<8x16xf32>
    %50 = arith.mulf %49, %48 : vector<8x16xf32>
    %51 = arith.addf %45, %50 : vector<8x16xf32>
    %c2_26 = arith.constant 2 : index
    %c0_27 = arith.constant 0 : index
    %52 = memref.load %arg2[%c2_26, %c0_27] : memref<8x4xf32, #tpu.memory_space<smem>>
    %53 = vector.extract_strided_slice %1 {offsets = [0, 0, 0], sizes = [1, 8, 16], strides = [1, 1, 1]} : vector<4x8x16xf32> to vector<1x8x16xf32>
    %54 = vector.shape_cast %53 : vector<1x8x16xf32> to vector<8x16xf32>
    %55 = vector.broadcast %52 : f32 to vector<8x16xf32>
    %56 = arith.mulf %55, %54 : vector<8x16xf32>
    %c2_28 = arith.constant 2 : index
    %c1_29 = arith.constant 1 : index
    %57 = memref.load %arg2[%c2_28, %c1_29] : memref<8x4xf32, #tpu.memory_space<smem>>
    %58 = vector.extract_strided_slice %1 {offsets = [1, 0, 0], sizes = [1, 8, 16], strides = [1, 1, 1]} : vector<4x8x16xf32> to vector<1x8x16xf32>
    %59 = vector.shape_cast %58 : vector<1x8x16xf32> to vector<8x16xf32>
    %60 = vector.broadcast %57 : f32 to vector<8x16xf32>
    %61 = arith.mulf %60, %59 : vector<8x16xf32>
    %62 = arith.addf %56, %61 : vector<8x16xf32>
    %c2_30 = arith.constant 2 : index
    %c2_31 = arith.constant 2 : index
    %63 = memref.load %arg2[%c2_30, %c2_31] : memref<8x4xf32, #tpu.memory_space<smem>>
    %64 = vector.extract_strided_slice %1 {offsets = [2, 0, 0], sizes = [1, 8, 16], strides = [1, 1, 1]} : vector<4x8x16xf32> to vector<1x8x16xf32>
    %65 = vector.shape_cast %64 : vector<1x8x16xf32> to vector<8x16xf32>
    %66 = vector.broadcast %63 : f32 to vector<8x16xf32>
    %67 = arith.mulf %66, %65 : vector<8x16xf32>
    %68 = arith.addf %62, %67 : vector<8x16xf32>
    %c2_32 = arith.constant 2 : index
    %c3_33 = arith.constant 3 : index
    %69 = memref.load %arg2[%c2_32, %c3_33] : memref<8x4xf32, #tpu.memory_space<smem>>
    %70 = vector.extract_strided_slice %1 {offsets = [3, 0, 0], sizes = [1, 8, 16], strides = [1, 1, 1]} : vector<4x8x16xf32> to vector<1x8x16xf32>
    %71 = vector.shape_cast %70 : vector<1x8x16xf32> to vector<8x16xf32>
    %72 = vector.broadcast %69 : f32 to vector<8x16xf32>
    %73 = arith.mulf %72, %71 : vector<8x16xf32>
    %74 = arith.addf %68, %73 : vector<8x16xf32>
    %c3_34 = arith.constant 3 : index
    %c0_35 = arith.constant 0 : index
    %75 = memref.load %arg2[%c3_34, %c0_35] : memref<8x4xf32, #tpu.memory_space<smem>>
    %76 = vector.extract_strided_slice %1 {offsets = [0, 0, 0], sizes = [1, 8, 16], strides = [1, 1, 1]} : vector<4x8x16xf32> to vector<1x8x16xf32>
    %77 = vector.shape_cast %76 : vector<1x8x16xf32> to vector<8x16xf32>
    %78 = vector.broadcast %75 : f32 to vector<8x16xf32>
    %79 = arith.mulf %78, %77 : vector<8x16xf32>
    %c3_36 = arith.constant 3 : index
    %c1_37 = arith.constant 1 : index
    %80 = memref.load %arg2[%c3_36, %c1_37] : memref<8x4xf32, #tpu.memory_space<smem>>
    %81 = vector.extract_strided_slice %1 {offsets = [1, 0, 0], sizes = [1, 8, 16], strides = [1, 1, 1]} : vector<4x8x16xf32> to vector<1x8x16xf32>
    %82 = vector.shape_cast %81 : vector<1x8x16xf32> to vector<8x16xf32>
    %83 = vector.broadcast %80 : f32 to vector<8x16xf32>
    %84 = arith.mulf %83, %82 : vector<8x16xf32>
    %85 = arith.addf %79, %84 : vector<8x16xf32>
    %c3_38 = arith.constant 3 : index
    %c2_39 = arith.constant 2 : index
    %86 = memref.load %arg2[%c3_38, %c2_39] : memref<8x4xf32, #tpu.memory_space<smem>>
    %87 = vector.extract_strided_slice %1 {offsets = [2, 0, 0], sizes = [1, 8, 16], strides = [1, 1, 1]} : vector<4x8x16xf32> to vector<1x8x16xf32>
    %88 = vector.shape_cast %87 : vector<1x8x16xf32> to vector<8x16xf32>
    %89 = vector.broadcast %86 : f32 to vector<8x16xf32>
    %90 = arith.mulf %89, %88 : vector<8x16xf32>
    %91 = arith.addf %85, %90 : vector<8x16xf32>
    %c3_40 = arith.constant 3 : index
    %c3_41 = arith.constant 3 : index
    %92 = memref.load %arg2[%c3_40, %c3_41] : memref<8x4xf32, #tpu.memory_space<smem>>
    %93 = vector.extract_strided_slice %1 {offsets = [3, 0, 0], sizes = [1, 8, 16], strides = [1, 1, 1]} : vector<4x8x16xf32> to vector<1x8x16xf32>
    %94 = vector.shape_cast %93 : vector<1x8x16xf32> to vector<8x16xf32>
    %95 = vector.broadcast %92 : f32 to vector<8x16xf32>
    %96 = arith.mulf %95, %94 : vector<8x16xf32>
    %97 = arith.addf %91, %96 : vector<8x16xf32>
    %c4 = arith.constant 4 : index
    %c0_42 = arith.constant 0 : index
    %98 = memref.load %arg2[%c4, %c0_42] : memref<8x4xf32, #tpu.memory_space<smem>>
    %99 = vector.extract_strided_slice %1 {offsets = [0, 0, 0], sizes = [1, 8, 16], strides = [1, 1, 1]} : vector<4x8x16xf32> to vector<1x8x16xf32>
    %100 = vector.shape_cast %99 : vector<1x8x16xf32> to vector<8x16xf32>
    %101 = vector.broadcast %98 : f32 to vector<8x16xf32>
    %102 = arith.mulf %101, %100 : vector<8x16xf32>
    %c4_43 = arith.constant 4 : index
    %c1_44 = arith.constant 1 : index
    %103 = memref.load %arg2[%c4_43, %c1_44] : memref<8x4xf32, #tpu.memory_space<smem>>
    %104 = vector.extract_strided_slice %1 {offsets = [1, 0, 0], sizes = [1, 8, 16], strides = [1, 1, 1]} : vector<4x8x16xf32> to vector<1x8x16xf32>
    %105 = vector.shape_cast %104 : vector<1x8x16xf32> to vector<8x16xf32>
    %106 = vector.broadcast %103 : f32 to vector<8x16xf32>
    %107 = arith.mulf %106, %105 : vector<8x16xf32>
    %108 = arith.addf %102, %107 : vector<8x16xf32>
    %c4_45 = arith.constant 4 : index
    %c2_46 = arith.constant 2 : index
    %109 = memref.load %arg2[%c4_45, %c2_46] : memref<8x4xf32, #tpu.memory_space<smem>>
    %110 = vector.extract_strided_slice %1 {offsets = [2, 0, 0], sizes = [1, 8, 16], strides = [1, 1, 1]} : vector<4x8x16xf32> to vector<1x8x16xf32>
    %111 = vector.shape_cast %110 : vector<1x8x16xf32> to vector<8x16xf32>
    %112 = vector.broadcast %109 : f32 to vector<8x16xf32>
    %113 = arith.mulf %112, %111 : vector<8x16xf32>
    %114 = arith.addf %108, %113 : vector<8x16xf32>
    %c4_47 = arith.constant 4 : index
    %c3_48 = arith.constant 3 : index
    %115 = memref.load %arg2[%c4_47, %c3_48] : memref<8x4xf32, #tpu.memory_space<smem>>
    %116 = vector.extract_strided_slice %1 {offsets = [3, 0, 0], sizes = [1, 8, 16], strides = [1, 1, 1]} : vector<4x8x16xf32> to vector<1x8x16xf32>
    %117 = vector.shape_cast %116 : vector<1x8x16xf32> to vector<8x16xf32>
    %118 = vector.broadcast %115 : f32 to vector<8x16xf32>
    %119 = arith.mulf %118, %117 : vector<8x16xf32>
    %120 = arith.addf %114, %119 : vector<8x16xf32>
    %c5 = arith.constant 5 : index
    %c0_49 = arith.constant 0 : index
    %121 = memref.load %arg2[%c5, %c0_49] : memref<8x4xf32, #tpu.memory_space<smem>>
    %122 = vector.extract_strided_slice %1 {offsets = [0, 0, 0], sizes = [1, 8, 16], strides = [1, 1, 1]} : vector<4x8x16xf32> to vector<1x8x16xf32>
    %123 = vector.shape_cast %122 : vector<1x8x16xf32> to vector<8x16xf32>
    %124 = vector.broadcast %121 : f32 to vector<8x16xf32>
    %125 = arith.mulf %124, %123 : vector<8x16xf32>
    %c5_50 = arith.constant 5 : index
    %c1_51 = arith.constant 1 : index
    %126 = memref.load %arg2[%c5_50, %c1_51] : memref<8x4xf32, #tpu.memory_space<smem>>
    %127 = vector.extract_strided_slice %1 {offsets = [1, 0, 0], sizes = [1, 8, 16], strides = [1, 1, 1]} : vector<4x8x16xf32> to vector<1x8x16xf32>
    %128 = vector.shape_cast %127 : vector<1x8x16xf32> to vector<8x16xf32>
    %129 = vector.broadcast %126 : f32 to vector<8x16xf32>
    %130 = arith.mulf %129, %128 : vector<8x16xf32>
    %131 = arith.addf %125, %130 : vector<8x16xf32>
    %c5_52 = arith.constant 5 : index
    %c2_53 = arith.constant 2 : index
    %132 = memref.load %arg2[%c5_52, %c2_53] : memref<8x4xf32, #tpu.memory_space<smem>>
    %133 = vector.extract_strided_slice %1 {offsets = [2, 0, 0], sizes = [1, 8, 16], strides = [1, 1, 1]} : vector<4x8x16xf32> to vector<1x8x16xf32>
    %134 = vector.shape_cast %133 : vector<1x8x16xf32> to vector<8x16xf32>
    %135 = vector.broadcast %132 : f32 to vector<8x16xf32>
    %136 = arith.mulf %135, %134 : vector<8x16xf32>
    %137 = arith.addf %131, %136 : vector<8x16xf32>
    %c5_54 = arith.constant 5 : index
    %c3_55 = arith.constant 3 : index
    %138 = memref.load %arg2[%c5_54, %c3_55] : memref<8x4xf32, #tpu.memory_space<smem>>
    %139 = vector.extract_strided_slice %1 {offsets = [3, 0, 0], sizes = [1, 8, 16], strides = [1, 1, 1]} : vector<4x8x16xf32> to vector<1x8x16xf32>
    %140 = vector.shape_cast %139 : vector<1x8x16xf32> to vector<8x16xf32>
    %141 = vector.broadcast %138 : f32 to vector<8x16xf32>
    %142 = arith.mulf %141, %140 : vector<8x16xf32>
    %143 = arith.addf %137, %142 : vector<8x16xf32>
    %c6 = arith.constant 6 : index
    %c0_56 = arith.constant 0 : index
    %144 = memref.load %arg2[%c6, %c0_56] : memref<8x4xf32, #tpu.memory_space<smem>>
    %145 = vector.extract_strided_slice %1 {offsets = [0, 0, 0], sizes = [1, 8, 16], strides = [1, 1, 1]} : vector<4x8x16xf32> to vector<1x8x16xf32>
    %146 = vector.shape_cast %145 : vector<1x8x16xf32> to vector<8x16xf32>
    %147 = vector.broadcast %144 : f32 to vector<8x16xf32>
    %148 = arith.mulf %147, %146 : vector<8x16xf32>
    %c6_57 = arith.constant 6 : index
    %c1_58 = arith.constant 1 : index
    %149 = memref.load %arg2[%c6_57, %c1_58] : memref<8x4xf32, #tpu.memory_space<smem>>
    %150 = vector.extract_strided_slice %1 {offsets = [1, 0, 0], sizes = [1, 8, 16], strides = [1, 1, 1]} : vector<4x8x16xf32> to vector<1x8x16xf32>
    %151 = vector.shape_cast %150 : vector<1x8x16xf32> to vector<8x16xf32>
    %152 = vector.broadcast %149 : f32 to vector<8x16xf32>
    %153 = arith.mulf %152, %151 : vector<8x16xf32>
    %154 = arith.addf %148, %153 : vector<8x16xf32>
    %c6_59 = arith.constant 6 : index
    %c2_60 = arith.constant 2 : index
    %155 = memref.load %arg2[%c6_59, %c2_60] : memref<8x4xf32, #tpu.memory_space<smem>>
    %156 = vector.extract_strided_slice %1 {offsets = [2, 0, 0], sizes = [1, 8, 16], strides = [1, 1, 1]} : vector<4x8x16xf32> to vector<1x8x16xf32>
    %157 = vector.shape_cast %156 : vector<1x8x16xf32> to vector<8x16xf32>
    %158 = vector.broadcast %155 : f32 to vector<8x16xf32>
    %159 = arith.mulf %158, %157 : vector<8x16xf32>
    %160 = arith.addf %154, %159 : vector<8x16xf32>
    %c6_61 = arith.constant 6 : index
    %c3_62 = arith.constant 3 : index
    %161 = memref.load %arg2[%c6_61, %c3_62] : memref<8x4xf32, #tpu.memory_space<smem>>
    %162 = vector.extract_strided_slice %1 {offsets = [3, 0, 0], sizes = [1, 8, 16], strides = [1, 1, 1]} : vector<4x8x16xf32> to vector<1x8x16xf32>
    %163 = vector.shape_cast %162 : vector<1x8x16xf32> to vector<8x16xf32>
    %164 = vector.broadcast %161 : f32 to vector<8x16xf32>
    %165 = arith.mulf %164, %163 : vector<8x16xf32>
    %166 = arith.addf %160, %165 : vector<8x16xf32>
    %c7 = arith.constant 7 : index
    %c0_63 = arith.constant 0 : index
    %167 = memref.load %arg2[%c7, %c0_63] : memref<8x4xf32, #tpu.memory_space<smem>>
    %168 = vector.extract_strided_slice %1 {offsets = [0, 0, 0], sizes = [1, 8, 16], strides = [1, 1, 1]} : vector<4x8x16xf32> to vector<1x8x16xf32>
    %169 = vector.shape_cast %168 : vector<1x8x16xf32> to vector<8x16xf32>
    %170 = vector.broadcast %167 : f32 to vector<8x16xf32>
    %171 = arith.mulf %170, %169 : vector<8x16xf32>
    %c7_64 = arith.constant 7 : index
    %c1_65 = arith.constant 1 : index
    %172 = memref.load %arg2[%c7_64, %c1_65] : memref<8x4xf32, #tpu.memory_space<smem>>
    %173 = vector.extract_strided_slice %1 {offsets = [1, 0, 0], sizes = [1, 8, 16], strides = [1, 1, 1]} : vector<4x8x16xf32> to vector<1x8x16xf32>
    %174 = vector.shape_cast %173 : vector<1x8x16xf32> to vector<8x16xf32>
    %175 = vector.broadcast %172 : f32 to vector<8x16xf32>
    %176 = arith.mulf %175, %174 : vector<8x16xf32>
    %177 = arith.addf %171, %176 : vector<8x16xf32>
    %c7_66 = arith.constant 7 : index
    %c2_67 = arith.constant 2 : index
    %178 = memref.load %arg2[%c7_66, %c2_67] : memref<8x4xf32, #tpu.memory_space<smem>>
    %179 = vector.extract_strided_slice %1 {offsets = [2, 0, 0], sizes = [1, 8, 16], strides = [1, 1, 1]} : vector<4x8x16xf32> to vector<1x8x16xf32>
    %180 = vector.shape_cast %179 : vector<1x8x16xf32> to vector<8x16xf32>
    %181 = vector.broadcast %178 : f32 to vector<8x16xf32>
    %182 = arith.mulf %181, %180 : vector<8x16xf32>
    %183 = arith.addf %177, %182 : vector<8x16xf32>
    %c7_68 = arith.constant 7 : index
    %c3_69 = arith.constant 3 : index
    %184 = memref.load %arg2[%c7_68, %c3_69] : memref<8x4xf32, #tpu.memory_space<smem>>
    %185 = vector.extract_strided_slice %1 {offsets = [3, 0, 0], sizes = [1, 8, 16], strides = [1, 1, 1]} : vector<4x8x16xf32> to vector<1x8x16xf32>
    %186 = vector.shape_cast %185 : vector<1x8x16xf32> to vector<8x16xf32>
    %187 = vector.broadcast %184 : f32 to vector<8x16xf32>
    %188 = arith.mulf %187, %186 : vector<8x16xf32>
    %189 = arith.addf %183, %188 : vector<8x16xf32>
    %190 = vector.shape_cast %28 : vector<8x16xf32> to vector<1x8x16xf32>
    %191 = vector.shape_cast %51 : vector<8x16xf32> to vector<1x8x16xf32>
    %192 = vector.shape_cast %74 : vector<8x16xf32> to vector<1x8x16xf32>
    %193 = vector.shape_cast %97 : vector<8x16xf32> to vector<1x8x16xf32>
    %194 = vector.shape_cast %120 : vector<8x16xf32> to vector<1x8x16xf32>
    %195 = vector.shape_cast %143 : vector<8x16xf32> to vector<1x8x16xf32>
    %196 = vector.shape_cast %166 : vector<8x16xf32> to vector<1x8x16xf32>
    %197 = vector.shape_cast %189 : vector<8x16xf32> to vector<1x8x16xf32>
    %198 = tpu.concatenate %190, %191, %192, %193, %194, %195, %196, %197 in 0 : vector<1x8x16xf32>, vector<1x8x16xf32>, vector<1x8x16xf32>, vector<1x8x16xf32>, vector<1x8x16xf32>, vector<1x8x16xf32>, vector<1x8x16xf32>, vector<1x8x16xf32> -> vector<8x8x16xf32>
    %c0_70 = arith.constant 0 : index
    %c0_71 = arith.constant 0 : index
    %199 = memref.load %arg2[%c0_70, %c0_71] : memref<8x4xf32, #tpu.memory_space<smem>>
    %200 = vector.extract_strided_slice %3 {offsets = [0, 0, 0], sizes = [1, 1, 16], strides = [1, 1, 1]} : vector<4x1x16xf32> to vector<1x1x16xf32>
    %201 = vector.shape_cast %200 : vector<1x1x16xf32> to vector<1x16xf32>
    %202 = vector.broadcast %199 : f32 to vector<1x16xf32>
    %203 = arith.mulf %202, %201 : vector<1x16xf32>
    %c0_72 = arith.constant 0 : index
    %c1_73 = arith.constant 1 : index
    %204 = memref.load %arg2[%c0_72, %c1_73] : memref<8x4xf32, #tpu.memory_space<smem>>
    %205 = vector.extract_strided_slice %3 {offsets = [1, 0, 0], sizes = [1, 1, 16], strides = [1, 1, 1]} : vector<4x1x16xf32> to vector<1x1x16xf32>
    %206 = vector.shape_cast %205 : vector<1x1x16xf32> to vector<1x16xf32>
    %207 = vector.broadcast %204 : f32 to vector<1x16xf32>
    %208 = arith.mulf %207, %206 : vector<1x16xf32>
    %209 = arith.addf %203, %208 : vector<1x16xf32>
    %c0_74 = arith.constant 0 : index
    %c2_75 = arith.constant 2 : index
    %210 = memref.load %arg2[%c0_74, %c2_75] : memref<8x4xf32, #tpu.memory_space<smem>>
    %211 = vector.extract_strided_slice %3 {offsets = [2, 0, 0], sizes = [1, 1, 16], strides = [1, 1, 1]} : vector<4x1x16xf32> to vector<1x1x16xf32>
    %212 = vector.shape_cast %211 : vector<1x1x16xf32> to vector<1x16xf32>
    %213 = vector.broadcast %210 : f32 to vector<1x16xf32>
    %214 = arith.mulf %213, %212 : vector<1x16xf32>
    %215 = arith.addf %209, %214 : vector<1x16xf32>
    %c0_76 = arith.constant 0 : index
    %c3_77 = arith.constant 3 : index
    %216 = memref.load %arg2[%c0_76, %c3_77] : memref<8x4xf32, #tpu.memory_space<smem>>
    %217 = vector.extract_strided_slice %3 {offsets = [3, 0, 0], sizes = [1, 1, 16], strides = [1, 1, 1]} : vector<4x1x16xf32> to vector<1x1x16xf32>
    %218 = vector.shape_cast %217 : vector<1x1x16xf32> to vector<1x16xf32>
    %219 = vector.broadcast %216 : f32 to vector<1x16xf32>
    %220 = arith.mulf %219, %218 : vector<1x16xf32>
    %221 = arith.addf %215, %220 : vector<1x16xf32>
    %c1_78 = arith.constant 1 : index
    %c0_79 = arith.constant 0 : index
    %222 = memref.load %arg2[%c1_78, %c0_79] : memref<8x4xf32, #tpu.memory_space<smem>>
    %223 = vector.extract_strided_slice %3 {offsets = [0, 0, 0], sizes = [1, 1, 16], strides = [1, 1, 1]} : vector<4x1x16xf32> to vector<1x1x16xf32>
    %224 = vector.shape_cast %223 : vector<1x1x16xf32> to vector<1x16xf32>
    %225 = vector.broadcast %222 : f32 to vector<1x16xf32>
    %226 = arith.mulf %225, %224 : vector<1x16xf32>
    %c1_80 = arith.constant 1 : index
    %c1_81 = arith.constant 1 : index
    %227 = memref.load %arg2[%c1_80, %c1_81] : memref<8x4xf32, #tpu.memory_space<smem>>
    %228 = vector.extract_strided_slice %3 {offsets = [1, 0, 0], sizes = [1, 1, 16], strides = [1, 1, 1]} : vector<4x1x16xf32> to vector<1x1x16xf32>
    %229 = vector.shape_cast %228 : vector<1x1x16xf32> to vector<1x16xf32>
    %230 = vector.broadcast %227 : f32 to vector<1x16xf32>
    %231 = arith.mulf %230, %229 : vector<1x16xf32>
    %232 = arith.addf %226, %231 : vector<1x16xf32>
    %c1_82 = arith.constant 1 : index
    %c2_83 = arith.constant 2 : index
    %233 = memref.load %arg2[%c1_82, %c2_83] : memref<8x4xf32, #tpu.memory_space<smem>>
    %234 = vector.extract_strided_slice %3 {offsets = [2, 0, 0], sizes = [1, 1, 16], strides = [1, 1, 1]} : vector<4x1x16xf32> to vector<1x1x16xf32>
    %235 = vector.shape_cast %234 : vector<1x1x16xf32> to vector<1x16xf32>
    %236 = vector.broadcast %233 : f32 to vector<1x16xf32>
    %237 = arith.mulf %236, %235 : vector<1x16xf32>
    %238 = arith.addf %232, %237 : vector<1x16xf32>
    %c1_84 = arith.constant 1 : index
    %c3_85 = arith.constant 3 : index
    %239 = memref.load %arg2[%c1_84, %c3_85] : memref<8x4xf32, #tpu.memory_space<smem>>
    %240 = vector.extract_strided_slice %3 {offsets = [3, 0, 0], sizes = [1, 1, 16], strides = [1, 1, 1]} : vector<4x1x16xf32> to vector<1x1x16xf32>
    %241 = vector.shape_cast %240 : vector<1x1x16xf32> to vector<1x16xf32>
    %242 = vector.broadcast %239 : f32 to vector<1x16xf32>
    %243 = arith.mulf %242, %241 : vector<1x16xf32>
    %244 = arith.addf %238, %243 : vector<1x16xf32>
    %c2_86 = arith.constant 2 : index
    %c0_87 = arith.constant 0 : index
    %245 = memref.load %arg2[%c2_86, %c0_87] : memref<8x4xf32, #tpu.memory_space<smem>>
    %246 = vector.extract_strided_slice %3 {offsets = [0, 0, 0], sizes = [1, 1, 16], strides = [1, 1, 1]} : vector<4x1x16xf32> to vector<1x1x16xf32>
    %247 = vector.shape_cast %246 : vector<1x1x16xf32> to vector<1x16xf32>
    %248 = vector.broadcast %245 : f32 to vector<1x16xf32>
    %249 = arith.mulf %248, %247 : vector<1x16xf32>
    %c2_88 = arith.constant 2 : index
    %c1_89 = arith.constant 1 : index
    %250 = memref.load %arg2[%c2_88, %c1_89] : memref<8x4xf32, #tpu.memory_space<smem>>
    %251 = vector.extract_strided_slice %3 {offsets = [1, 0, 0], sizes = [1, 1, 16], strides = [1, 1, 1]} : vector<4x1x16xf32> to vector<1x1x16xf32>
    %252 = vector.shape_cast %251 : vector<1x1x16xf32> to vector<1x16xf32>
    %253 = vector.broadcast %250 : f32 to vector<1x16xf32>
    %254 = arith.mulf %253, %252 : vector<1x16xf32>
    %255 = arith.addf %249, %254 : vector<1x16xf32>
    %c2_90 = arith.constant 2 : index
    %c2_91 = arith.constant 2 : index
    %256 = memref.load %arg2[%c2_90, %c2_91] : memref<8x4xf32, #tpu.memory_space<smem>>
    %257 = vector.extract_strided_slice %3 {offsets = [2, 0, 0], sizes = [1, 1, 16], strides = [1, 1, 1]} : vector<4x1x16xf32> to vector<1x1x16xf32>
    %258 = vector.shape_cast %257 : vector<1x1x16xf32> to vector<1x16xf32>
    %259 = vector.broadcast %256 : f32 to vector<1x16xf32>
    %260 = arith.mulf %259, %258 : vector<1x16xf32>
    %261 = arith.addf %255, %260 : vector<1x16xf32>
    %c2_92 = arith.constant 2 : index
    %c3_93 = arith.constant 3 : index
    %262 = memref.load %arg2[%c2_92, %c3_93] : memref<8x4xf32, #tpu.memory_space<smem>>
    %263 = vector.extract_strided_slice %3 {offsets = [3, 0, 0], sizes = [1, 1, 16], strides = [1, 1, 1]} : vector<4x1x16xf32> to vector<1x1x16xf32>
    %264 = vector.shape_cast %263 : vector<1x1x16xf32> to vector<1x16xf32>
    %265 = vector.broadcast %262 : f32 to vector<1x16xf32>
    %266 = arith.mulf %265, %264 : vector<1x16xf32>
    %267 = arith.addf %261, %266 : vector<1x16xf32>
    %c3_94 = arith.constant 3 : index
    %c0_95 = arith.constant 0 : index
    %268 = memref.load %arg2[%c3_94, %c0_95] : memref<8x4xf32, #tpu.memory_space<smem>>
    %269 = vector.extract_strided_slice %3 {offsets = [0, 0, 0], sizes = [1, 1, 16], strides = [1, 1, 1]} : vector<4x1x16xf32> to vector<1x1x16xf32>
    %270 = vector.shape_cast %269 : vector<1x1x16xf32> to vector<1x16xf32>
    %271 = vector.broadcast %268 : f32 to vector<1x16xf32>
    %272 = arith.mulf %271, %270 : vector<1x16xf32>
    %c3_96 = arith.constant 3 : index
    %c1_97 = arith.constant 1 : index
    %273 = memref.load %arg2[%c3_96, %c1_97] : memref<8x4xf32, #tpu.memory_space<smem>>
    %274 = vector.extract_strided_slice %3 {offsets = [1, 0, 0], sizes = [1, 1, 16], strides = [1, 1, 1]} : vector<4x1x16xf32> to vector<1x1x16xf32>
    %275 = vector.shape_cast %274 : vector<1x1x16xf32> to vector<1x16xf32>
    %276 = vector.broadcast %273 : f32 to vector<1x16xf32>
    %277 = arith.mulf %276, %275 : vector<1x16xf32>
    %278 = arith.addf %272, %277 : vector<1x16xf32>
    %c3_98 = arith.constant 3 : index
    %c2_99 = arith.constant 2 : index
    %279 = memref.load %arg2[%c3_98, %c2_99] : memref<8x4xf32, #tpu.memory_space<smem>>
    %280 = vector.extract_strided_slice %3 {offsets = [2, 0, 0], sizes = [1, 1, 16], strides = [1, 1, 1]} : vector<4x1x16xf32> to vector<1x1x16xf32>
    %281 = vector.shape_cast %280 : vector<1x1x16xf32> to vector<1x16xf32>
    %282 = vector.broadcast %279 : f32 to vector<1x16xf32>
    %283 = arith.mulf %282, %281 : vector<1x16xf32>
    %284 = arith.addf %278, %283 : vector<1x16xf32>
    %c3_100 = arith.constant 3 : index
    %c3_101 = arith.constant 3 : index
    %285 = memref.load %arg2[%c3_100, %c3_101] : memref<8x4xf32, #tpu.memory_space<smem>>
    %286 = vector.extract_strided_slice %3 {offsets = [3, 0, 0], sizes = [1, 1, 16], strides = [1, 1, 1]} : vector<4x1x16xf32> to vector<1x1x16xf32>
    %287 = vector.shape_cast %286 : vector<1x1x16xf32> to vector<1x16xf32>
    %288 = vector.broadcast %285 : f32 to vector<1x16xf32>
    %289 = arith.mulf %288, %287 : vector<1x16xf32>
    %290 = arith.addf %284, %289 : vector<1x16xf32>
    %c4_102 = arith.constant 4 : index
    %c0_103 = arith.constant 0 : index
    %291 = memref.load %arg2[%c4_102, %c0_103] : memref<8x4xf32, #tpu.memory_space<smem>>
    %292 = vector.extract_strided_slice %3 {offsets = [0, 0, 0], sizes = [1, 1, 16], strides = [1, 1, 1]} : vector<4x1x16xf32> to vector<1x1x16xf32>
    %293 = vector.shape_cast %292 : vector<1x1x16xf32> to vector<1x16xf32>
    %294 = vector.broadcast %291 : f32 to vector<1x16xf32>
    %295 = arith.mulf %294, %293 : vector<1x16xf32>
    %c4_104 = arith.constant 4 : index
    %c1_105 = arith.constant 1 : index
    %296 = memref.load %arg2[%c4_104, %c1_105] : memref<8x4xf32, #tpu.memory_space<smem>>
    %297 = vector.extract_strided_slice %3 {offsets = [1, 0, 0], sizes = [1, 1, 16], strides = [1, 1, 1]} : vector<4x1x16xf32> to vector<1x1x16xf32>
    %298 = vector.shape_cast %297 : vector<1x1x16xf32> to vector<1x16xf32>
    %299 = vector.broadcast %296 : f32 to vector<1x16xf32>
    %300 = arith.mulf %299, %298 : vector<1x16xf32>
    %301 = arith.addf %295, %300 : vector<1x16xf32>
    %c4_106 = arith.constant 4 : index
    %c2_107 = arith.constant 2 : index
    %302 = memref.load %arg2[%c4_106, %c2_107] : memref<8x4xf32, #tpu.memory_space<smem>>
    %303 = vector.extract_strided_slice %3 {offsets = [2, 0, 0], sizes = [1, 1, 16], strides = [1, 1, 1]} : vector<4x1x16xf32> to vector<1x1x16xf32>
    %304 = vector.shape_cast %303 : vector<1x1x16xf32> to vector<1x16xf32>
    %305 = vector.broadcast %302 : f32 to vector<1x16xf32>
    %306 = arith.mulf %305, %304 : vector<1x16xf32>
    %307 = arith.addf %301, %306 : vector<1x16xf32>
    %c4_108 = arith.constant 4 : index
    %c3_109 = arith.constant 3 : index
    %308 = memref.load %arg2[%c4_108, %c3_109] : memref<8x4xf32, #tpu.memory_space<smem>>
    %309 = vector.extract_strided_slice %3 {offsets = [3, 0, 0], sizes = [1, 1, 16], strides = [1, 1, 1]} : vector<4x1x16xf32> to vector<1x1x16xf32>
    %310 = vector.shape_cast %309 : vector<1x1x16xf32> to vector<1x16xf32>
    %311 = vector.broadcast %308 : f32 to vector<1x16xf32>
    %312 = arith.mulf %311, %310 : vector<1x16xf32>
    %313 = arith.addf %307, %312 : vector<1x16xf32>
    %c5_110 = arith.constant 5 : index
    %c0_111 = arith.constant 0 : index
    %314 = memref.load %arg2[%c5_110, %c0_111] : memref<8x4xf32, #tpu.memory_space<smem>>
    %315 = vector.extract_strided_slice %3 {offsets = [0, 0, 0], sizes = [1, 1, 16], strides = [1, 1, 1]} : vector<4x1x16xf32> to vector<1x1x16xf32>
    %316 = vector.shape_cast %315 : vector<1x1x16xf32> to vector<1x16xf32>
    %317 = vector.broadcast %314 : f32 to vector<1x16xf32>
    %318 = arith.mulf %317, %316 : vector<1x16xf32>
    %c5_112 = arith.constant 5 : index
    %c1_113 = arith.constant 1 : index
    %319 = memref.load %arg2[%c5_112, %c1_113] : memref<8x4xf32, #tpu.memory_space<smem>>
    %320 = vector.extract_strided_slice %3 {offsets = [1, 0, 0], sizes = [1, 1, 16], strides = [1, 1, 1]} : vector<4x1x16xf32> to vector<1x1x16xf32>
    %321 = vector.shape_cast %320 : vector<1x1x16xf32> to vector<1x16xf32>
    %322 = vector.broadcast %319 : f32 to vector<1x16xf32>
    %323 = arith.mulf %322, %321 : vector<1x16xf32>
    %324 = arith.addf %318, %323 : vector<1x16xf32>
    %c5_114 = arith.constant 5 : index
    %c2_115 = arith.constant 2 : index
    %325 = memref.load %arg2[%c5_114, %c2_115] : memref<8x4xf32, #tpu.memory_space<smem>>
    %326 = vector.extract_strided_slice %3 {offsets = [2, 0, 0], sizes = [1, 1, 16], strides = [1, 1, 1]} : vector<4x1x16xf32> to vector<1x1x16xf32>
    %327 = vector.shape_cast %326 : vector<1x1x16xf32> to vector<1x16xf32>
    %328 = vector.broadcast %325 : f32 to vector<1x16xf32>
    %329 = arith.mulf %328, %327 : vector<1x16xf32>
    %330 = arith.addf %324, %329 : vector<1x16xf32>
    %c5_116 = arith.constant 5 : index
    %c3_117 = arith.constant 3 : index
    %331 = memref.load %arg2[%c5_116, %c3_117] : memref<8x4xf32, #tpu.memory_space<smem>>
    %332 = vector.extract_strided_slice %3 {offsets = [3, 0, 0], sizes = [1, 1, 16], strides = [1, 1, 1]} : vector<4x1x16xf32> to vector<1x1x16xf32>
    %333 = vector.shape_cast %332 : vector<1x1x16xf32> to vector<1x16xf32>
    %334 = vector.broadcast %331 : f32 to vector<1x16xf32>
    %335 = arith.mulf %334, %333 : vector<1x16xf32>
    %336 = arith.addf %330, %335 : vector<1x16xf32>
    %c6_118 = arith.constant 6 : index
    %c0_119 = arith.constant 0 : index
    %337 = memref.load %arg2[%c6_118, %c0_119] : memref<8x4xf32, #tpu.memory_space<smem>>
    %338 = vector.extract_strided_slice %3 {offsets = [0, 0, 0], sizes = [1, 1, 16], strides = [1, 1, 1]} : vector<4x1x16xf32> to vector<1x1x16xf32>
    %339 = vector.shape_cast %338 : vector<1x1x16xf32> to vector<1x16xf32>
    %340 = vector.broadcast %337 : f32 to vector<1x16xf32>
    %341 = arith.mulf %340, %339 : vector<1x16xf32>
    %c6_120 = arith.constant 6 : index
    %c1_121 = arith.constant 1 : index
    %342 = memref.load %arg2[%c6_120, %c1_121] : memref<8x4xf32, #tpu.memory_space<smem>>
    %343 = vector.extract_strided_slice %3 {offsets = [1, 0, 0], sizes = [1, 1, 16], strides = [1, 1, 1]} : vector<4x1x16xf32> to vector<1x1x16xf32>
    %344 = vector.shape_cast %343 : vector<1x1x16xf32> to vector<1x16xf32>
    %345 = vector.broadcast %342 : f32 to vector<1x16xf32>
    %346 = arith.mulf %345, %344 : vector<1x16xf32>
    %347 = arith.addf %341, %346 : vector<1x16xf32>
    %c6_122 = arith.constant 6 : index
    %c2_123 = arith.constant 2 : index
    %348 = memref.load %arg2[%c6_122, %c2_123] : memref<8x4xf32, #tpu.memory_space<smem>>
    %349 = vector.extract_strided_slice %3 {offsets = [2, 0, 0], sizes = [1, 1, 16], strides = [1, 1, 1]} : vector<4x1x16xf32> to vector<1x1x16xf32>
    %350 = vector.shape_cast %349 : vector<1x1x16xf32> to vector<1x16xf32>
    %351 = vector.broadcast %348 : f32 to vector<1x16xf32>
    %352 = arith.mulf %351, %350 : vector<1x16xf32>
    %353 = arith.addf %347, %352 : vector<1x16xf32>
    %c6_124 = arith.constant 6 : index
    %c3_125 = arith.constant 3 : index
    %354 = memref.load %arg2[%c6_124, %c3_125] : memref<8x4xf32, #tpu.memory_space<smem>>
    %355 = vector.extract_strided_slice %3 {offsets = [3, 0, 0], sizes = [1, 1, 16], strides = [1, 1, 1]} : vector<4x1x16xf32> to vector<1x1x16xf32>
    %356 = vector.shape_cast %355 : vector<1x1x16xf32> to vector<1x16xf32>
    %357 = vector.broadcast %354 : f32 to vector<1x16xf32>
    %358 = arith.mulf %357, %356 : vector<1x16xf32>
    %359 = arith.addf %353, %358 : vector<1x16xf32>
    %c7_126 = arith.constant 7 : index
    %c0_127 = arith.constant 0 : index
    %360 = memref.load %arg2[%c7_126, %c0_127] : memref<8x4xf32, #tpu.memory_space<smem>>
    %361 = vector.extract_strided_slice %3 {offsets = [0, 0, 0], sizes = [1, 1, 16], strides = [1, 1, 1]} : vector<4x1x16xf32> to vector<1x1x16xf32>
    %362 = vector.shape_cast %361 : vector<1x1x16xf32> to vector<1x16xf32>
    %363 = vector.broadcast %360 : f32 to vector<1x16xf32>
    %364 = arith.mulf %363, %362 : vector<1x16xf32>
    %c7_128 = arith.constant 7 : index
    %c1_129 = arith.constant 1 : index
    %365 = memref.load %arg2[%c7_128, %c1_129] : memref<8x4xf32, #tpu.memory_space<smem>>
    %366 = vector.extract_strided_slice %3 {offsets = [1, 0, 0], sizes = [1, 1, 16], strides = [1, 1, 1]} : vector<4x1x16xf32> to vector<1x1x16xf32>
    %367 = vector.shape_cast %366 : vector<1x1x16xf32> to vector<1x16xf32>
    %368 = vector.broadcast %365 : f32 to vector<1x16xf32>
    %369 = arith.mulf %368, %367 : vector<1x16xf32>
    %370 = arith.addf %364, %369 : vector<1x16xf32>
    %c7_130 = arith.constant 7 : index
    %c2_131 = arith.constant 2 : index
    %371 = memref.load %arg2[%c7_130, %c2_131] : memref<8x4xf32, #tpu.memory_space<smem>>
    %372 = vector.extract_strided_slice %3 {offsets = [2, 0, 0], sizes = [1, 1, 16], strides = [1, 1, 1]} : vector<4x1x16xf32> to vector<1x1x16xf32>
    %373 = vector.shape_cast %372 : vector<1x1x16xf32> to vector<1x16xf32>
    %374 = vector.broadcast %371 : f32 to vector<1x16xf32>
    %375 = arith.mulf %374, %373 : vector<1x16xf32>
    %376 = arith.addf %370, %375 : vector<1x16xf32>
    %c7_132 = arith.constant 7 : index
    %c3_133 = arith.constant 3 : index
    %377 = memref.load %arg2[%c7_132, %c3_133] : memref<8x4xf32, #tpu.memory_space<smem>>
    %378 = vector.extract_strided_slice %3 {offsets = [3, 0, 0], sizes = [1, 1, 16], strides = [1, 1, 1]} : vector<4x1x16xf32> to vector<1x1x16xf32>
    %379 = vector.shape_cast %378 : vector<1x1x16xf32> to vector<1x16xf32>
    %380 = vector.broadcast %377 : f32 to vector<1x16xf32>
    %381 = arith.mulf %380, %379 : vector<1x16xf32>
    %382 = arith.addf %376, %381 : vector<1x16xf32>
    %383 = vector.shape_cast %221 : vector<1x16xf32> to vector<1x1x16xf32>
    %384 = vector.shape_cast %244 : vector<1x16xf32> to vector<1x1x16xf32>
    %385 = vector.shape_cast %267 : vector<1x16xf32> to vector<1x1x16xf32>
    %386 = vector.shape_cast %290 : vector<1x16xf32> to vector<1x1x16xf32>
    %387 = vector.shape_cast %313 : vector<1x16xf32> to vector<1x1x16xf32>
    %388 = vector.shape_cast %336 : vector<1x16xf32> to vector<1x1x16xf32>
    %389 = vector.shape_cast %359 : vector<1x16xf32> to vector<1x1x16xf32>
    %390 = vector.shape_cast %382 : vector<1x16xf32> to vector<1x1x16xf32>
    %391 = tpu.concatenate %383, %384, %385, %386, %387, %388, %389, %390 in 0 : vector<1x1x16xf32>, vector<1x1x16xf32>, vector<1x1x16xf32>, vector<1x1x16xf32>, vector<1x1x16xf32>, vector<1x1x16xf32>, vector<1x1x16xf32>, vector<1x1x16xf32> -> vector<8x1x16xf32>
    %392 = vector.shape_cast %391 : vector<8x1x16xf32> to vector<8x16xf32>
    %c0_134 = arith.constant 0 : index
    %c0_135 = arith.constant 0 : index
    %393 = memref.load %arg2[%c0_134, %c0_135] : memref<8x4xf32, #tpu.memory_space<smem>>
    %394 = vector.extract_strided_slice %5 {offsets = [0, 0, 0], sizes = [1, 1, 16], strides = [1, 1, 1]} : vector<4x1x16xf32> to vector<1x1x16xf32>
    %395 = vector.shape_cast %394 : vector<1x1x16xf32> to vector<1x16xf32>
    %396 = vector.broadcast %393 : f32 to vector<1x16xf32>
    %397 = arith.mulf %396, %395 : vector<1x16xf32>
    %c0_136 = arith.constant 0 : index
    %c1_137 = arith.constant 1 : index
    %398 = memref.load %arg2[%c0_136, %c1_137] : memref<8x4xf32, #tpu.memory_space<smem>>
    %399 = vector.extract_strided_slice %5 {offsets = [1, 0, 0], sizes = [1, 1, 16], strides = [1, 1, 1]} : vector<4x1x16xf32> to vector<1x1x16xf32>
    %400 = vector.shape_cast %399 : vector<1x1x16xf32> to vector<1x16xf32>
    %401 = vector.broadcast %398 : f32 to vector<1x16xf32>
    %402 = arith.mulf %401, %400 : vector<1x16xf32>
    %403 = arith.addf %397, %402 : vector<1x16xf32>
    %c0_138 = arith.constant 0 : index
    %c2_139 = arith.constant 2 : index
    %404 = memref.load %arg2[%c0_138, %c2_139] : memref<8x4xf32, #tpu.memory_space<smem>>
    %405 = vector.extract_strided_slice %5 {offsets = [2, 0, 0], sizes = [1, 1, 16], strides = [1, 1, 1]} : vector<4x1x16xf32> to vector<1x1x16xf32>
    %406 = vector.shape_cast %405 : vector<1x1x16xf32> to vector<1x16xf32>
    %407 = vector.broadcast %404 : f32 to vector<1x16xf32>
    %408 = arith.mulf %407, %406 : vector<1x16xf32>
    %409 = arith.addf %403, %408 : vector<1x16xf32>
    %c0_140 = arith.constant 0 : index
    %c3_141 = arith.constant 3 : index
    %410 = memref.load %arg2[%c0_140, %c3_141] : memref<8x4xf32, #tpu.memory_space<smem>>
    %411 = vector.extract_strided_slice %5 {offsets = [3, 0, 0], sizes = [1, 1, 16], strides = [1, 1, 1]} : vector<4x1x16xf32> to vector<1x1x16xf32>
    %412 = vector.shape_cast %411 : vector<1x1x16xf32> to vector<1x16xf32>
    %413 = vector.broadcast %410 : f32 to vector<1x16xf32>
    %414 = arith.mulf %413, %412 : vector<1x16xf32>
    %415 = arith.addf %409, %414 : vector<1x16xf32>
    %c1_142 = arith.constant 1 : index
    %c0_143 = arith.constant 0 : index
    %416 = memref.load %arg2[%c1_142, %c0_143] : memref<8x4xf32, #tpu.memory_space<smem>>
    %417 = vector.extract_strided_slice %5 {offsets = [0, 0, 0], sizes = [1, 1, 16], strides = [1, 1, 1]} : vector<4x1x16xf32> to vector<1x1x16xf32>
    %418 = vector.shape_cast %417 : vector<1x1x16xf32> to vector<1x16xf32>
    %419 = vector.broadcast %416 : f32 to vector<1x16xf32>
    %420 = arith.mulf %419, %418 : vector<1x16xf32>
    %c1_144 = arith.constant 1 : index
    %c1_145 = arith.constant 1 : index
    %421 = memref.load %arg2[%c1_144, %c1_145] : memref<8x4xf32, #tpu.memory_space<smem>>
    %422 = vector.extract_strided_slice %5 {offsets = [1, 0, 0], sizes = [1, 1, 16], strides = [1, 1, 1]} : vector<4x1x16xf32> to vector<1x1x16xf32>
    %423 = vector.shape_cast %422 : vector<1x1x16xf32> to vector<1x16xf32>
    %424 = vector.broadcast %421 : f32 to vector<1x16xf32>
    %425 = arith.mulf %424, %423 : vector<1x16xf32>
    %426 = arith.addf %420, %425 : vector<1x16xf32>
    %c1_146 = arith.constant 1 : index
    %c2_147 = arith.constant 2 : index
    %427 = memref.load %arg2[%c1_146, %c2_147] : memref<8x4xf32, #tpu.memory_space<smem>>
    %428 = vector.extract_strided_slice %5 {offsets = [2, 0, 0], sizes = [1, 1, 16], strides = [1, 1, 1]} : vector<4x1x16xf32> to vector<1x1x16xf32>
    %429 = vector.shape_cast %428 : vector<1x1x16xf32> to vector<1x16xf32>
    %430 = vector.broadcast %427 : f32 to vector<1x16xf32>
    %431 = arith.mulf %430, %429 : vector<1x16xf32>
    %432 = arith.addf %426, %431 : vector<1x16xf32>
    %c1_148 = arith.constant 1 : index
    %c3_149 = arith.constant 3 : index
    %433 = memref.load %arg2[%c1_148, %c3_149] : memref<8x4xf32, #tpu.memory_space<smem>>
    %434 = vector.extract_strided_slice %5 {offsets = [3, 0, 0], sizes = [1, 1, 16], strides = [1, 1, 1]} : vector<4x1x16xf32> to vector<1x1x16xf32>
    %435 = vector.shape_cast %434 : vector<1x1x16xf32> to vector<1x16xf32>
    %436 = vector.broadcast %433 : f32 to vector<1x16xf32>
    %437 = arith.mulf %436, %435 : vector<1x16xf32>
    %438 = arith.addf %432, %437 : vector<1x16xf32>
    %c2_150 = arith.constant 2 : index
    %c0_151 = arith.constant 0 : index
    %439 = memref.load %arg2[%c2_150, %c0_151] : memref<8x4xf32, #tpu.memory_space<smem>>
    %440 = vector.extract_strided_slice %5 {offsets = [0, 0, 0], sizes = [1, 1, 16], strides = [1, 1, 1]} : vector<4x1x16xf32> to vector<1x1x16xf32>
    %441 = vector.shape_cast %440 : vector<1x1x16xf32> to vector<1x16xf32>
    %442 = vector.broadcast %439 : f32 to vector<1x16xf32>
    %443 = arith.mulf %442, %441 : vector<1x16xf32>
    %c2_152 = arith.constant 2 : index
    %c1_153 = arith.constant 1 : index
    %444 = memref.load %arg2[%c2_152, %c1_153] : memref<8x4xf32, #tpu.memory_space<smem>>
    %445 = vector.extract_strided_slice %5 {offsets = [1, 0, 0], sizes = [1, 1, 16], strides = [1, 1, 1]} : vector<4x1x16xf32> to vector<1x1x16xf32>
    %446 = vector.shape_cast %445 : vector<1x1x16xf32> to vector<1x16xf32>
    %447 = vector.broadcast %444 : f32 to vector<1x16xf32>
    %448 = arith.mulf %447, %446 : vector<1x16xf32>
    %449 = arith.addf %443, %448 : vector<1x16xf32>
    %c2_154 = arith.constant 2 : index
    %c2_155 = arith.constant 2 : index
    %450 = memref.load %arg2[%c2_154, %c2_155] : memref<8x4xf32, #tpu.memory_space<smem>>
    %451 = vector.extract_strided_slice %5 {offsets = [2, 0, 0], sizes = [1, 1, 16], strides = [1, 1, 1]} : vector<4x1x16xf32> to vector<1x1x16xf32>
    %452 = vector.shape_cast %451 : vector<1x1x16xf32> to vector<1x16xf32>
    %453 = vector.broadcast %450 : f32 to vector<1x16xf32>
    %454 = arith.mulf %453, %452 : vector<1x16xf32>
    %455 = arith.addf %449, %454 : vector<1x16xf32>
    %c2_156 = arith.constant 2 : index
    %c3_157 = arith.constant 3 : index
    %456 = memref.load %arg2[%c2_156, %c3_157] : memref<8x4xf32, #tpu.memory_space<smem>>
    %457 = vector.extract_strided_slice %5 {offsets = [3, 0, 0], sizes = [1, 1, 16], strides = [1, 1, 1]} : vector<4x1x16xf32> to vector<1x1x16xf32>
    %458 = vector.shape_cast %457 : vector<1x1x16xf32> to vector<1x16xf32>
    %459 = vector.broadcast %456 : f32 to vector<1x16xf32>
    %460 = arith.mulf %459, %458 : vector<1x16xf32>
    %461 = arith.addf %455, %460 : vector<1x16xf32>
    %c3_158 = arith.constant 3 : index
    %c0_159 = arith.constant 0 : index
    %462 = memref.load %arg2[%c3_158, %c0_159] : memref<8x4xf32, #tpu.memory_space<smem>>
    %463 = vector.extract_strided_slice %5 {offsets = [0, 0, 0], sizes = [1, 1, 16], strides = [1, 1, 1]} : vector<4x1x16xf32> to vector<1x1x16xf32>
    %464 = vector.shape_cast %463 : vector<1x1x16xf32> to vector<1x16xf32>
    %465 = vector.broadcast %462 : f32 to vector<1x16xf32>
    %466 = arith.mulf %465, %464 : vector<1x16xf32>
    %c3_160 = arith.constant 3 : index
    %c1_161 = arith.constant 1 : index
    %467 = memref.load %arg2[%c3_160, %c1_161] : memref<8x4xf32, #tpu.memory_space<smem>>
    %468 = vector.extract_strided_slice %5 {offsets = [1, 0, 0], sizes = [1, 1, 16], strides = [1, 1, 1]} : vector<4x1x16xf32> to vector<1x1x16xf32>
    %469 = vector.shape_cast %468 : vector<1x1x16xf32> to vector<1x16xf32>
    %470 = vector.broadcast %467 : f32 to vector<1x16xf32>
    %471 = arith.mulf %470, %469 : vector<1x16xf32>
    %472 = arith.addf %466, %471 : vector<1x16xf32>
    %c3_162 = arith.constant 3 : index
    %c2_163 = arith.constant 2 : index
    %473 = memref.load %arg2[%c3_162, %c2_163] : memref<8x4xf32, #tpu.memory_space<smem>>
    %474 = vector.extract_strided_slice %5 {offsets = [2, 0, 0], sizes = [1, 1, 16], strides = [1, 1, 1]} : vector<4x1x16xf32> to vector<1x1x16xf32>
    %475 = vector.shape_cast %474 : vector<1x1x16xf32> to vector<1x16xf32>
    %476 = vector.broadcast %473 : f32 to vector<1x16xf32>
    %477 = arith.mulf %476, %475 : vector<1x16xf32>
    %478 = arith.addf %472, %477 : vector<1x16xf32>
    %c3_164 = arith.constant 3 : index
    %c3_165 = arith.constant 3 : index
    %479 = memref.load %arg2[%c3_164, %c3_165] : memref<8x4xf32, #tpu.memory_space<smem>>
    %480 = vector.extract_strided_slice %5 {offsets = [3, 0, 0], sizes = [1, 1, 16], strides = [1, 1, 1]} : vector<4x1x16xf32> to vector<1x1x16xf32>
    %481 = vector.shape_cast %480 : vector<1x1x16xf32> to vector<1x16xf32>
    %482 = vector.broadcast %479 : f32 to vector<1x16xf32>
    %483 = arith.mulf %482, %481 : vector<1x16xf32>
    %484 = arith.addf %478, %483 : vector<1x16xf32>
    %c4_166 = arith.constant 4 : index
    %c0_167 = arith.constant 0 : index
    %485 = memref.load %arg2[%c4_166, %c0_167] : memref<8x4xf32, #tpu.memory_space<smem>>
    %486 = vector.extract_strided_slice %5 {offsets = [0, 0, 0], sizes = [1, 1, 16], strides = [1, 1, 1]} : vector<4x1x16xf32> to vector<1x1x16xf32>
    %487 = vector.shape_cast %486 : vector<1x1x16xf32> to vector<1x16xf32>
    %488 = vector.broadcast %485 : f32 to vector<1x16xf32>
    %489 = arith.mulf %488, %487 : vector<1x16xf32>
    %c4_168 = arith.constant 4 : index
    %c1_169 = arith.constant 1 : index
    %490 = memref.load %arg2[%c4_168, %c1_169] : memref<8x4xf32, #tpu.memory_space<smem>>
    %491 = vector.extract_strided_slice %5 {offsets = [1, 0, 0], sizes = [1, 1, 16], strides = [1, 1, 1]} : vector<4x1x16xf32> to vector<1x1x16xf32>
    %492 = vector.shape_cast %491 : vector<1x1x16xf32> to vector<1x16xf32>
    %493 = vector.broadcast %490 : f32 to vector<1x16xf32>
    %494 = arith.mulf %493, %492 : vector<1x16xf32>
    %495 = arith.addf %489, %494 : vector<1x16xf32>
    %c4_170 = arith.constant 4 : index
    %c2_171 = arith.constant 2 : index
    %496 = memref.load %arg2[%c4_170, %c2_171] : memref<8x4xf32, #tpu.memory_space<smem>>
    %497 = vector.extract_strided_slice %5 {offsets = [2, 0, 0], sizes = [1, 1, 16], strides = [1, 1, 1]} : vector<4x1x16xf32> to vector<1x1x16xf32>
    %498 = vector.shape_cast %497 : vector<1x1x16xf32> to vector<1x16xf32>
    %499 = vector.broadcast %496 : f32 to vector<1x16xf32>
    %500 = arith.mulf %499, %498 : vector<1x16xf32>
    %501 = arith.addf %495, %500 : vector<1x16xf32>
    %c4_172 = arith.constant 4 : index
    %c3_173 = arith.constant 3 : index
    %502 = memref.load %arg2[%c4_172, %c3_173] : memref<8x4xf32, #tpu.memory_space<smem>>
    %503 = vector.extract_strided_slice %5 {offsets = [3, 0, 0], sizes = [1, 1, 16], strides = [1, 1, 1]} : vector<4x1x16xf32> to vector<1x1x16xf32>
    %504 = vector.shape_cast %503 : vector<1x1x16xf32> to vector<1x16xf32>
    %505 = vector.broadcast %502 : f32 to vector<1x16xf32>
    %506 = arith.mulf %505, %504 : vector<1x16xf32>
    %507 = arith.addf %501, %506 : vector<1x16xf32>
    %c5_174 = arith.constant 5 : index
    %c0_175 = arith.constant 0 : index
    %508 = memref.load %arg2[%c5_174, %c0_175] : memref<8x4xf32, #tpu.memory_space<smem>>
    %509 = vector.extract_strided_slice %5 {offsets = [0, 0, 0], sizes = [1, 1, 16], strides = [1, 1, 1]} : vector<4x1x16xf32> to vector<1x1x16xf32>
    %510 = vector.shape_cast %509 : vector<1x1x16xf32> to vector<1x16xf32>
    %511 = vector.broadcast %508 : f32 to vector<1x16xf32>
    %512 = arith.mulf %511, %510 : vector<1x16xf32>
    %c5_176 = arith.constant 5 : index
    %c1_177 = arith.constant 1 : index
    %513 = memref.load %arg2[%c5_176, %c1_177] : memref<8x4xf32, #tpu.memory_space<smem>>
    %514 = vector.extract_strided_slice %5 {offsets = [1, 0, 0], sizes = [1, 1, 16], strides = [1, 1, 1]} : vector<4x1x16xf32> to vector<1x1x16xf32>
    %515 = vector.shape_cast %514 : vector<1x1x16xf32> to vector<1x16xf32>
    %516 = vector.broadcast %513 : f32 to vector<1x16xf32>
    %517 = arith.mulf %516, %515 : vector<1x16xf32>
    %518 = arith.addf %512, %517 : vector<1x16xf32>
    %c5_178 = arith.constant 5 : index
    %c2_179 = arith.constant 2 : index
    %519 = memref.load %arg2[%c5_178, %c2_179] : memref<8x4xf32, #tpu.memory_space<smem>>
    %520 = vector.extract_strided_slice %5 {offsets = [2, 0, 0], sizes = [1, 1, 16], strides = [1, 1, 1]} : vector<4x1x16xf32> to vector<1x1x16xf32>
    %521 = vector.shape_cast %520 : vector<1x1x16xf32> to vector<1x16xf32>
    %522 = vector.broadcast %519 : f32 to vector<1x16xf32>
    %523 = arith.mulf %522, %521 : vector<1x16xf32>
    %524 = arith.addf %518, %523 : vector<1x16xf32>
    %c5_180 = arith.constant 5 : index
    %c3_181 = arith.constant 3 : index
    %525 = memref.load %arg2[%c5_180, %c3_181] : memref<8x4xf32, #tpu.memory_space<smem>>
    %526 = vector.extract_strided_slice %5 {offsets = [3, 0, 0], sizes = [1, 1, 16], strides = [1, 1, 1]} : vector<4x1x16xf32> to vector<1x1x16xf32>
    %527 = vector.shape_cast %526 : vector<1x1x16xf32> to vector<1x16xf32>
    %528 = vector.broadcast %525 : f32 to vector<1x16xf32>
    %529 = arith.mulf %528, %527 : vector<1x16xf32>
    %530 = arith.addf %524, %529 : vector<1x16xf32>
    %c6_182 = arith.constant 6 : index
    %c0_183 = arith.constant 0 : index
    %531 = memref.load %arg2[%c6_182, %c0_183] : memref<8x4xf32, #tpu.memory_space<smem>>
    %532 = vector.extract_strided_slice %5 {offsets = [0, 0, 0], sizes = [1, 1, 16], strides = [1, 1, 1]} : vector<4x1x16xf32> to vector<1x1x16xf32>
    %533 = vector.shape_cast %532 : vector<1x1x16xf32> to vector<1x16xf32>
    %534 = vector.broadcast %531 : f32 to vector<1x16xf32>
    %535 = arith.mulf %534, %533 : vector<1x16xf32>
    %c6_184 = arith.constant 6 : index
    %c1_185 = arith.constant 1 : index
    %536 = memref.load %arg2[%c6_184, %c1_185] : memref<8x4xf32, #tpu.memory_space<smem>>
    %537 = vector.extract_strided_slice %5 {offsets = [1, 0, 0], sizes = [1, 1, 16], strides = [1, 1, 1]} : vector<4x1x16xf32> to vector<1x1x16xf32>
    %538 = vector.shape_cast %537 : vector<1x1x16xf32> to vector<1x16xf32>
    %539 = vector.broadcast %536 : f32 to vector<1x16xf32>
    %540 = arith.mulf %539, %538 : vector<1x16xf32>
    %541 = arith.addf %535, %540 : vector<1x16xf32>
    %c6_186 = arith.constant 6 : index
    %c2_187 = arith.constant 2 : index
    %542 = memref.load %arg2[%c6_186, %c2_187] : memref<8x4xf32, #tpu.memory_space<smem>>
    %543 = vector.extract_strided_slice %5 {offsets = [2, 0, 0], sizes = [1, 1, 16], strides = [1, 1, 1]} : vector<4x1x16xf32> to vector<1x1x16xf32>
    %544 = vector.shape_cast %543 : vector<1x1x16xf32> to vector<1x16xf32>
    %545 = vector.broadcast %542 : f32 to vector<1x16xf32>
    %546 = arith.mulf %545, %544 : vector<1x16xf32>
    %547 = arith.addf %541, %546 : vector<1x16xf32>
    %c6_188 = arith.constant 6 : index
    %c3_189 = arith.constant 3 : index
    %548 = memref.load %arg2[%c6_188, %c3_189] : memref<8x4xf32, #tpu.memory_space<smem>>
    %549 = vector.extract_strided_slice %5 {offsets = [3, 0, 0], sizes = [1, 1, 16], strides = [1, 1, 1]} : vector<4x1x16xf32> to vector<1x1x16xf32>
    %550 = vector.shape_cast %549 : vector<1x1x16xf32> to vector<1x16xf32>
    %551 = vector.broadcast %548 : f32 to vector<1x16xf32>
    %552 = arith.mulf %551, %550 : vector<1x16xf32>
    %553 = arith.addf %547, %552 : vector<1x16xf32>
    %c7_190 = arith.constant 7 : index
    %c0_191 = arith.constant 0 : index
    %554 = memref.load %arg2[%c7_190, %c0_191] : memref<8x4xf32, #tpu.memory_space<smem>>
    %555 = vector.extract_strided_slice %5 {offsets = [0, 0, 0], sizes = [1, 1, 16], strides = [1, 1, 1]} : vector<4x1x16xf32> to vector<1x1x16xf32>
    %556 = vector.shape_cast %555 : vector<1x1x16xf32> to vector<1x16xf32>
    %557 = vector.broadcast %554 : f32 to vector<1x16xf32>
    %558 = arith.mulf %557, %556 : vector<1x16xf32>
    %c7_192 = arith.constant 7 : index
    %c1_193 = arith.constant 1 : index
    %559 = memref.load %arg2[%c7_192, %c1_193] : memref<8x4xf32, #tpu.memory_space<smem>>
    %560 = vector.extract_strided_slice %5 {offsets = [1, 0, 0], sizes = [1, 1, 16], strides = [1, 1, 1]} : vector<4x1x16xf32> to vector<1x1x16xf32>
    %561 = vector.shape_cast %560 : vector<1x1x16xf32> to vector<1x16xf32>
    %562 = vector.broadcast %559 : f32 to vector<1x16xf32>
    %563 = arith.mulf %562, %561 : vector<1x16xf32>
    %564 = arith.addf %558, %563 : vector<1x16xf32>
    %c7_194 = arith.constant 7 : index
    %c2_195 = arith.constant 2 : index
    %565 = memref.load %arg2[%c7_194, %c2_195] : memref<8x4xf32, #tpu.memory_space<smem>>
    %566 = vector.extract_strided_slice %5 {offsets = [2, 0, 0], sizes = [1, 1, 16], strides = [1, 1, 1]} : vector<4x1x16xf32> to vector<1x1x16xf32>
    %567 = vector.shape_cast %566 : vector<1x1x16xf32> to vector<1x16xf32>
    %568 = vector.broadcast %565 : f32 to vector<1x16xf32>
    %569 = arith.mulf %568, %567 : vector<1x16xf32>
    %570 = arith.addf %564, %569 : vector<1x16xf32>
    %c7_196 = arith.constant 7 : index
    %c3_197 = arith.constant 3 : index
    %571 = memref.load %arg2[%c7_196, %c3_197] : memref<8x4xf32, #tpu.memory_space<smem>>
    %572 = vector.extract_strided_slice %5 {offsets = [3, 0, 0], sizes = [1, 1, 16], strides = [1, 1, 1]} : vector<4x1x16xf32> to vector<1x1x16xf32>
    %573 = vector.shape_cast %572 : vector<1x1x16xf32> to vector<1x16xf32>
    %574 = vector.broadcast %571 : f32 to vector<1x16xf32>
    %575 = arith.mulf %574, %573 : vector<1x16xf32>
    %576 = arith.addf %570, %575 : vector<1x16xf32>
    %577 = vector.shape_cast %415 : vector<1x16xf32> to vector<1x1x16xf32>
    %578 = vector.shape_cast %438 : vector<1x16xf32> to vector<1x1x16xf32>
    %579 = vector.shape_cast %461 : vector<1x16xf32> to vector<1x1x16xf32>
    %580 = vector.shape_cast %484 : vector<1x16xf32> to vector<1x1x16xf32>
    %581 = vector.shape_cast %507 : vector<1x16xf32> to vector<1x1x16xf32>
    %582 = vector.shape_cast %530 : vector<1x16xf32> to vector<1x1x16xf32>
    %583 = vector.shape_cast %553 : vector<1x16xf32> to vector<1x1x16xf32>
    %584 = vector.shape_cast %576 : vector<1x16xf32> to vector<1x1x16xf32>
    %585 = tpu.concatenate %577, %578, %579, %580, %581, %582, %583, %584 in 0 : vector<1x1x16xf32>, vector<1x1x16xf32>, vector<1x1x16xf32>, vector<1x1x16xf32>, vector<1x1x16xf32>, vector<1x1x16xf32>, vector<1x1x16xf32>, vector<1x1x16xf32> -> vector<8x1x16xf32>
    %586 = vector.shape_cast %585 : vector<8x1x16xf32> to vector<8x16xf32>
    %c0_198 = arith.constant 0 : index
    %c0_199 = arith.constant 0 : index
    %587 = vector.load %arg3[%c0_198, %c0_199] : memref<16x32xf32, #tpu.memory_space<vmem>>, vector<16x32xf32>
    %588 = vector.shape_cast %198 : vector<8x8x16xf32> to vector<64x16xf32>
    %cst = arith.constant dense<0.000000e+00> : vector<64x32xf32>
    %589 = tpu.matmul %588, %587, %cst {dimension_numbers = #tpu.dot_dimension_numbers<[1], [0], [0], [1], [0, 0, 1, 1], [], []>} : vector<64x16xf32>, vector<16x32xf32>, vector<64x32xf32> -> vector<64x32xf32>
    %590 = vector.shape_cast %589 : vector<64x32xf32> to vector<8x8x32xf32>
    %cst_200 = arith.constant dense<0.000000e+00> : vector<8x32xf32>
    %591 = tpu.matmul %392, %587, %cst_200 {dimension_numbers = #tpu.dot_dimension_numbers<[1], [0], [0], [1], [0, 0, 1, 1], [], []>} : vector<8x16xf32>, vector<16x32xf32>, vector<8x32xf32> -> vector<8x32xf32>
    %592 = vector.shape_cast %591 : vector<8x32xf32> to vector<8x1x32xf32>
    %cst_201 = arith.constant dense<0.000000e+00> : vector<8x32xf32>
    %593 = tpu.matmul %586, %587, %cst_201 {dimension_numbers = #tpu.dot_dimension_numbers<[1], [0], [0], [1], [0, 0, 1, 1], [], []>} : vector<8x16xf32>, vector<16x32xf32>, vector<8x32xf32> -> vector<8x32xf32>
    %594 = vector.shape_cast %593 : vector<8x32xf32> to vector<8x1x32xf32>
    %595 = vector.extract_strided_slice %590 {offsets = [0, 0, 0], sizes = [8, 7, 32], strides = [1, 1, 1]} : vector<8x8x32xf32> to vector<8x7x32xf32>
    %596 = tpu.concatenate %592, %595 in 1 : vector<8x1x32xf32>, vector<8x7x32xf32> -> vector<8x8x32xf32>
    %597 = vector.extract_strided_slice %590 {offsets = [0, 1, 0], sizes = [8, 7, 32], strides = [1, 1, 1]} : vector<8x8x32xf32> to vector<8x7x32xf32>
    %598 = tpu.concatenate %597, %594 in 1 : vector<8x7x32xf32>, vector<8x1x32xf32> -> vector<8x8x32xf32>
    %cst_202 = arith.constant 7.500000e-01 : f32
    %599 = vector.broadcast %cst_202 : f32 to vector<8x8x32xf32>
    %600 = arith.mulf %599, %590 : vector<8x8x32xf32>
    %cst_203 = arith.constant 2.500000e-01 : f32
    %601 = vector.broadcast %cst_203 : f32 to vector<8x8x32xf32>
    %602 = arith.mulf %601, %596 : vector<8x8x32xf32>
    %603 = arith.addf %600, %602 : vector<8x8x32xf32>
    %cst_204 = arith.constant 7.500000e-01 : f32
    %604 = vector.broadcast %cst_204 : f32 to vector<8x8x32xf32>
    %605 = arith.mulf %604, %590 : vector<8x8x32xf32>
    %cst_205 = arith.constant 2.500000e-01 : f32
    %606 = vector.broadcast %cst_205 : f32 to vector<8x8x32xf32>
    %607 = arith.mulf %606, %598 : vector<8x8x32xf32>
    %608 = arith.addf %605, %607 : vector<8x8x32xf32>
    %609 = vector.shape_cast %603 : vector<8x8x32xf32> to vector<8x8x1x32xf32>
    %610 = vector.shape_cast %608 : vector<8x8x32xf32> to vector<8x8x1x32xf32>
    %611 = tpu.concatenate %609, %610 in 2 : vector<8x8x1x32xf32>, vector<8x8x1x32xf32> -> vector<8x8x2x32xf32>
    %612 = vector.shape_cast %611 : vector<8x8x2x32xf32> to vector<8x16x32xf32>
    %c0_206 = arith.constant 0 : index
    %c0_207 = arith.constant 0 : index
    %c0_208 = arith.constant 0 : index
    %c0_209 = arith.constant 0 : index
    %613 = vector.load %arg7[%c0_206, %c0_207, %c0_208, %c0_209] : memref<1x8x16x32xf32, #tpu.memory_space<vmem>>, vector<1x8x16x32xf32>
    %614 = vector.shape_cast %613 : vector<1x8x16x32xf32> to vector<8x16x32xf32>
    %615 = arith.addf %612, %614 : vector<8x16x32xf32>
    %c0_210 = arith.constant 0 : index
    %c0_211 = arith.constant 0 : index
    %c0_212 = arith.constant 0 : index
    %c0_213 = arith.constant 0 : index
    %616 = vector.load %arg8[%c0_210, %c0_211, %c0_212, %c0_213] : memref<1x8x16x32xf32, #tpu.memory_space<vmem>>, vector<1x8x16x32xf32>
    %617 = vector.shape_cast %616 : vector<1x8x16x32xf32> to vector<8x16x32xf32>
    %618 = vector.shape_cast %615 : vector<8x16x32xf32> to vector<1x8x16x32xf32>
    tpu.vector_store %arg8[%c0_210, %c0_211, %c0_212, %c0_213], %618 {strides = array<i32>} : memref<1x8x16x32xf32, #tpu.memory_space<vmem>>, vector<1x8x16x32xf32>,
    return
  }
  func.func @transform_0(%arg0: i32, %arg1: i32) -> (i32, i32) {
    %c0_i32 = arith.constant 0 : i32
    %c0_i32_0 = arith.constant 0 : i32
    %c0_i32_1 = arith.constant 0 : i32
    return %c0_i32, %c0_i32_0 : i32, i32
  }
  func.func @transform_1(%arg0: i32, %arg1: i32) -> (i32, i32) {
    %c0_i32 = arith.constant 0 : i32
    %c0_i32_0 = arith.constant 0 : i32
    %c0_i32_1 = arith.constant 0 : i32
    return %c0_i32, %c0_i32_0 : i32, i32
  }
  func.func @transform_2(%arg0: i32, %arg1: i32) -> (i32, i32, i32, i32) {
    %c0_i32 = arith.constant 0 : i32
    %c0_i32_0 = arith.constant 0 : i32
    %c0_i32_1 = arith.constant 0 : i32
    return %arg0, %c0_i32, %arg1, %c0_i32_0 : i32, i32, i32, i32
  }
  func.func @transform_3(%arg0: i32, %arg1: i32) -> (i32, i32, i32, i32, i32) {
    %c0_i32 = arith.constant 0 : i32
    %c0_i32_0 = arith.constant 0 : i32
    %c0_i32_1 = arith.constant 0 : i32
    %c0_i32_2 = arith.constant 0 : i32
    return %arg0, %arg1, %c0_i32, %c0_i32_0, %c0_i32_1 : i32, i32, i32, i32, i32
  }
  func.func @transform_4(%arg0: i32, %arg1: i32) -> (i32, i32, i32, i32, i32) {
    %c0_i32 = arith.constant 0 : i32
    %c0_i32_0 = arith.constant 0 : i32
    %c0_i32_1 = arith.constant 0 : i32
    %c0_i32_2 = arith.constant 0 : i32
    return %arg0, %arg1, %c0_i32, %c0_i32_0, %c0_i32_1 : i32, i32, i32, i32, i32
  }
  func.func @transform_5(%arg0: i32, %arg1: i32) -> (i32, i32, i32, i32) {
    %c0_i32 = arith.constant 0 : i32
    %c0_i32_0 = arith.constant 0 : i32
    %c0_i32_1 = arith.constant 0 : i32
    return %arg0, %c0_i32, %arg1, %c0_i32_0 : i32, i32, i32, i32
  }
  func.func @transform_6(%arg0: i32, %arg1: i32) -> (i32, i32, i32, i32) {
    %c0_i32 = arith.constant 0 : i32
    %c0_i32_0 = arith.constant 0 : i32
    %c0_i32_1 = arith.constant 0 : i32
    return %arg0, %c0_i32, %arg1, %c0_i32_0 : i32, i32, i32, i32
  }
}

</mosaic_0001>

<bundles_post_ra>
// kernel: skip_upsample.1
= control target key start
LH: loop header
LB: loop body
LE: loop exit
PB: predicated region body
PF: predicated region fallthrough
CT: control target
= control target key end

     0   :  { %s6342_s0 = inlined_call_operand.vmem [shape: f32[8,4], index: 0, kind: input, shape index: {}]   ;;  %s6343_s1 = inlined_call_operand.vmem [shape: f32[16,32], index: 1, kind: input, shape index: {}]   ;;  %s6344_s2 = inlined_call_operand.vmem [shape: f32[2,4,16,16], index: 2, kind: input, shape index: {}]   ;;  %s6345_s3 = inlined_call_operand.vmem [shape: f32[2,2,4,1,16], index: 3, kind: input, shape index: {}]   ;;  %s6346_s4 = inlined_call_operand.vmem [shape: f32[2,2,4,1,16], index: 4, kind: input, shape index: {}]   ;;  %s6347_s5 = inlined_call_operand.hbm [shape: f32[2,8,32,32], index: 5, kind: input, shape index: {}]   ;;  %s6348_s6 = inlined_call_operand.hbm [shape: f32[2,8,32,32], index: 6, kind: output, shape index: {}]  }
   0x1   :  { %6469 = sst [smem:[#allocation94_spill]] %s6342_s0 }
   0x2   :  { %6470 = sst [smem:[#allocation95_spill]] %s6344_s2 }
   0x3   :  { %11 = vsyncpa [#allocation5], 0 }
   0x4   :  { %12 = vsyncpa [#allocation3], 0 }
   0x5   :  { %14 = vsyncpa [#allocation3 + $0x1], 0 }
   0x6   :  { %15 = vsyncpa [#allocation4], 0 }
   0x7   :  { %17 = vsyncpa [#allocation4 + $0x1], 0  ;;  %s3997_s21 = smov 0   ;;  %s3999_s22 = smov 0  }
   0x8   :  { %s4001_s23 = smov 0   ;;  %s4003_s24 = smov 0  }
   0x9   :  { %s4005_s25 = smov 0   ;;  %s4007_s26 = smov 0  }
   0xa   :  { %s4009_s27 = smov 0   ;;  %s4011_s28 = smov 0  }
   0xb LB: > { %6471 = sst [smem:[#allocation17_spill]] %s3933_s26  ;;  %s3593_s29 = sadd.s32 4294967295, %s3941_s28   ;;  %s3941_s28 = sphi %s4011_s28, %s23_s28   ;;  %s3937_s27 = sphi %s4009_s27, %s6811_s27   ;;  %s3933_s26 = sphi %s4007_s26, %s6810_s26   ;;  %s3929_s25 = sphi %s4005_s25, %s6809_s25   ;;  %s3925_s24 = sphi %s4003_s24, %s6808_s24   ;;  %s3921_s23 = sphi %s4001_s23, %s6814_s23   ;;  %s3917_s22 = sphi %s3999_s22, %s6813_s22   ;;  %s3913_s21 = sphi %s3997_s21, %s6812_s21  }
   0xc   : > { %6472 = sst [smem:[#allocation18_spill]] %s3937_s27  ;;  %s3594_s30 = sadd.s32 4294967294, %s3941_s28  }
   0xd   : > { %s32_s7 = sadd.s32 1, %s3933_s26  ;;  %s35_s8 = sadd.s32 1, %s3937_s27 }
   0xe   : > { %p33_p0 = scmp.ge.s32.totalorder %s32_s7, 2  ;;  %s86_s9 = sadd.s32 1, %s3921_s23 }
   0xf   : > { %p93_p1 = scmp.ne.s32.totalorder %s3921_s23, %s3917_s22  ;;  %p94_p2 = scmp.eq.s32.totalorder %s3941_s28, 0 }
  0x10   : > { %s6816_s7 = smov (%p33_p0, %s32_s7), 0  ;;  %s6818_s8 = smov (!%p33_p0, %s35_s8), %s3937_s27 }
  0x11   : > { %6473 = sst [smem:[#allocation19_spill]] %s6816_s7  ;;  %s82_s10 = ssub.s32 %s3933_s26, %s6816_s7 }
  0x12   : > { %p4050_p3 = por %p94_p2, %p93_p1  ;;  %p37_p4 = scmp.ge.s32.totalorder %s6818_s8, 2 }
  0x13   : > { %p183_p5 = scmp.ne.s32.totalorder %s3917_s22, %s3913_s21  ;;  %p4056_p6 = scmp.eq.s32.totalorder %s3593_s29, 0 }
  0x14   : > { %p209_p7 = scmp.eq.s32.totalorder %s3593_s29, 3  ;;  %s6820_s8 = smov (%p37_p4, %s6818_s8), 0 }
  0x15   : > { %6476 = sst [smem:[#allocation20_spill]] %s6820_s8  ;;  %p4064_p8 = por %p4056_p6, %p183_p5 }
  0x16   : > { %p4068_p9 = por %p209_p7, %p93_p1  ;;  %s81_s15 = ssub.s32 %s3937_s27, %s6820_s8 }
  0x17   : > { %s6477_s13 = scalar_select %p4064_p8, 1, 0 }
  0x18   : > { %s6478_s14 = scalar_select %p4068_p9, 1, 0 }
  0x19   : > { %p215_p10 = scmp.eq.s32.totalorder %s3594_s30, 3  ;;  %s83_s16 = sor.u32 %s82_s10, %s81_s15 }
  0x1a   : > { %p3595_p11 = scmp.ge.s32.totalorder %s3941_s28, 1  ;;  %p84_p12 = scmp.eq.s32.totalorder %s83_s16, 0 }
  0x1b   : > { %p4075_p13 = por %p215_p10, %p183_p5  ;;  %p222_p0 = scmp.lt.s32.totalorder %s3941_s28, 5 }
  0x1c   : > { %s4081_s18 = scalar_select %p84_p12, %s3921_s23, %s86_s9  }
  0x1d   : > { %s6479_s17 = scalar_select %p4075_p13, 1, 0 }
  0x1e   : > { %6480 = sst [smem:[#allocation21_spill]] %s4081_s18  ;;  %p4083_p2 = pnand %p3595_p11, %p222_p0 }
  0x1f   : > { %s6482_s0 = sld [smem:[#allocation94_spill]] }
  0x20   : > { %p3742_p1 = pneg %p4083_p2 }
  0x22   : > { %p3743_p4 = pnand %p3742_p1, %p4056_p6 }
  0x24   : > { %p3854_p7 = pneg %p3743_p4 }
  0x25   : > { %s235_s8 = sshll.u32 %s6482_s0, 4  ;;  %s236_s8 = int_to_ptr.vmem [resolvable:$true] %s235_s8 }
  0x26   : > { %s3852_s30 = scalar_lea.vmem %s236_s8, 128  ;;  %p3860_p13 = scmp.lt.s32.totalorder %s236_s8, %s236_s8 }
  0x27   : > { %p3853_p5 = scmp.ne.s32.totalorder %s236_s8, %s3852_s30  ;;  %p3861_p11 = scmp.lt.s32.totalorder %s3852_s30, %s3852_s30 }
  0x29   : > { %p3855_p10 = pnand %p3854_p7, %p3853_p5  ;;  %p3862_p0 = por %p3861_p11, %p3860_p13 }
  0x2b   : > { %p3856_p12 = pneg %p3855_p10 }
  0x2d   : > { %p3863_p9 = pnand %p3862_p0, %p3856_p12 }
  0x2f   : > { %3866 = shalt.err (!%p3863_p9)
}
  0x30   : > { %s3943_s9 = smov [#allocation2]   ;;  %p3597_p8 = scmp.ge.s32.totalorder %s3941_s28, 4 }
  0x31   : > { %3745 = dma.vmem_to_smem (!%p3743_p4), %s236_s8, 128, %s3943_s9, [#allocation5]  }
  0x32   : > { %245 = sbr.rel (%p3597_p8) target bundleno = 85 (0x55), region = 24 }
  0x39   : > { %248 = sbr.rel (!%p4050_p3) target bundleno = 69 (0x45), region = 28  ;;  %s250_s10 = sand.u32 (%p4050_p3), 1, %s3921_s23  }
  0x3a   : > { %s3599_s15 = sshll.u32 (%p4050_p3), %s3937_s27, 3  ;;  %s3598_s16 = sshll.u32 (%p4050_p3), %s250_s10, 5 }
  0x3b   : > { %s254_s20 = sadd.s32 (%p4050_p3), %s3933_s26, %s3599_s15  ;;  %s6483_s2 = sld [smem:[#allocation95_spill]] (%p4050_p3) }
  0x3c   : > { %s3600_s29 = sshll.u32 (%p4050_p3), %s254_s20, 3  ;;  %s252_s8 = scalar_lea.vmem (%p4050_p3), [#allocation6], %s3598_s16 }
  0x41   : > { %s256_s7 = scalar_lea.vmem %s6483_s2, %s3600_s29 }
  0x42   : > { %v290_v0 = vld [vmem:[%s256_s7] sm:$0xff]  ;;  %v292_v1 = vld [vmem:[%s256_s7 + $0x10] sm:$0xff] }
  0x43   : > { %v294_v2 = vld [vmem:[%s256_s7 + $0x20] sm:$0xff]  ;;  %291 = vst [vmem:[%s252_s8] sm:$0xff] %v290_v0  ;;  %293 = vst [vmem:[%s252_s8 + $0x8] sm:$0xff] %v292_v1  ;;  %v296_v3 = vld [vmem:[%s256_s7 + $0x30] sm:$0xff] }
  0x44   : > { %295 = vst [vmem:[%s252_s8 + $0x10] sm:$0xff] %v294_v2  ;;  %297 = vst [vmem:[%s252_s8 + $0x18] sm:$0xff] %v296_v3 }
  0x45 PF: > { %s326_s9 = sand.u32 1, %s3921_s23   ;;  %s3602_s0 = sshll.u32 %s3933_s26, 1 }
  0x46   : > { %s3601_s10 = sshll.u32 %s326_s9, 7  ;;  %s3603_s15 = sshll.u32 %s3937_s27, 5 }
  0x47   : > { %s336_s20 = sadd.s32 %s3603_s15, %s3602_s0  ;;  %s330_s16 = scalar_lea.vmem [#allocation7], %s3601_s10 }
  0x48   : > { %s351_s29 = sshll.u32 %s330_s16, 4  ;;  %s3604_s7 = sshll.u32 %s336_s20, 7  ;;  %s352_s29 = int_to_ptr.vmem [resolvable:$true] %s351_s29 }
  0x49   : > { %s3723_s30 = scalar_select %p4050_p3, [#allocation0], [#allocation13] }
  0x4a   : > { %s3944_s8 = smov 512   ;;  %s3945_s18 = smov 256  }
  0x4b   : > { %3724 = sst [smem:[#allocation10]] (%p4050_p3), %s3944_s8  ;;  %s3946_s26 = smov 2  }
  0x4c   : > { %s343_s2 = sld [smem:[%s3723_s30]]   ;;  %s3947_s0 = smov 128  }
  0x4d   : > { %3725 = sst [smem:[#allocation10 + $0x1]] (%p4050_p3), %s3945_s18  ;;  %s338_s20 = scalar_lea.hbm %s6347_s5, %s3604_s7 }
  0x4e   : > { %3726 = sst [smem:[#allocation10 + $0x2]] (%p4050_p3), %s3946_s26  ;;  %s3948_s16 = smov 8  }
  0x4f   : > { %3727 = sst [smem:[#allocation10 + $0x3]] (%p4050_p3), %s3947_s0  ;;  %s327_s27 = scalar_lea.sflag [#allocation3], %s326_s9 }
  0x50   : > { %3728 = sst [smem:[#allocation10 + $0x4]] (%p4050_p3), %s3947_s0  ;;  %s3949_s18 = smov [#allocation9]  }
  0x51   : > { %3729 = sst [smem:[#allocation10 + $0x5]] (%p4050_p3), %s3948_s16 }
  0x52   : > { %s3605_s30 = sshll.u32 %s343_s2, 26 }
  0x53   : > { %s3606_s8 = sadd.s32 134217728, %s3605_s30 }
  0x54   : > { %3730 = dma.general (%p4050_p3), %s338_s20, 2048, %s352_s29, %s327_s27, %s3949_s18, [#allocation10], %s3606_s8, 0  }
  0x55 PF: > { %376 = sbr.rel (%p4083_p2) target bundleno = 562 (0x232), region = 78 }
  0x5c   : > { %3900 = dma.done.wait (%p4056_p6), [#allocation5], 128  }
  0x5d   : > { %3902 = vsyncadd (%p4056_p6), [#allocation5], 4294967168  ;;  %s4132_s26 = sand.u32 1, %s3917_s22   ;;  %p6484_p3 = scmp.ne.s32.totalorder %s6477_s13, 0 }
  0x5e   : > { %s3609_s2 = sshll.u32 %s4132_s26, 5  ;;  %s6355_s27 = sshll.u32 %s4132_s26, 7 }
  0x5f   : > { %s4136_s11 = scalar_lea.vmem [#allocation6], %s3609_s2  ;;  %s390_s19 = scalar_lea.sflag [#allocation3], %s4132_s26 }
  0x60   : > { %s4141_s9 = scalar_lea.vmem [#allocation7], %s6355_s27 }
  0x61   : > { %3904 = dma.done.wait (%p6484_p3), %s390_s19, 2048  }
  0x62   : > { %3906 = vsyncadd (%p6484_p3), %s390_s19, 4294965248 }
  0x63   : > { %398 = sfence }
  0x64   : > { %v705_v4 = vld [vmem:[%s6343_s1] sm:$0xff]  ;;  %v706_v5 = vld [vmem:[%s6343_s1 + $0x8] sm:$0xff]  ;;  %p443_p6 = scmp.lt.s32.totalorder %s3929_s25, 1  ;;  %p445_p8 = scmp.lt.s32.totalorder %s3925_s24, 1  ;;  %v3950_v7 = vmov 0.0|0.0   ;;  %v4179_v11 = vld [vmem:[%s4136_s11 + $0x10] sm:$0xff]  ;;  %v852_v25 = vlaneseq }
  0x65   : > { %v4155_v6 = vpack.c.bf16 %v706_v5, %v705_v4  ;;  %s473_s13 = sld [smem:[#allocation2]]  ;;  %s3616_s16 = sld [smem:[#allocation2 + $0x1]]  ;;  %v4165_v8 = vld [vmem:[%s4136_s11] sm:$0xff]  ;;  %v4176_v9 = vld [vmem:[%s4136_s11 + $0x8] sm:$0xff]  ;;  %v4196_v19 = vld [vmem:[%s4136_s11 + $0x18] sm:$0xff]  ;;  %vm707_vm0 = vcmask 130048  }
  0x66   : > { %s444_s10 = scalar_select %p443_p6, %s3929_s25, 1  ;;  %v3951_v23 = vmov 1966171168   ;;  %v4220_v41 = vshrl.u32 %v852_v25, 7  ;;  %vm3952_vm1 = vmmov 0   ;;  %vm1227_vm2 = vcmask 1040384  }
  0x67   : > { %3710 = vmatprep.subr.bf16.mxu0 %v4155_v6  ;;  %3719 = vmatprep.subr.bf16.mxu1 %v4155_v6  ;;  %s446_s15 = scalar_select %p445_p8, %s3925_s24, 1  ;;  %v850_v24 = vunpack.c.l.s4 %v3951_v23  ;;  %vm1292_vm3 = vcmask 1046528   ;;  %vm3373_vm4 = vcmask 261120  }
  0x68   : > { %3712 = vmatpush3.bf16.msra.mxu0 %v4155_v6  ;;  %3720 = vmatpush3.bf16.msra.mxu1 %v4155_v6  ;;  %s3613_s20 = sshll.u32 %s444_s10, 3  ;;  %s3617_s8 = sld [smem:[#allocation2 + $0x2]] }
  0x69   : > { %s3612_s30 = sshll.u32 %s446_s15, 2  ;;  %3713 = vmatprep.subr.bf16.mxu1 %v3950_v7  ;;  %s3618_s2 = sld [smem:[#allocation2 + $0x3]]  ;;  %v851_v40 = vunpack.c.0.s8 %v850_v24 }
  0x6a   : > { %s449_s18 = sadd.s32 %s3613_s20, %s3612_s30  ;;  %s3640_s11 = sld [smem:[#allocation2 + $0x301]] }
  0x6b   : > { %s450_s29 = scalar_lea.vmem %s6345_s3, %s449_s18  ;;  %s4173_s27 = scalar_lea.vmem %s6346_s4, %s449_s18  ;;  %v474_v10 = vstv %s473_s13  ;;  %v477_v21 = vstv %s3616_s16  ;;  %v4232_v54 = vsub.s32 %v851_v40, %v4220_v41 }
  0x6c   : > { %v4181_v12 = vld [vmem:[%s450_s29] sm:$0x1]  ;;  %v4183_v13 = vld [vmem:[%s450_s29 + $0x1] sm:$0x1]  ;;  %v4185_v14 = vld [vmem:[%s450_s29 + $0x2] sm:$0x1]  ;;  %v475_v17 = vmul.f32 %v474_v10, %v4165_v8  ;;  %v478_v26 = vmul.f32 %v477_v21, %v4176_v9 }
  0x6d   : > { %v4188_v15 = vld [vmem:[%s4173_s27] sm:$0x1]  ;;  %v4191_v16 = vld [vmem:[%s4173_s27 + $0x1] sm:$0x1]  ;;  %v593_v18 = vmul.f32 %v474_v10, %v4181_v12  ;;  %v4199_v20 = vld [vmem:[%s4173_s27 + $0x2] sm:$0x1]  ;;  %v594_v28 = vmul.f32 %v477_v21, %v4183_v13 }
  0x6e   : > { %v649_v22 = vmul.f32 %v474_v10, %v4188_v15  ;;  %s4202_s13 = sld [smem:[#allocation2 + $0x300]]  ;;  %v481_v27 = vstv %s3617_s8  ;;  %v650_v29 = vmul.f32 %v477_v21, %v4191_v16  ;;  %s3641_s10 = sld [smem:[#allocation2 + $0x302]]  ;;  %v4207_v30 = vld [vmem:[%s450_s29 + $0x3] sm:$0x1]  ;;  %v479_v36 = vadd.f32 %v478_v26, %v475_v17 }
  0x6f   : > { %v482_v31 = vmul.f32 %v481_v27, %v4179_v11  ;;  %v485_v32 = vstv %s3618_s2  ;;  %v596_v33 = vmul.f32 %v481_v27, %v4185_v14  ;;  %v652_v34 = vmul.f32 %v481_v27, %v4199_v20  ;;  %s3642_s15 = sld [smem:[#allocation2 + $0x303]]  ;;  %v4213_v35 = vld [vmem:[%s4173_s27 + $0x3] sm:$0x1]  ;;  %s4216_s20 = sld [smem:[#allocation2 + $0x80]] }
  0x70   : > { %v486_v37 = vmul.f32 %v485_v32, %v4196_v19  ;;  %v595_v38 = vadd.f32 %v594_v28, %v593_v18  ;;  %v651_v39 = vadd.f32 %v650_v29, %v649_v22  ;;  %s4218_s16 = sld [smem:[#allocation2 + $0x81]]  ;;  %v598_v44 = vmul.f32 %v485_v32, %v4207_v30  ;;  %s4223_s30 = sld [smem:[#allocation2 + $0x82]] }
  0x71   : > { %v483_v42 = vadd.f32 %v482_v31, %v479_v36  ;;  %v654_v46 = vmul.f32 %v485_v32, %v4213_v35  ;;  %s4227_s27 = sld [smem:[#allocation2 + $0x83]]  ;;  %v567_v50 = vstv %s3640_s11  ;;  %s4244_s8 = sld [smem:[#allocation2 + $0x380]] }
  0x72   : > { %v597_v43 = vadd.f32 %v596_v33, %v595_v38  ;;  %v653_v45 = vadd.f32 %v652_v34, %v651_v39  ;;  %v568_v51 = vmul.f32 %v567_v50, %v4176_v9  ;;  %v636_v58 = vmul.f32 %v567_v50, %v4183_v13  ;;  %s4246_s18 = sld [smem:[#allocation2 + $0x381]]  ;;  %s4254_s2 = sld [smem:[#allocation2 + $0x382]] }
  0x73   : > { %v487_v48 = vadd.f32 %v486_v37, %v483_v42  ;;  %v692_v2 = vmul.f32 %v567_v50, %v4191_v16  ;;  %s4256_s19 = sld [smem:[#allocation2 + $0x383]]  ;;  %s4273_s12 = sld [smem:[#allocation2 + $0x100]] }
  0x74   : > { %v564_v47 = vstv %s4202_s13  ;;  %v571_v52 = vstv %s3641_s10  ;;  %v4234_v55 = vadd.f32 %v598_v44, %v597_v43  ;;  %v4240_v59 = vadd.f32 %v654_v46, %v653_v45  ;;  %s4278_s29 = sld [smem:[#allocation2 + $0x101]]  ;;  %s4280_s7 = sld [smem:[#allocation2 + $0x102]] }
  0x75   : > { %v565_v49 = vmul.f32 %v564_v47, %v4165_v8  ;;  %v575_v53 = vstv %s3642_s15  ;;  %3683 = vmatprep.mubr.msk.f32.mxu0 %vm707_vm0, %v487_v48  ;;  %v572_v56 = vmul.f32 %v571_v52, %v4179_v11  ;;  %v635_v57 = vmul.f32 %v564_v47, %v4181_v12  ;;  %s4284_s0 = sld [smem:[#allocation2 + $0x103]]  ;;  %s4307_s13 = sld [smem:[#allocation2 + $0x180]] }
  0x76   : > { %v576_v61 = vmul.f32 %v575_v53, %v4196_v19  ;;  %v691_v62 = vmul.f32 %v564_v47, %v4188_v15  ;;  %v638_v0 = vmul.f32 %v571_v52, %v4185_v14  ;;  %v640_v1 = vmul.f32 %v575_v53, %v4207_v30  ;;  %s4309_s11 = sld [smem:[#allocation2 + $0x181]]  ;;  %s4313_s10 = sld [smem:[#allocation2 + $0x182]] }
  0x77   : > { %v569_v60 = vadd.f32 %v568_v51, %v565_v49  ;;  %v637_v63 = vadd.f32 %v636_v58, %v635_v57  ;;  %v694_v4 = vmul.f32 %v571_v52, %v4199_v20  ;;  %v489_v5 = vstv %s4216_s20  ;;  %s4318_s15 = sld [smem:[#allocation2 + $0x183]]  ;;  %s4340_s20 = sld [smem:[#allocation2 + $0x200]] }
  0x78   : > { %v492_v10 = vstv %s4218_s16  ;;  %v693_v17 = vadd.f32 %v692_v2, %v691_v62  ;;  %v490_v18 = vmul.f32 %v489_v5, %v4165_v8  ;;  %v496_v22 = vstv %s4223_s30  ;;  %s4342_s16 = sld [smem:[#allocation2 + $0x201]]  ;;  %s4348_s30 = sld [smem:[#allocation2 + $0x202]] }
  0x79   : > { %v573_v3 = vadd.f32 %v572_v56, %v569_v60  ;;  %v493_v21 = vmul.f32 %v492_v10, %v4176_v9  ;;  %v497_v24 = vmul.f32 %v496_v22, %v4179_v11  ;;  %v500_v25 = vstv %s4227_s27  ;;  %s4350_s27 = sld [smem:[#allocation2 + $0x203]] }
  0x7a   : > { %v600_v26 = vmul.f32 %v489_v5, %v4181_v12  ;;  %v639_v27 = vadd.f32 %v638_v0, %v637_v63  ;;  %v696_v28 = vmul.f32 %v575_v53, %v4213_v35  ;;  %v501_v31 = vmul.f32 %v500_v25, %v4196_v19 }
  0x7b   : > { %v577_v23 = vadd.f32 %v576_v61, %v573_v3  ;;  %v494_v29 = vadd.f32 %v493_v21, %v490_v18  ;;  %v695_v32 = vadd.f32 %v694_v4, %v693_v17  ;;  %v601_v33 = vmul.f32 %v492_v10, %v4183_v13 }
  0x7c   : > { %v603_v34 = vmul.f32 %v496_v22, %v4185_v14  ;;  %v656_v36 = vmul.f32 %v489_v5, %v4188_v15  ;;  %v605_v38 = vmul.f32 %v500_v25, %v4207_v30  ;;  %v657_v39 = vmul.f32 %v492_v10, %v4191_v16 }
  0x7d   : > { %3692 = vmatprep.mubr.msk.f32.mxu1 %vm707_vm0, %v577_v23  ;;  %v498_v37 = vadd.f32 %v497_v24, %v494_v29  ;;  %v659_v40 = vmul.f32 %v496_v22, %v4199_v20  ;;  %v602_v42 = vadd.f32 %v601_v33, %v600_v26  ;;  %v661_v43 = vmul.f32 %v500_v25, %v4213_v35 }
  0x7e   : > { %v579_v44 = vstv %s4244_s8  ;;  %v582_v45 = vstv %s4246_s18  ;;  %v658_v47 = vadd.f32 %v657_v39, %v656_v36  ;;  %v586_v51 = vstv %s4254_s2  ;;  %s4356_s8 = sld [smem:[#allocation2 + $0x280]]  ;;  %s4358_s18 = sld [smem:[#allocation2 + $0x281]] }
  0x7f   : > { %v502_v46 = vadd.f32 %v501_v31, %v498_v37  ;;  %v580_v48 = vmul.f32 %v579_v44, %v4165_v8  ;;  %v583_v49 = vmul.f32 %v582_v45, %v4176_v9  ;;  %v604_v50 = vadd.f32 %v603_v34, %v602_v42  ;;  %s4362_s2 = sld [smem:[#allocation2 + $0x282]] }
  0x80   : > { %v590_v52 = vstv %s4256_s19  ;;  %v642_v53 = vmul.f32 %v579_v44, %v4181_v12  ;;  %v660_v56 = vadd.f32 %v659_v40, %v658_v47  ;;  %v587_v58 = vmul.f32 %v586_v51, %v4179_v11  ;;  %s4364_s19 = sld [smem:[#allocation2 + $0x283]] }
  0x81   : > { %3684 = vmatmul.mubr.msk.f32.vlgmr.msra.gmra.mrb[0].mxu0 %vm707_vm0, %v502_v46  ;;  %v584_v57 = vadd.f32 %v583_v49, %v580_v48  ;;  %v591_v60 = vmul.f32 %v590_v52, %v4196_v19  ;;  %v4292_v61 = vadd.f32 %v640_v1, %v639_v27  ;;  %v4294_v62 = vadd.f32 %v605_v38, %v604_v50 }
  0x82   : > { %v643_v63 = vmul.f32 %v582_v45, %v4183_v13  ;;  %v645_v0 = vmul.f32 %v586_v51, %v4185_v14  ;;  %v4298_v2 = vadd.f32 %v696_v28, %v695_v32  ;;  %v698_v4 = vmul.f32 %v579_v44, %v4188_v15 }
  0x83   : > { %v588_v3 = vadd.f32 %v587_v58, %v584_v57  ;;  %v699_v5 = vmul.f32 %v582_v45, %v4191_v16  ;;  %v4302_v10 = vadd.f32 %v661_v43, %v660_v56  ;;  %v845_v1 = vcombine.low %v4234_v55, %v4294_v62 }
  0x84   : > { %v644_v17 = vadd.f32 %v643_v63, %v642_v53  ;;  %v647_v18 = vmul.f32 %v590_v52, %v4207_v30  ;;  %v701_v23 = vmul.f32 %v586_v51, %v4199_v20  ;;  %v504_v24 = vstv %s4273_s12 }
  0x85   : > { %v592_v21 = vadd.f32 %v591_v60, %v588_v3  ;;  %v700_v22 = vadd.f32 %v699_v5, %v698_v4  ;;  %v505_v26 = vmul.f32 %v504_v24, %v4165_v8  ;;  %v507_v27 = vstv %s4278_s29  ;;  %s3391_s29 = scalar_lea.sflag [#allocation4], %s4132_s26 }
  0x86   : > { %v646_v25 = vadd.f32 %v645_v0, %v644_v17  ;;  %v511_v28 = vstv %s4280_s7  ;;  %v4321_v29 = vmul.f32 %v590_v52, %v4213_v35  ;;  %v508_v31 = vmul.f32 %v507_v27, %v4176_v9 }
  0x87   : > { %3693 = vmatmul.mubr.msk.f32.vlgmr.msra.gmra.mrb[0].mxu1 %vm707_vm0, %v592_v21  ;;  %v512_v32 = vmul.f32 %v511_v28, %v4179_v11  ;;  %v515_v33 = vstv %s4284_s0  ;;  %v1032_v34 = vcombine.low %v4240_v59, %v4302_v10  ;;  %v607_v37 = vmul.f32 %v504_v24, %v4181_v12 }
  0x88   : > { %v4329_v36 = vadd.f32 %v647_v18, %v646_v25  ;;  %3715 = vmatpush3.bf16.msra.mxu1 %v4155_v6  ;;  %v608_v38 = vmul.f32 %v507_v27, %v4183_v13  ;;  %v4334_v39 = vadd.f32 %v701_v23, %v700_v22  ;;  %v509_v40 = vadd.f32 %v508_v31, %v505_v26 }
  0x89   : > { %v516_v42 = vmul.f32 %v515_v33, %v4196_v19  ;;  %v610_v43 = vmul.f32 %v511_v28, %v4185_v14  ;;  %v3953_v44 = vmov 0.0   ;;  %v612_v46 = vmul.f32 %v515_v33, %v4207_v30  ;;  %3716 = vmatprep.subr.bf16.mxu1 %v3950_v7 }
  0x8a   : > { %3699 = vmatprep.mubr.msk.f32.mxu1 %vm3952_vm1, %v3953_v44  ;;  %v609_v45 = vadd.f32 %v608_v38, %v607_v37  ;;  %v663_v47 = vmul.f32 %v504_v24, %v4188_v15  ;;  %v664_v48 = vmul.f32 %v507_v27, %v4191_v16  ;;  %v848_v49 = vcombine.low %v4292_v61, %v4329_v36 }
  0x8b   : > { %v513_v50 = vadd.f32 %v512_v32, %v509_v40  ;;  %v666_v51 = vmul.f32 %v511_v28, %v4199_v20  ;;  %v668_v52 = vmul.f32 %v515_v33, %v4213_v35  ;;  %v519_v56 = vstv %s4307_s13 }
  0x8c   : > { %v611_v53 = vadd.f32 %v610_v43, %v609_v45  ;;  %v665_v7 = vadd.f32 %v664_v48, %v663_v47  ;;  %v522_v57 = vstv %s4309_s11  ;;  %v520_v60 = vmul.f32 %v519_v56, %v4165_v8 }
  0x8d   : > { %v517_v58 = vadd.f32 %v516_v42, %v513_v50  ;;  %v523_v63 = vmul.f32 %v522_v57, %v4176_v9  ;;  %v526_v0 = vstv %s4313_s10  ;;  %v530_v17 = vstv %s4318_s15 }
  0x8e   : > { %v613_v3 = vadd.f32 %v612_v46, %v611_v53  ;;  %v667_v4 = vadd.f32 %v666_v51, %v665_v7  ;;  %v527_v5 = vmul.f32 %v526_v0, %v4179_v11  ;;  %v531_v21 = vmul.f32 %v530_v17, %v4196_v19 }
  0x8f   : > { %3686 = vmatprep.mubr.msk.f32.mxu0 %vm707_vm0, %v517_v58  ;;  %v524_v18 = vadd.f32 %v523_v63, %v520_v60  ;;  %v614_v22 = vmul.f32 %v519_v56, %v4181_v12  ;;  %v615_v23 = vmul.f32 %v522_v57, %v4183_v13  ;;  %v617_v25 = vmul.f32 %v526_v0, %v4185_v14 }
  0x90   : > { %v4375_v24 = vadd.f32 %v668_v52, %v667_v4  ;;  %v619_v26 = vmul.f32 %v530_v17, %v4207_v30  ;;  %v670_v27 = vmul.f32 %v519_v56, %v4188_v15  ;;  %v671_v32 = vmul.f32 %v522_v57, %v4191_v16 }
  0x91   : > { %v528_v28 = vadd.f32 %v527_v5, %v524_v18  ;;  %v616_v31 = vadd.f32 %v615_v23, %v614_v22  ;;  %v673_v33 = vmul.f32 %v526_v0, %v4199_v20  ;;  %v675_v37 = vmul.f32 %v530_v17, %v4213_v35 }
  0x92   : > { %v534_v38 = vstv %s4340_s20  ;;  %v537_v40 = vstv %s4342_s16  ;;  %v541_v42 = vstv %s4348_s30  ;;  %v672_v46 = vadd.f32 %v671_v32, %v670_v27 }
  0x93   : > { %v532_v43 = vadd.f32 %v531_v21, %v528_v28  ;;  %v618_v45 = vadd.f32 %v617_v25, %v616_v31  ;;  %v545_v47 = vstv %s4350_s27  ;;  %v549_v48 = vstv %s4356_s8 }
  0x94   : > { %v552_v50 = vstv %s4358_s18  ;;  %v556_v51 = vstv %s4362_s2  ;;  %v560_v52 = vstv %s4364_s19  ;;  %v674_v7 = vadd.f32 %v673_v33, %v672_v46 }
  0x95   : > { %v620_v53 = vadd.f32 %v619_v26, %v618_v45  ;;  %3687 = vmatmul.mubr.msk.f32.gmra.mrb[2].mxu0 %vm707_vm0, %v532_v43  ;;  %v621_v56 = vmul.f32 %v534_v38, %v4181_v12  ;;  %v622_v57 = vmul.f32 %v537_v40, %v4183_v13  ;;  %v624_v58 = vmul.f32 %v541_v42, %v4185_v14 }
  0x96   : > { %v626_v60 = vmul.f32 %v545_v47, %v4207_v30  ;;  %v628_v63 = vmul.f32 %v549_v48, %v4181_v12  ;;  %v629_v0 = vmul.f32 %v552_v50, %v4183_v13  ;;  %v676_v4 = vadd.f32 %v675_v37, %v674_v7 }
  0x97   : > { %v846_v5 = vcombine.low %v613_v3, %v620_v53  ;;  %v623_v17 = vadd.f32 %v622_v57, %v621_v56  ;;  %v631_v18 = vmul.f32 %v556_v51, %v4185_v14  ;;  %v704_v21 = vadd.f32 %v4321_v29, %v4334_v39 }
  0x98   : > { %v630_v22 = vadd.f32 %v629_v0, %v628_v63  ;;  %v633_v23 = vmul.f32 %v560_v52, %v4207_v30  ;;  %v855_v25 = vrot.slane %v845_v1, %v4232_v54  ;;  %v876_v13 = vrot.slane %v848_v49, %v4232_v54 }
  0x99   : > { %v625_v26 = vadd.f32 %v624_v58, %v623_v17  ;;  %v862_v12 = vrot.slane %v846_v5, %v4232_v54  ;;  %v535_v14 = vmul.f32 %v534_v38, %v4165_v8  ;;  %v1033_v29 = vcombine.low %v4375_v24, %v676_v4 }
  0x9a   : > { %v632_v39 = vadd.f32 %v631_v18, %v630_v22  ;;  %v538_v30 = vmul.f32 %v537_v40, %v4176_v9  ;;  %v542_v3 = vmul.f32 %v541_v42, %v4179_v11  ;;  %v546_v55 = vmul.f32 %v545_v47, %v4196_v19 }
  0x9b   : > { %v627_v27 = vadd.f32 %v626_v60, %v625_v26  ;;  %v550_v62 = vmul.f32 %v549_v48, %v4165_v8  ;;  %v553_v1 = vmul.f32 %v552_v50, %v4176_v9  ;;  %v877_v31 = vcombine.low %v855_v25, %v862_v12  ;;  %v2590_v25 = vld [vmem:[%s4141_s9 + $0x8] sm:$0xff]  ;;  %v2591_v26 = vld [vmem:[%s4141_s9 + $0x10] sm:$0xff]  ;;  %v2592_v12 = vld [vmem:[%s4141_s9 + $0x18] sm:$0xff] }
  0x9c   : > { %v634_v28 = vadd.f32 %v633_v23, %v632_v39  ;;  %v539_v61 = vadd.f32 %v538_v30, %v535_v14  ;;  %v557_v36 = vmul.f32 %v556_v51, %v4179_v11  ;;  %v561_v24 = vmul.f32 %v560_v52, %v4196_v19  ;;  %v2589_v23 = vld [vmem:[%s4141_s9] sm:$0xff] }
  0x9d   : > { %v554_v49 = vadd.f32 %v553_v1, %v550_v62  ;;  %v677_v32 = vmul.f32 %v534_v38, %v4188_v15  ;;  %v678_v33 = vmul.f32 %v537_v40, %v4191_v16  ;;  %v680_v45 = vmul.f32 %v541_v42, %v4199_v20 }
  0x9e   : > { %v847_v37 = vcombine.low %v627_v27, %v634_v28  ;;  %v543_v43 = vadd.f32 %v542_v3, %v539_v61  ;;  %v682_v8 = vmul.f32 %v545_v47, %v4213_v35  ;;  %v684_v53 = vmul.f32 %v549_v48, %v4188_v15  ;;  %v2594_v28 = vld [vmem:[%s4141_s9 + $0x28] sm:$0xff] }
  0x9f   : > { %v558_v46 = vadd.f32 %v557_v36, %v554_v49  ;;  %v679_v9 = vadd.f32 %v678_v33, %v677_v32  ;;  %v685_v7 = vmul.f32 %v552_v50, %v4191_v16  ;;  %v687_v19 = vmul.f32 %v556_v51, %v4199_v20 }
  0xa0   : > { %v869_v11 = vrot.slane %v847_v37, %v4232_v54  ;;  %v547_v56 = vadd.f32 %v546_v55, %v543_v43  ;;  %v689_v58 = vmul.f32 %v560_v52, %v4213_v35  ;;  %v1035_v42 = vcombine.low %v4298_v2, %v704_v21 }
  0xa1   : > { %v562_v38 = vadd.f32 %v561_v24, %v558_v46  ;;  %v681_v57 = vadd.f32 %v680_v45, %v679_v9  ;;  %v686_v40 = vadd.f32 %v685_v7, %v684_v53  ;;  %v885_v47 = vrot.slane %v877_v31, %v4232_v54  ;;  %v2595_v53 = vld [vmem:[%s4141_s9 + $0x30] sm:$0xff] }
  0xa2   : > { %v878_v60 = vcombine.low %v869_v11, %v876_v13  ;;  %3689 = vmatprep.mubr.msk.f32.mxu0 %vm707_vm0, %v547_v56  ;;  %v1042_v20 = vrot.slane %v1032_v34, %v4232_v54  ;;  %v1049_v48 = vrot.slane %v1033_v29, %v4232_v54  ;;  %v1063_v52 = vrot.slane %v1035_v42, %v4232_v54  ;;  %v2593_v13 = vld [vmem:[%s4141_s9 + $0x20] sm:$0xff] }
  0xa3   : > { %3690 = vmatmul.mubr.msk.f32.gmra.mrb[4].mxu0 %vm707_vm0, %v562_v38  ;;  %v683_v15 = vadd.f32 %v682_v8, %v681_v57  ;;  %v688_v16 = vadd.f32 %v687_v19, %v686_v40  ;;  %v3954_v18 = vmov 1983009808   ;;  %v4466_v39 = vsub.s32 0, %v4220_v41  ;;  %v2596_v19 = vld [vmem:[%s4141_s9 + $0x38] sm:$0xff] }
  0xa4   : > { %v892_v35 = vrot.slane %v878_v60, %v4232_v54  ;;  %v1064_v63 = vcombine.low %v1042_v20, %v1049_v48  ;;  %v2623_v21 = vunpack.c.l.s4 %v3954_v18  ;;  %v2621_v30 = vcombine.high %v2589_v23, %v2589_v23  ;;  %v2599_v18 = vld [vmem:[%s4141_s9 + $0x50] sm:$0xff] }
  0xa5   : > { %v690_v50 = vadd.f32 %v689_v58, %v688_v16  ;;  %v2638_v62 = vcombine.high %v2590_v25, %v2590_v25  ;;  %v2655_v31 = vcombine.high %v2591_v26, %v2591_v26  ;;  %v2672_v61 = vcombine.high %v2592_v12, %v2592_v12  ;;  %v2597_v16 = vld [vmem:[%s4141_s9 + $0x40] sm:$0xff] }
  0xa6   : > { %v893_v2 = vcombine.low %v885_v47, %v892_v35  ;;  %v1072_v34 = vrot.slane %v1064_v63, %v4232_v54  ;;  %v2624_v22 = vunpack.c.0.s8 %v2623_v21  ;;  %v2689_v36 = vcombine.high %v2593_v13, %v2593_v13  ;;  %v2600_v21 = vld [vmem:[%s4141_s9 + $0x58] sm:$0xff] }
  0xa7   : > { %v1034_v51 = vcombine.low %v683_v15, %v690_v50  ;;  %v2706_v56 = vcombine.high %v2594_v28, %v2594_v28  ;;  %v2723_v50 = vcombine.high %v2595_v53, %v2595_v53  ;;  %v2740_v63 = vcombine.high %v2596_v19, %v2596_v19  ;;  %v2604_v47 = vld [vmem:[%s4141_s9 + $0x78] sm:$0xff] }
  0xa8   : > { %3700 = vmatmul.mubr.msk.f32.vlgmr.msra.gmra.mrb[2].mxu1 %vm707_vm0, %v893_v2  ;;  %v4462_v14 = vsub.s32 %v2624_v22, %v4220_v41  ;;  %v2876_v22 = vcombine.high %v2604_v47, %v2604_v47 }
  0xa9   : > { %3718 = vmatpush3.bf16.msra.mxu1 %v4155_v6  ;;  %3706 = vmatprep.mubr.msk.f32.mxu1 %vm3952_vm1, %v3953_v44  ;;  %v1056_v59 = vrot.slane %v1034_v51, %v4232_v54  ;;  %v2791_v51 = vcombine.high %v2599_v18, %v2599_v18 }
  0xaa   : > { %6485 = vst [vmem:[#allocation22_spill] sm:$0xff] %v4462_v14  ;;  %v4483_v33 = vrot.slane %v2589_v23, %v4462_v14  ;;  %v4491_v45 = vrot.slane %v2621_v30, %v4462_v14  ;;  %v4494_v8 = vrot.slane %v2590_v25, %v4462_v14  ;;  %v4497_v46 = vrot.slane %v2591_v26, %v4462_v14 }
  0xab   : > { %v1065_v10 = vcombine.low %v1056_v59, %v1063_v52  ;;  %v4502_v7 = vrot.slane %v2638_v62, %v4462_v14  ;;  %v4505_v11 = vrot.slane %v2593_v13, %v4462_v14  ;;  %v4509_v38 = vrot.slane %v2655_v31, %v4462_v14  ;;  %v2598_v59 = vld [vmem:[%s4141_s9 + $0x48] sm:$0xff]  ;;  %v2601_v62 = vld [vmem:[%s4141_s9 + $0x60] sm:$0xff] }
  0xac   : > { %6486 = vst [vmem:[#allocation23_spill] sm:$0xff] %v4483_v33  ;;  %6487 = vst [vmem:[#allocation24_spill] sm:$0xff] %v4491_v45  ;;  %v4512_v57 = vrot.slane %v2592_v12, %v4462_v14  ;;  %v4515_v40 = vrot.slane %v2672_v61, %v4462_v14  ;;  %v4518_v58 = vrot.slane %v2689_v36, %v4462_v14  ;;  %v2602_v61 = vld [vmem:[%s4141_s9 + $0x68] sm:$0xff]  ;;  %v2603_v36 = vld [vmem:[%s4141_s9 + $0x70] sm:$0xff]  ;;  %s6804_s9 = sshll.u32 %s4132_s26, 7 }
  0xad   : > { %v1079_v0 = vrot.slane %v1065_v10, %v4232_v54  ;;  %6488 = vst [vmem:[#allocation25_spill] sm:$0xff] %v4494_v8  ;;  %6489 = vst [vmem:[#allocation26_spill] sm:$0xff] %v4497_v46  ;;  %v4527_v15 = vrot.slane %v2594_v28, %v4462_v14  ;;  %v4541_v52 = vrot.slane %v2706_v56, %v4462_v14  ;;  %s442_s12 = scalar_lea.vmem [#allocation8], %s6804_s9 }
  0xae   : > { %6490 = vst [vmem:[#allocation27_spill] sm:$0xff] %v4502_v7  ;;  %6491 = vst [vmem:[#allocation28_spill] sm:$0xff] %v4505_v11  ;;  %v4557_v23 = vrot.slane %v2595_v53, %v4462_v14  ;;  %v4560_v25 = vrot.slane %v2596_v19, %v4462_v14  ;;  %v2757_v26 = vcombine.high %v2597_v16, %v2597_v16 }
  0xaf   : > { %v1080_v4 = vcombine.low %v1072_v34, %v1079_v0  ;;  %6492 = vst [vmem:[#allocation29_spill] sm:$0xff] %v4509_v38  ;;  %6493 = vst [vmem:[#allocation30_spill] sm:$0xff] %v4512_v57  ;;  %v4569_v28 = vrot.slane %v2723_v50, %v4462_v14  ;;  %v4577_v56 = vrot.slane %v2740_v63, %v4462_v14 }
  0xb0   : > { %6494 = vst [vmem:[#allocation31_spill] sm:$0xff] %v4515_v40  ;;  %6495 = vst [vmem:[#allocation32_spill] sm:$0xff] %v4518_v58  ;;  %v2774_v19 = vcombine.high %v2598_v59, %v2598_v59  ;;  %v2808_v50 = vcombine.high %v2600_v21, %v2600_v21  ;;  %v4586_v34 = vrot.slane %v2597_v16, %v4462_v14 }
  0xb1   : > { %3707 = vmatmul.mubr.msk.f32.vlgmr.msra.gmra.mrb[4].mxu1 %vm707_vm0, %v1080_v4  ;;  %6496 = vst [vmem:[#allocation33_spill] sm:$0xff] %v4527_v15  ;;  %6497 = vst [vmem:[#allocation34_spill] sm:$0xff] %v4541_v52  ;;  %v4589_v53 = vrot.slane %v2757_v26, %v4462_v14  ;;  %v2825_v63 = vcombine.high %v2601_v62, %v2601_v62  ;;  %v2842_v2 = vcombine.high %v2602_v61, %v2602_v61 }
  0xb2   : > { %6498 = vst [vmem:[#allocation35_spill] sm:$0xff] %v4557_v23  ;;  %6499 = vst [vmem:[#allocation36_spill] sm:$0xff] %v4560_v25  ;;  %v2859_v48 = vcombine.high %v2603_v36, %v2603_v36  ;;  %v4601_v0 = vrot.slane %v2598_v59, %v4462_v14  ;;  %v4604_v26 = vrot.slane %v2774_v19, %v4462_v14 }
  0xb3   : > { %6500 = vst [vmem:[#allocation37_spill] sm:$0xff] %v4569_v28  ;;  %6501 = vst [vmem:[#allocation38_spill] sm:$0xff] %v4577_v56  ;;  %v4607_v10 = vrot.slane %v2599_v18, %v4462_v14  ;;  %v4612_v35 = vrot.slane %v2791_v51, %v4462_v14  ;;  %v4615_v13 = vrot.slane %v2600_v21, %v4462_v14 }
  0xb4   : > { %6502 = vst [vmem:[#allocation39_spill] sm:$0xff] %v4586_v34  ;;  %6503 = vst [vmem:[#allocation40_spill] sm:$0xff] %v4589_v53  ;;  %v4618_v42 = vrot.slane %v2808_v50, %v4462_v14  ;;  %v4621_v59 = vrot.slane %v2601_v62, %v4462_v14  ;;  %v4628_v16 = vrot.slane %v2825_v63, %v4462_v14 }
  0xb5   : > { %6504 = vst [vmem:[#allocation41_spill] sm:$0xff] %v4601_v0  ;;  %6505 = vst [vmem:[#allocation42_spill] sm:$0xff] %v4604_v26  ;;  %v4631_v51 = vrot.slane %v2602_v61, %v4462_v14  ;;  %v4634_v21 = vrot.slane %v2842_v2, %v4462_v14  ;;  %v4637_v50 = vrot.slane %v2603_v36, %v4462_v14 }
  0xb6   : > { %6506 = vst [vmem:[#allocation43_spill] sm:$0xff] %v4607_v10  ;;  %6507 = vst [vmem:[#allocation44_spill] sm:$0xff] %v4612_v35  ;;  %v4640_v62 = vrot.slane %v2859_v48, %v4462_v14  ;;  %v4649_v18 = vrot.slane %v2604_v47, %v4462_v14  ;;  %v4671_v19 = vrot.slane %v2876_v22, %v4462_v14 }
  0xb7   : > { %6508 = vst [vmem:[#allocation45_spill] sm:$0xff] %v4615_v13  ;;  %6509 = vst [vmem:[#allocation46_spill] sm:$0xff] %v4618_v42 }
  0xb8   : > { %6510 = vst [vmem:[#allocation47_spill] sm:$0xff] %v4621_v59  ;;  %6511 = vst [vmem:[#allocation48_spill] sm:$0xff] %v4628_v16 }
  0xb9   : > { %6512 = vst [vmem:[#allocation49_spill] sm:$0xff] %v4631_v51  ;;  %6513 = vst [vmem:[#allocation50_spill] sm:$0xff] %v4634_v21 }
  0xba   : > { %6514 = vst [vmem:[#allocation51_spill] sm:$0xff] %v4637_v50  ;;  %6515 = vst [vmem:[#allocation52_spill] sm:$0xff] %v4640_v62 }
  0xbb   : > { %6516 = vst [vmem:[#allocation53_spill] sm:$0xff] %v4649_v18  ;;  %6517 = vst [vmem:[#allocation54_spill] sm:$0xff] %v4671_v19 }
 0x154   : > { %v4448_v5 = vpop.f32.mrb[0].mxu0 }
 0x155   : > { %v4450_v6 = vpop.f32.mrb[1].mxu0  ;;  %v4470_v27 = vmul.f32 0.75, %v4448_v5 }
 0x156   : > { %v1211_v55 = vrot.slane %v4450_v6, 7  ;;  %v4478_v24 = vmul.f32 0.75, %v4450_v6 }
 0x15a   : > { %v4452_v17 = vpop.f32.mrb[0].mxu1 }
 0x15b   : > { %v4454_v44 = vpop.f32.mrb[1].mxu1  ;;  %v4486_v37 = vmul.f32 0.75, %v4452_v17 }
 0x15c   : > { %v4522_v60 = vmul.f32 0.75, %v4454_v44  ;;  %v6520_v16 = vrot.slane %v4454_v44, 7 }
 0x168   : > { %v4480_v32 = vpop.f32.mrb[2].mxu0 }
 0x169   : > { %v4488_v43 = vpop.f32.mrb[3].mxu0  ;;  %v4565_v30 = vmul.f32 0.75, %v4480_v32 }
 0x16a   : > { %v4581_v4 = vmul.f32 0.75, %v4488_v43 }
 0x176   : > { %v4595_v20 = vpop.f32.mrb[4].mxu0 }
 0x177   : > { %v4609_v49 = vpop.f32.mrb[5].mxu0  ;;  %v1216_v12 = vrot.slane %v4595_v20, 7  ;;  %v4680_v48 = vmul.f32 0.75, %v4595_v20 }
 0x178   : > { %v1215_v3 = vrot.slane %v4609_v49, 7  ;;  %v4690_v29 = vmul.f32 0.75, %v4609_v49 }
 0x17b   : > { %v962_v2 = vpop.f32.mrb[2].mxu1 }
 0x17c   : > { %v967_v63 = vcombine.high %v962_v2, %v962_v2  ;;  %v974_v1 = vrot.slane %v962_v2, %v4232_v54  ;;  %v3701_v61 = vpop.f32.mrb[3].mxu1 }
 0x17e   : > { %v981_v61 = vrot.slane %v967_v63, %v4232_v54  ;;  %v982_v2 = vcombine.high %v974_v1, %v974_v1  ;;  %v990_v47 = vrot.slane %v974_v1, %v4232_v54 }
 0x180   : > { %v983_v9 = vcombine.high %v981_v61, %v981_v61  ;;  %v997_v22 = vrot.slane %v981_v61, %v4232_v54  ;;  %v1004_v63 = vrot.slane %v982_v2, %v4232_v54  ;;  %v1012_v31 = vcombine.high %v990_v47, %v990_v47 }
 0x181   : > { %v1228_v1 = vsel %vm1227_vm2, %v990_v47, %v1211_v55  ;;  %v6518_v61 = vrot.slane %v4448_v5, 7  ;;  %v6519_v55 = vrot.slane %v4488_v43, 7 }
 0x182   : > { %v1011_v14 = vrot.slane %v983_v9, %v4232_v54  ;;  %v1013_v18 = vcombine.high %v997_v22, %v997_v22  ;;  %v1014_v62 = vcombine.high %v1004_v63, %v1004_v63  ;;  %v1309_v50 = vmul.f32 0.25, %v1228_v1 }
 0x183   : > { %v1229_v2 = vsel %vm1227_vm2, %v1004_v63, %v6518_v61  ;;  %v1230_v47 = vsel %vm1227_vm2, %v1012_v31, %v6519_v55  ;;  %v1232_v41 = vsel %vm1227_vm2, %v997_v22, %v1215_v3  ;;  %v6521_v9 = vrot.slane %v4480_v32, 7 }
 0x184   : > { %v1310_v21 = vmul.f32 0.25, %v1229_v2  ;;  %v1015_v51 = vcombine.high %v1011_v14, %v1011_v14  ;;  %v1234_v36 = vsel %vm1227_vm2, %v1013_v18, %v6520_v16  ;;  %v1311_v59 = vmul.f32 0.25, %v1230_v47  ;;  %v4708_v42 = vpop.f32.mrb[4].mxu1 }
 0x185   : > { %v1231_v19 = vsel %vm1227_vm2, %v1014_v62, %v6521_v9  ;;  %v1315_v63 = vmul.f32 0.25, %v1234_v36  ;;  %v1317_v1 = vadd.f32 %v1309_v50, %v4478_v24  ;;  %v3708_v2 = vpop.f32.mrb[5].mxu1  ;;  %v6522_v3 = vrot.slane %v4452_v17, 7 }
 0x186   : > { %v1318_v61 = vadd.f32 %v1310_v21, %v4470_v27  ;;  %v1312_v31 = vmul.f32 0.25, %v1231_v19  ;;  %v4716_v16 = vadd.f32 %v1311_v59, %v4581_v4  ;;  %v4719_v18 = vsel %vm1227_vm2, %v1011_v14, %v1216_v12 }
 0x187   : > { %v1235_v22 = vsel %vm1227_vm2, %v1015_v51, %v6522_v3  ;;  %v4721_v62 = vmul.f32 0.25, %v1232_v41  ;;  %v1323_v36 = vadd.f32 %v1315_v63, %v4522_v60  ;;  %v1349_v50 = vcombine.high %v1317_v1, %v1317_v1 }
 0x188   : > { %v1316_v55 = vmul.f32 0.25, %v1235_v22  ;;  %v1356_v21 = vrot.slane %v1317_v1, %v4232_v54  ;;  %v1398_v19 = vcombine.high %v1318_v61, %v1318_v61  ;;  %v1405_v47 = vrot.slane %v1318_v61, %v4232_v54 }
 0x189   : > { %v1320_v9 = vadd.f32 %v1312_v31, %v4565_v30  ;;  %v1447_v59 = vcombine.high %v4716_v16, %v4716_v16  ;;  %v1363_v14 = vrot.slane %v1349_v50, %v4232_v54  ;;  %v1643_v61 = vcombine.high %v1323_v36, %v1323_v36 }
 0x18a   : > { %v1324_v51 = vadd.f32 %v1316_v55, %v4486_v37  ;;  %v1364_v41 = vcombine.high %v1356_v21, %v1356_v21  ;;  %v4732_v12 = vrot.slane %v1356_v21, %v4232_v54  ;;  %v1412_v63 = vrot.slane %v1398_v19, %v4232_v54 }
 0x18b   : > { %v1413_v2 = vcombine.high %v1405_v47, %v1405_v47  ;;  %v4736_v1 = vrot.slane %v1405_v47, %v4232_v54  ;;  %v1365_v3 = vcombine.high %v1363_v14, %v1363_v14  ;;  %v4739_v31 = vrot.slane %v1363_v14, %v4232_v54 }
 0x18c   : > { %v4742_v22 = vrot.slane %v1364_v41, %v4232_v54  ;;  %v1414_v50 = vcombine.high %v1412_v63, %v1412_v63  ;;  %v4747_v21 = vrot.slane %v1412_v63, %v4232_v54  ;;  %v1650_v55 = vrot.slane %v1323_v36, %v4232_v54 }
 0x18d   : > { %v4750_v19 = vrot.slane %v1413_v2, %v4232_v54  ;;  %v4755_v13 = vrot.slane %v1365_v3, %v4232_v54  ;;  %v1657_v3 = vrot.slane %v1643_v61, %v4232_v54  ;;  %v1692_v41 = vcombine.high %v1324_v51, %v1324_v51 }
 0x18e   : > { %v4763_v63 = vrot.slane %v1414_v50, %v4232_v54  ;;  %v1658_v14 = vcombine.high %v1650_v55, %v1650_v55  ;;  %v4773_v10 = vrot.slane %v1650_v55, %v4232_v54  ;;  %v1699_v2 = vrot.slane %v1324_v51, %v4232_v54 }
 0x18f   : > { %v1659_v50 = vcombine.high %v1657_v3, %v1657_v3  ;;  %v4778_v26 = vrot.slane %v1657_v3, %v4232_v54  ;;  %v1706_v35 = vrot.slane %v1692_v41, %v4232_v54  ;;  %v1496_v55 = vcombine.high %v1320_v9, %v1320_v9 }
 0x190   : > { %6523 = vst [vmem:[#allocation55_spill] sm:$0xff] %v4773_v10  ;;  %v4782_v47 = vrot.slane %v1658_v14, %v4232_v54  ;;  %v1707_v53 = vcombine.high %v1699_v2, %v1699_v2  ;;  %v4793_v3 = vrot.slane %v1699_v2, %v4232_v54  ;;  %v1503_v41 = vrot.slane %v1320_v9, %v4232_v54 }
 0x191   : > { %6524 = vst [vmem:[#allocation56_spill] sm:$0xff] %v4778_v26  ;;  %v4788_v0 = vrot.slane %v1659_v50, %v4232_v54  ;;  %v1708_v14 = vcombine.high %v1706_v35, %v1706_v35  ;;  %v4798_v34 = vrot.slane %v1706_v35, %v4232_v54  ;;  %v1510_v2 = vrot.slane %v1496_v55, %v4232_v54 }
 0x192   : > { %6525 = vst [vmem:[#allocation57_spill] sm:$0xff] %v4782_v47  ;;  %6527 = vst [vmem:[#allocation59_spill] sm:$0xff] %v4793_v3  ;;  %v4804_v61 = vrot.slane %v1707_v53, %v4232_v54  ;;  %v1511_v51 = vcombine.high %v1503_v41, %v1503_v41  ;;  %v4815_v9 = vrot.slane %v1503_v41, %v4232_v54  ;;  %v1314_v41 = vmul.f32 0.25, %v4719_v18 }
 0x193   : > { %6526 = vst [vmem:[#allocation58_spill] sm:$0xff] %v4788_v0  ;;  %6528 = vst [vmem:[#allocation60_spill] sm:$0xff] %v4798_v34  ;;  %v4810_v56 = vrot.slane %v1708_v14, %v4232_v54  ;;  %v1512_v53 = vcombine.high %v1510_v2, %v1510_v2  ;;  %v4820_v25 = vrot.slane %v1510_v2, %v4232_v54 }
 0x194   : > { %6529 = vst [vmem:[#allocation61_spill] sm:$0xff] %v4804_v61  ;;  %6531 = vst [vmem:[#allocation63_spill] sm:$0xff] %v4815_v9  ;;  %v1454_v55 = vrot.slane %v4716_v16, %v4232_v54  ;;  %v4827_v36 = vrot.slane %v1511_v51, %v4232_v54  ;;  %v1461_v35 = vrot.slane %v1447_v59, %v4232_v54 }
 0x195   : > { %6530 = vst [vmem:[#allocation62_spill] sm:$0xff] %v4810_v56  ;;  %6532 = vst [vmem:[#allocation64_spill] sm:$0xff] %v4820_v25  ;;  %v4833_v50 = vrot.slane %v1512_v53, %v4232_v54  ;;  %v1322_v18 = vadd.f32 %v1314_v41, %v4680_v48  ;;  %v1154_v59 = vcombine.high %v4708_v42, %v4708_v42 }
 0x196   : > { %6533 = vst [vmem:[#allocation65_spill] sm:$0xff] %v4827_v36  ;;  %v1462_v28 = vcombine.high %v1454_v55, %v1454_v55  ;;  %v4838_v16 = vrot.slane %v1454_v55, %v4232_v54  ;;  %v1463_v51 = vcombine.high %v1461_v35, %v1461_v35  ;;  %v4843_v23 = vrot.slane %v1461_v35, %v4232_v54 }
 0x197   : > { %6534 = vst [vmem:[#allocation66_spill] sm:$0xff] %v4833_v50  ;;  %v1321_v55 = vadd.f32 %v4721_v62, %v4690_v29  ;;  %v1161_v62 = vrot.slane %v4708_v42, %v4232_v54  ;;  %v1594_v15 = vcombine.high %v1322_v18, %v1322_v18  ;;  %v1601_v35 = vrot.slane %v1322_v18, %v4232_v54 }
 0x198   : > { %6535 = vst [vmem:[#allocation67_spill] sm:$0xff] %v4843_v23  ;;  %v4849_v53 = vrot.slane %v1462_v28, %v4232_v54  ;;  %v4856_v14 = vrot.slane %v1463_v51, %v4232_v54  ;;  %v1168_v41 = vrot.slane %v1154_v59, %v4232_v54 }
 0x199   : > { %v1545_v52 = vcombine.high %v1321_v55, %v1321_v55  ;;  %v1552_v2 = vrot.slane %v1321_v55, %v4232_v54  ;;  %v1169_v40 = vcombine.high %v1161_v62, %v1161_v62  ;;  %v1608_v55 = vrot.slane %v1594_v15, %v4232_v54 }
 0x19a   : > { %6536 = vst [vmem:[#allocation68_spill] sm:$0xff] %v4849_v53  ;;  %6537 = vst [vmem:[#allocation69_spill] sm:$0xff] %v4856_v14  ;;  %v1609_v57 = vcombine.high %v1601_v35, %v1601_v35  ;;  %v4878_v42 = vrot.slane %v1601_v35, %v4232_v54  ;;  %v1170_v38 = vcombine.high %v1168_v41, %v1168_v41 }
 0x19b   : > { %v1559_v58 = vrot.slane %v1545_v52, %v4232_v54  ;;  %v1560_v11 = vcombine.high %v1552_v2, %v1552_v2  ;;  %v4874_v28 = vrot.slane %v1552_v2, %v4232_v54  ;;  %v1610_v2 = vcombine.high %v1608_v55, %v1608_v55 }
 0x19c   : > { %6539 = vst [vmem:[#allocation71_spill] sm:$0xff] %v4878_v42  ;;  %v4889_v18 = vrot.slane %v1608_v55, %v4232_v54  ;;  %v4892_v15 = vrot.slane %v1609_v57, %v4232_v54  ;;  %v1177_v52 = vrot.slane %v1161_v62, %v4232_v54  ;;  %v6547_v62 = vrot.slane %v4609_v49, 1 }
 0x19d   : > { %6538 = vst [vmem:[#allocation70_spill] sm:$0xff] %v4874_v28  ;;  %v1561_v51 = vcombine.high %v1559_v58, %v1559_v58  ;;  %v4881_v46 = vrot.slane %v1559_v58, %v4232_v54  ;;  %v4884_v59 = vrot.slane %v1560_v11, %v4232_v54  ;;  %v4905_v55 = vrot.slane %v1610_v2, %v4232_v54 }
 0x19e   : > { %6542 = vst [vmem:[#allocation74_spill] sm:$0xff] %v4889_v18  ;;  %6543 = vst [vmem:[#allocation75_spill] sm:$0xff] %v4892_v15  ;;  %v1191_v11 = vrot.slane %v1169_v40, %v4232_v54  ;;  %v1198_v58 = vrot.slane %v1170_v38, %v4232_v54  ;;  %v1199_v45 = vcombine.high %v1177_v52, %v1177_v52  ;;  %v6546_v38 = vrot.slane %v4450_v6, 1 }
 0x19f   : > { %6540 = vst [vmem:[#allocation72_spill] sm:$0xff] %v4881_v46  ;;  %6541 = vst [vmem:[#allocation73_spill] sm:$0xff] %v4884_v59  ;;  %v4897_v7 = vrot.slane %v1561_v51, %v4232_v54  ;;  %v1184_v51 = vrot.slane %v1168_v41, %v4232_v54  ;;  %v1255_v33 = vrot.slane %v1177_v52, %v4466_v39  ;;  %v6550_v6 = vrot.slane %v4595_v20, 1 }
 0x1a0   : > { %6545 = vst [vmem:[#allocation77_spill] sm:$0xff] %v4905_v55  ;;  %v1201_v56 = vcombine.high %v1191_v11, %v1191_v11  ;;  %v1202_v35 = vcombine.high %v1198_v58, %v1198_v58  ;;  %v1259_v41 = vrot.slane %v1191_v11, %v4466_v39  ;;  %v1263_v34 = vrot.slane %v1199_v45, %v4466_v39 }
 0x1a1   : > { %6544 = vst [vmem:[#allocation76_spill] sm:$0xff] %v4897_v7  ;;  %v1200_v2 = vcombine.high %v1184_v51, %v1184_v51  ;;  %v1271_v57 = vrot.slane %v1184_v51, %v4466_v39  ;;  %v1275_v8 = vrot.slane %v1198_v58, %v4466_v39  ;;  %v1293_v61 = vsel %vm1292_vm3, %v6546_v38, %v1255_v33 }
 0x1a2   : > { %v1267_v51 = vrot.slane %v1201_v56, %v4466_v39  ;;  %v1283_v3 = vrot.slane %v1202_v35, %v4466_v39  ;;  %v6548_v11 = vrot.slane %v4448_v5, 1  ;;  %v6549_v58 = vrot.slane %v4488_v43, 1 }
 0x1a3   : > { %v1279_v40 = vrot.slane %v1200_v2, %v4466_v39  ;;  %v1297_v52 = vsel %vm1292_vm3, %v6547_v62, %v1271_v57  ;;  %v1298_v33 = vsel %vm1292_vm3, %v6550_v6, %v1275_v8  ;;  %v6551_v49 = vrot.slane %v4454_v44, 1 }
 0x1a4   : > { %v1294_v45 = vsel %vm1292_vm3, %v6548_v11, %v1259_v41  ;;  %v1295_v2 = vsel %vm1292_vm3, %v6549_v58, %v1263_v34  ;;  %v1325_v62 = vmul.f32 0.25, %v1293_v61  ;;  %v6552_v35 = vrot.slane %v4480_v32, 1 }
 0x1a5   : > { %v1299_v57 = vsel %vm1292_vm3, %v6551_v49, %v1279_v40  ;;  %v1326_v56 = vmul.f32 0.25, %v1294_v45  ;;  %v6553_v41 = vrot.slane %v4452_v17, 1  ;;  %v1327_v38 = vmul.f32 0.25, %v1295_v2 }
 0x1a6   : > { %v1296_v5 = vsel %vm1292_vm3, %v6552_v35, %v1267_v51  ;;  %v1329_v34 = vmul.f32 0.25, %v1297_v52  ;;  %v1330_v20 = vmul.f32 0.25, %v1298_v33  ;;  %v1331_v58 = vmul.f32 0.25, %v1299_v57 }
 0x1a7   : > { %v1300_v43 = vsel %vm1292_vm3, %v6553_v41, %v1283_v3  ;;  %v1328_v11 = vmul.f32 0.25, %v1296_v5  ;;  %v1333_v44 = vadd.f32 %v1325_v62, %v4478_v24  ;;  %v1334_v40 = vadd.f32 %v1326_v56, %v4470_v27 }
 0x1a8   : > { %v1332_v8 = vmul.f32 0.25, %v1300_v43  ;;  %v1335_v61 = vadd.f32 %v1327_v38, %v4581_v4  ;;  %v1337_v32 = vadd.f32 %v1329_v34, %v4690_v29  ;;  %v1338_v17 = vadd.f32 %v1330_v20, %v4680_v48 }
 0x1a9   : > { %v1336_v51 = vadd.f32 %v1328_v11, %v4565_v30  ;;  %v4957_v3 = vadd.f32 %v1331_v58, %v4522_v60  ;;  %v1813_v45 = vcombine.high %v1333_v44, %v1333_v44  ;;  %v1820_v2 = vrot.slane %v1333_v44, %v4232_v54 }
 0x1aa   : > { %v4960_v52 = vadd.f32 %v1332_v8, %v4486_v37  ;;  %v1862_v24 = vcombine.high %v1334_v40, %v1334_v40  ;;  %v1869_v27 = vrot.slane %v1334_v40, %v4232_v54  ;;  %v1911_v6 = vcombine.high %v1335_v61, %v1335_v61 }
 0x1ab   : > { %v1918_v4 = vrot.slane %v1335_v61, %v4232_v54  ;;  %v1960_v29 = vcombine.high %v1336_v51, %v1336_v51  ;;  %v1967_v30 = vrot.slane %v1336_v51, %v4232_v54  ;;  %v1827_v48 = vrot.slane %v1813_v45, %v4232_v54 }
 0x1ac   : > { %v1828_v33 = vcombine.high %v1820_v2, %v1820_v2  ;;  %v4968_v60 = vrot.slane %v1820_v2, %v4232_v54  ;;  %v1876_v37 = vrot.slane %v1862_v24, %v4232_v54  ;;  %v1877_v49 = vcombine.high %v1869_v27, %v1869_v27 }
 0x1ad   : > { %v4972_v57 = vrot.slane %v1869_v27, %v4232_v54  ;;  %v1925_v62 = vrot.slane %v1911_v6, %v4232_v54  ;;  %v1926_v56 = vcombine.high %v1918_v4, %v1918_v4  ;;  %v1829_v35 = vcombine.high %v1827_v48, %v1827_v48 }
 0x1ae   : > { %v4976_v5 = vrot.slane %v1827_v48, %v4232_v54  ;;  %v4979_v41 = vrot.slane %v1828_v33, %v4232_v54  ;;  %v1878_v38 = vcombine.high %v1876_v37, %v1876_v37  ;;  %v4984_v34 = vrot.slane %v1876_v37, %v4232_v54 }
 0x1af   : > { %v4987_v11 = vrot.slane %v1877_v49, %v4232_v54  ;;  %v4992_v58 = vrot.slane %v1829_v35, %v4232_v54  ;;  %v1927_v40 = vcombine.high %v1925_v62, %v1925_v62  ;;  %v5006_v2 = vrot.slane %v1918_v4, %v4232_v54 }
 0x1b0   : > { %v4999_v61 = vrot.slane %v1878_v38, %v4232_v54  ;;  %v5011_v27 = vrot.slane %v1925_v62, %v4232_v54  ;;  %v5014_v6 = vrot.slane %v1926_v56, %v4232_v54  ;;  %v1974_v4 = vrot.slane %v1960_v29, %v4232_v54 }
 0x1b1   : > { %v5017_v48 = vrot.slane %v1927_v40, %v4232_v54  ;;  %v1975_v49 = vcombine.high %v1967_v30, %v1967_v30  ;;  %v5031_v38 = vrot.slane %v1967_v30, %v4232_v54  ;;  %v2009_v29 = vcombine.high %v1337_v32, %v1337_v32 }
 0x1b2   : > { %v1976_v40 = vcombine.high %v1974_v4, %v1974_v4  ;;  %v5034_v33 = vrot.slane %v1974_v4, %v4232_v54  ;;  %v2016_v51 = vrot.slane %v1337_v32, %v4232_v54  ;;  %v2058_v62 = vcombine.high %v1338_v17, %v1338_v17 }
 0x1b3   : > { %v5037_v37 = vrot.slane %v1975_v49, %v4232_v54  ;;  %v2065_v45 = vrot.slane %v1338_v17, %v4232_v54  ;;  %v2023_v49 = vrot.slane %v2009_v29, %v4232_v54  ;;  %v2163_v43 = vrot.slane %v4960_v52, %v4232_v54 }
 0x1b4   : > { %v5044_v56 = vrot.slane %v1976_v40, %v4232_v54  ;;  %v2024_v20 = vcombine.high %v2016_v51, %v2016_v51  ;;  %v5052_v24 = vrot.slane %v2016_v51, %v4232_v54  ;;  %v2072_v32 = vrot.slane %v2058_v62, %v4232_v54 }
 0x1b5   : > { %v2073_v35 = vcombine.high %v2065_v45, %v2065_v45  ;;  %v2025_v40 = vcombine.high %v2023_v49, %v2023_v49  ;;  %v5058_v8 = vrot.slane %v2023_v49, %v4232_v54  ;;  %v5061_v30 = vrot.slane %v2065_v45, %v4232_v54 }
 0x1b6   : > { %v5064_v4 = vrot.slane %v2024_v20, %v4232_v54  ;;  %v2074_v29 = vcombine.high %v2072_v32, %v2072_v32  ;;  %v5069_v62 = vrot.slane %v2072_v32, %v4232_v54  ;;  %v2114_v20 = vrot.slane %v4957_v3, %v4232_v54 }
 0x1b7   : > { %v5072_v44 = vrot.slane %v2025_v40, %v4232_v54  ;;  %v5077_v17 = vrot.slane %v2073_v35, %v4232_v54  ;;  %v2107_v40 = vcombine.high %v4957_v3, %v4957_v3  ;;  %v2156_v45 = vcombine.high %v4960_v52, %v4960_v52 }
 0x1b8   : > { %v5084_v51 = vrot.slane %v2074_v29, %v4232_v54  ;;  %v2122_v0 = vcombine.high %v2114_v20, %v2114_v20  ;;  %v5106_v35 = vrot.slane %v2114_v20, %v4232_v54  ;;  %v5115_v10 = vrot.slane %v2163_v43, %v4232_v54 }
 0x1b9   : > { %v2121_v32 = vrot.slane %v2107_v40, %v4232_v54  ;;  %v2170_v3 = vrot.slane %v2156_v45, %v4232_v54  ;;  %v2171_v40 = vcombine.high %v2163_v43, %v2163_v43  ;;  %v6557_v7 = vcombine.high %v4976_v5, %v4976_v5 }
 0x1ba   : > { %v5118_v52 = vrot.slane %v2122_v0, %v4232_v54  ;;  %v2152_v20 = vcombine.high %v5106_v35, %v5106_v35  ;;  %v6561_v28 = vcombine.high %v4984_v34, %v4984_v34 }
 0x1bb   : > { %v2123_v47 = vcombine.high %v2121_v32, %v2121_v32  ;;  %v5112_v29 = vrot.slane %v2121_v32, %v4232_v54  ;;  %v2172_v49 = vcombine.high %v2170_v3, %v2170_v3  ;;  %v5123_v45 = vrot.slane %v2170_v3, %v4232_v54 }
 0x1bc   : > { %v5131_v55 = vrot.slane %v2171_v40, %v4232_v54  ;;  %v2154_v43 = vcombine.high %v5118_v52, %v5118_v52  ;;  %v5168_v46 = vrot.slane %v6557_v7, %v4466_v39  ;;  %v6560_v7 = vcombine.high %v4987_v11, %v4987_v11 }
 0x1bd   : > { %v5126_v26 = vrot.slane %v2123_v47, %v4232_v54  ;;  %v2153_v32 = vcombine.high %v5112_v29, %v5112_v29  ;;  %v5138_v18 = vrot.slane %v2172_v49, %v4232_v54  ;;  %v6555_v47 = vcombine.high %v4968_v60, %v4968_v60 }
 0x1be   : > { %6554 = vst [vmem:[#allocation78_spill] sm:$0xff] %v5131_v55  ;;  %v2203_v0 = vcombine.high %v5131_v55, %v5131_v55  ;;  %v6556_v54 = vcombine.high %v4979_v41, %v4979_v41  ;;  %v5190_v25 = vrot.slane %v6560_v7, %v4466_v39  ;;  %v5200_v36 = vrot.slane %v6561_v28, %v4466_v39 }
 0x1bf   : > { %v5146_v15 = vrot.slane %v6555_v47, %v4466_v39  ;;  %v2155_v40 = vcombine.high %v5126_v26, %v5126_v26  ;;  %v2204_v42 = vcombine.high %v5138_v18, %v5138_v18  ;;  %v6559_v47 = vcombine.high %v4972_v57, %v4972_v57 }
 0x1c0   : > { %v5156_v49 = vrot.slane %v6556_v54, %v4466_v39  ;;  %v6558_v54 = vcombine.high %v4992_v58, %v4992_v58  ;;  %v6563_v3 = vcombine.high %v5006_v2, %v5006_v2  ;;  %v6565_v28 = vcombine.high %v5014_v6, %v5014_v6 }
 0x1c1   : > { %v5184_v50 = vrot.slane %v6559_v47, %v4466_v39  ;;  %v6562_v47 = vcombine.high %v4999_v61, %v4999_v61  ;;  %v6571_v7 = vcombine.high %v5031_v38, %v5031_v38  ;;  %v5380_v55 = vrot.slane %v2204_v42, %v4466_v39 }
 0x1c2   : > { %v5174_v59 = vrot.slane %v6558_v54, %v4466_v39  ;;  %v5216_v14 = vrot.slane %v6563_v3, %v4466_v39  ;;  %v5222_v23 = vrot.slane %v6565_v28, %v4466_v39  ;;  %v6567_v54 = vcombine.high %v5011_v27, %v5011_v27 }
 0x1c3   : > { %v5206_v9 = vrot.slane %v6562_v47, %v4466_v39  ;;  %v6569_v3 = vcombine.high %v5017_v48, %v5017_v48  ;;  %v6575_v47 = vcombine.high %v5034_v33, %v5034_v33  ;;  %v6579_v28 = vcombine.high %v5052_v24, %v5052_v24 }
 0x1c4   : > { %6564 = vst [vmem:[#allocation79_spill] sm:$0xff] %v5216_v14  ;;  %6566 = vst [vmem:[#allocation80_spill] sm:$0xff] %v5222_v23  ;;  %v5232_v53 = vrot.slane %v6567_v54, %v4466_v39  ;;  %v5248_v23 = vrot.slane %v6571_v7, %v4466_v39  ;;  %v6573_v54 = vcombine.high %v5037_v37, %v5037_v37 }
 0x1c5   : > { %v5238_v14 = vrot.slane %v6569_v3, %v4466_v39  ;;  %v6577_v7 = vcombine.high %v5044_v56, %v5044_v56  ;;  %v6583_v3 = vcombine.high %v5058_v8, %v5058_v8 }
 0x1c6   : > { %6568 = vst [vmem:[#allocation81_spill] sm:$0xff] %v5232_v53  ;;  %6572 = vst [vmem:[#allocation83_spill] sm:$0xff] %v5248_v23  ;;  %v5254_v53 = vrot.slane %v6573_v54, %v4466_v39  ;;  %v6587_v54 = vcombine.high %v5061_v30, %v5061_v30 }
 0x1c7   : > { %6570 = vst [vmem:[#allocation82_spill] sm:$0xff] %v5238_v14  ;;  %v5264_v14 = vrot.slane %v6575_v47, %v4466_v39  ;;  %v5270_v23 = vrot.slane %v6577_v7, %v4466_v39  ;;  %v6581_v47 = vcombine.high %v5064_v4, %v5064_v4  ;;  %v6591_v7 = vcombine.high %v5069_v62, %v5069_v62 }
 0x1c8   : > { %6574 = vst [vmem:[#allocation84_spill] sm:$0xff] %v5254_v53  ;;  %v5280_v53 = vrot.slane %v6579_v28, %v4466_v39  ;;  %v6585_v28 = vcombine.high %v5072_v44, %v5072_v44 }
 0x1c9   : > { %6576 = vst [vmem:[#allocation85_spill] sm:$0xff] %v5264_v14  ;;  %6578 = vst [vmem:[#allocation86_spill] sm:$0xff] %v5270_v23  ;;  %v5286_v14 = vrot.slane %v6581_v47, %v4466_v39  ;;  %v5296_v23 = vrot.slane %v6583_v3, %v4466_v39  ;;  %v6589_v3 = vcombine.high %v5077_v17, %v5077_v17 }
 0x1ca   : > { %6580 = vst [vmem:[#allocation87_spill] sm:$0xff] %v5280_v53  ;;  %v5302_v53 = vrot.slane %v6585_v28, %v4466_v39  ;;  %v5341_v47 = vrot.slane %v2152_v20, %v4466_v39  ;;  %v6595_v28 = vcombine.high %v5123_v45, %v5123_v45 }
 0x1cb   : > { %6582 = vst [vmem:[#allocation88_spill] sm:$0xff] %v5286_v14  ;;  %6584 = vst [vmem:[#allocation89_spill] sm:$0xff] %v5296_v23  ;;  %v5312_v14 = vrot.slane %v6587_v54, %v4466_v39  ;;  %v5318_v23 = vrot.slane %v6589_v3, %v4466_v39  ;;  %v6593_v54 = vcombine.high %v5084_v51, %v5084_v51 }
 0x1cc   : > { %6586 = vst [vmem:[#allocation90_spill] sm:$0xff] %v5302_v53  ;;  %v5328_v53 = vrot.slane %v6591_v7, %v4466_v39  ;;  %v5354_v3 = vrot.slane %v2155_v40, %v4466_v39  ;;  %v5377_v20 = vrot.slane %v6595_v28, %v4466_v39  ;;  %v6598_v28 = vcombine.high %v4732_v12, %v4732_v12 }
 0x1cd   : > { %6588 = vst [vmem:[#allocation91_spill] sm:$0xff] %v5312_v14  ;;  %6590 = vst [vmem:[#allocation92_spill] sm:$0xff] %v5318_v23  ;;  %v5334_v14 = vrot.slane %v6593_v54, %v4466_v39  ;;  %v5344_v23 = vrot.slane %v2154_v43, %v4466_v39  ;;  %v5351_v54 = vrot.slane %v2153_v32, %v4466_v39 }
 0x1ce   : > { %6592 = vst [vmem:[#allocation93_spill] sm:$0xff] %v5328_v53  ;;  %v6594_v43 = vcombine.high %v5115_v10, %v5115_v10  ;;  %v5367_v53 = vrot.slane %v2203_v0, %v4466_v39  ;;  %v6597_v32 = vrot.slane %v4979_v41, %v4466_v39  ;;  %v5401_v42 = vsel %vm1227_vm2, %v6598_v28, %v5146_v15 }
 0x1cf   : > { %v6600_v41 = vrot.slane %v4976_v5, %v4466_v39  ;;  %v6603_v5 = vcombine.high %v4755_v13, %v4755_v13 }
 0x1d0   : > { %v5364_v7 = vrot.slane %v6594_v43, %v4466_v39  ;;  %v6596_v43 = vrot.slane %v4968_v60, %v4466_v39  ;;  %v5394_v40 = vsel %vm1227_vm2, %v4742_v22, %v6597_v32  ;;  %v6599_v60 = vcombine.high %v4742_v22, %v4742_v22 }
 0x1d1   : > { %v5415_v32 = vsel %vm1227_vm2, %v4739_v31, %v6600_v41  ;;  %v6602_v22 = vcombine.high %v4739_v31, %v4739_v31  ;;  %v5436_v28 = vsel %vm1227_vm2, %v6603_v5, %v5174_v59  ;;  %v6605_v31 = vrot.slane %v4987_v11, %v4466_v39 }
 0x1d2   : > { %v5387_v0 = vsel %vm1227_vm2, %v4732_v12, %v6596_v43  ;;  %v5408_v43 = vsel %vm1227_vm2, %v6599_v60, %v5156_v49  ;;  %v6601_v12 = vrot.slane %v4992_v58, %v4466_v39  ;;  %v6604_v58 = vrot.slane %v4972_v57, %v4466_v39 }
 0x1d3   : > { %v5429_v49 = vsel %vm1227_vm2, %v6602_v22, %v5168_v46  ;;  %v5450_v46 = vsel %vm1227_vm2, %v4750_v19, %v6605_v31  ;;  %v6607_v57 = vcombine.high %v4750_v19, %v4750_v19  ;;  %v6608_v11 = vrot.slane %v4984_v34, %v4466_v39  ;;  %v6615_v31 = vld [vmem:[#allocation79_spill] sm:$0xff] }
 0x1d4   : > { %v5422_v15 = vsel %vm1227_vm2, %v4755_v13, %v6601_v12  ;;  %v5443_v60 = vsel %vm1227_vm2, %v4736_v1, %v6604_v58  ;;  %v6606_v13 = vcombine.high %v4736_v1, %v4736_v1  ;;  %v6609_v1 = vrot.slane %v4999_v61, %v4466_v39  ;;  %v6614_v58 = vld [vmem:[#allocation68_spill] sm:$0xff] }
 0x1d5   : > { %v5464_v41 = vsel %vm1227_vm2, %v6607_v57, %v5190_v25  ;;  %v5471_v12 = vsel %vm1227_vm2, %v4747_v21, %v6608_v11  ;;  %v6610_v19 = vcombine.high %v4747_v21, %v4747_v21  ;;  %v6611_v34 = vcombine.high %v4763_v63, %v4763_v63  ;;  %v6620_v11 = vld [vmem:[#allocation67_spill] sm:$0xff] }
 0x1d6   : > { %v5457_v59 = vsel %vm1227_vm2, %v6606_v13, %v5184_v50  ;;  %v5478_v50 = vsel %vm1227_vm2, %v4763_v63, %v6609_v1  ;;  %v6612_v61 = vrot.slane %v5006_v2, %v4466_v39  ;;  %v6613_v21 = vrot.slane %v5014_v6, %v4466_v39  ;;  %v6617_v13 = vld [vmem:[#allocation80_spill] sm:$0xff] }
 0x1d7   : > { %v5485_v25 = vsel %vm1227_vm2, %v6610_v19, %v5200_v36  ;;  %v5492_v22 = vsel %vm1227_vm2, %v6611_v34, %v5206_v9  ;;  %v6616_v63 = vcombine.high %v4838_v16, %v4838_v16  ;;  %v6618_v2 = vcombine.high %v6614_v58, %v6614_v58  ;;  %v6622_v19 = vld [vmem:[#allocation69_spill] sm:$0xff] }
 0x1d8   : > { %v5499_v5 = vsel %vm1227_vm2, %v4838_v16, %v6612_v61  ;;  %v5506_v36 = vsel %vm1227_vm2, %v6614_v58, %v6613_v21  ;;  %v6619_v6 = vrot.slane %v5011_v27, %v4466_v39  ;;  %v6621_v16 = vrot.slane %v5017_v48, %v4466_v39  ;;  %v6623_v61 = vld [vmem:[#allocation81_spill] sm:$0xff] }
 0x1d9   : > { %v5513_v9 = vsel %vm1227_vm2, %v6616_v63, %v6615_v31  ;;  %v5520_v57 = vsel %vm1227_vm2, %v6618_v2, %v6617_v13  ;;  %v6624_v21 = vcombine.high %v6620_v11, %v6620_v11  ;;  %v6625_v31 = vld [vmem:[#allocation82_spill] sm:$0xff]  ;;  %v6626_v27 = vcombine.high %v6622_v19, %v6622_v19  ;;  %v6628_v13 = vld [vmem:[#allocation63_spill] sm:$0xff] }
 0x1da   : > { %v5527_v1 = vsel %vm1227_vm2, %v6620_v11, %v6619_v6  ;;  %v5534_v34 = vsel %vm1227_vm2, %v6622_v19, %v6621_v16  ;;  %v6627_v48 = vrot.slane %v5031_v38, %v4466_v39  ;;  %v6629_v6 = vrot.slane %v5037_v37, %v4466_v39  ;;  %v6630_v11 = vld [vmem:[#allocation65_spill] sm:$0xff] }
 0x1db   : > { %v5541_v58 = vsel %vm1227_vm2, %v6624_v21, %v6623_v61  ;;  %v5548_v63 = vsel %vm1227_vm2, %v6626_v27, %v6625_v31  ;;  %v6632_v61 = vld [vmem:[#allocation83_spill] sm:$0xff]  ;;  %v6633_v19 = vcombine.high %v6628_v13, %v6628_v13  ;;  %v6634_v31 = vld [vmem:[#allocation84_spill] sm:$0xff]  ;;  %v6635_v38 = vcombine.high %v6630_v11, %v6630_v11 }
 0x1dc   : > { %v5555_v2 = vsel %vm1227_vm2, %v6628_v13, %v6627_v48  ;;  %v5562_v16 = vsel %vm1227_vm2, %v6630_v11, %v6629_v6  ;;  %v6636_v37 = vrot.slane %v5034_v33, %v4466_v39  ;;  %v6637_v48 = vld [vmem:[#allocation64_spill] sm:$0xff]  ;;  %v6639_v13 = vrot.slane %v5044_v56, %v4466_v39 }
 0x1dd   : > { %6631 = vst [vmem:[#allocation68_spill] sm:$0xff] %v5562_v16  ;;  %v5569_v21 = vsel %vm1227_vm2, %v6633_v19, %v6632_v61  ;;  %v5576_v27 = vsel %vm1227_vm2, %v6635_v38, %v6634_v31  ;;  %v6640_v16 = vld [vmem:[#allocation66_spill] sm:$0xff]  ;;  %v6642_v19 = vld [vmem:[#allocation85_spill] sm:$0xff]  ;;  %v6643_v11 = vcombine.high %v6637_v48, %v6637_v48  ;;  %v6646_v56 = vrot.slane %v5052_v24, %v4466_v39 }
 0x1de   : > { %v5583_v6 = vsel %vm1227_vm2, %v6637_v48, %v6636_v37  ;;  %v5590_v61 = vsel %vm1227_vm2, %v6640_v16, %v6639_v13  ;;  %v6644_v38 = vld [vmem:[#allocation86_spill] sm:$0xff]  ;;  %v6645_v33 = vcombine.high %v6640_v16, %v6640_v16  ;;  %v6649_v48 = vrot.slane %v5064_v4, %v4466_v39 }
 0x1df   : > { %6638 = vst [vmem:[#allocation79_spill] sm:$0xff] %v5583_v6  ;;  %6641 = vst [vmem:[#allocation80_spill] sm:$0xff] %v5590_v61  ;;  %v5597_v31 = vsel %vm1227_vm2, %v6643_v11, %v6642_v19  ;;  %v6647_v6 = vld [vmem:[#allocation70_spill] sm:$0xff]  ;;  %v6650_v61 = vld [vmem:[#allocation73_spill] sm:$0xff]  ;;  %v6656_v4 = vrot.slane %v5058_v8, %v4466_v39 }
 0x1e0   : > { %v5604_v37 = vsel %vm1227_vm2, %v6645_v33, %v6644_v38  ;;  %v5611_v13 = vsel %vm1227_vm2, %v6647_v6, %v6646_v56  ;;  %v5618_v19 = vsel %vm1227_vm2, %v6650_v61, %v6649_v48  ;;  %v6652_v11 = vld [vmem:[#allocation87_spill] sm:$0xff]  ;;  %v6653_v16 = vcombine.high %v6647_v6, %v6647_v6  ;;  %v6654_v33 = vld [vmem:[#allocation88_spill] sm:$0xff] }
 0x1e1   : > { %6648 = vst [vmem:[#allocation67_spill] sm:$0xff] %v5611_v13  ;;  %6651 = vst [vmem:[#allocation69_spill] sm:$0xff] %v5618_v19  ;;  %v6655_v24 = vcombine.high %v6650_v61, %v6650_v61  ;;  %v6657_v13 = vld [vmem:[#allocation72_spill] sm:$0xff]  ;;  %v6659_v6 = vrot.slane %v5072_v44, %v4466_v39  ;;  %v6666_v44 = vrot.slane %v5061_v30, %v4466_v39 }
 0x1e2   : > { %v5625_v38 = vsel %vm1227_vm2, %v6653_v16, %v6652_v11  ;;  %v5639_v48 = vsel %vm1227_vm2, %v6657_v13, %v6656_v4  ;;  %v6660_v19 = vld [vmem:[#allocation76_spill] sm:$0xff]  ;;  %v6662_v16 = vld [vmem:[#allocation89_spill] sm:$0xff]  ;;  %v6663_v61 = vcombine.high %v6657_v13, %v6657_v13  ;;  %v6669_v13 = vrot.slane %v5077_v17, %v4466_v39 }
 0x1e3   : > { %v5632_v56 = vsel %vm1227_vm2, %v6655_v24, %v6654_v33  ;;  %6658 = vst [vmem:[#allocation81_spill] sm:$0xff] %v5639_v48  ;;  %v5646_v11 = vsel %vm1227_vm2, %v6660_v19, %v6659_v6  ;;  %v6664_v24 = vld [vmem:[#allocation90_spill] sm:$0xff]  ;;  %v6665_v8 = vcombine.high %v6660_v19, %v6660_v19  ;;  %v6667_v48 = vld [vmem:[#allocation71_spill] sm:$0xff]  ;;  %v6676_v17 = vrot.slane %v5069_v62, %v4466_v39 }
 0x1e4   : > { %6661 = vst [vmem:[#allocation82_spill] sm:$0xff] %v5646_v11  ;;  %v5653_v33 = vsel %vm1227_vm2, %v6663_v61, %v6662_v16  ;;  %v5667_v6 = vsel %vm1227_vm2, %v6667_v48, %v6666_v44  ;;  %v6670_v11 = vld [vmem:[#allocation75_spill] sm:$0xff]  ;;  %v6673_v19 = vcombine.high %v6667_v48, %v6667_v48  ;;  %v6678_v48 = vrot.slane %v5084_v51, %v4466_v39 }
 0x1e5   : > { %v5660_v4 = vsel %vm1227_vm2, %v6665_v8, %v6664_v24  ;;  %6668 = vst [vmem:[#allocation63_spill] sm:$0xff] %v5667_v6  ;;  %v5674_v16 = vsel %vm1227_vm2, %v6670_v11, %v6669_v13  ;;  %v6672_v61 = vld [vmem:[#allocation91_spill] sm:$0xff]  ;;  %v6674_v8 = vld [vmem:[#allocation92_spill] sm:$0xff]  ;;  %v6675_v30 = vcombine.high %v6670_v11, %v6670_v11  ;;  %v6677_v6 = vld [vmem:[#allocation74_spill] sm:$0xff]  ;;  %v6684_v51 = vrot.slane %v5106_v35, %v4466_v39 }
 0x1e6   : > { %6671 = vst [vmem:[#allocation65_spill] sm:$0xff] %v5674_v16  ;;  %v5681_v24 = vsel %vm1227_vm2, %v6673_v19, %v6672_v61  ;;  %v5695_v13 = vsel %vm1227_vm2, %v6677_v6, %v6676_v17  ;;  %v6679_v16 = vld [vmem:[#allocation77_spill] sm:$0xff]  ;;  %v6682_v11 = vcombine.high %v6677_v6, %v6677_v6  ;;  %v6685_v17 = vld [vmem:[#allocation55_spill] sm:$0xff]  ;;  %v6686_v6 = vrot.slane %v5118_v52, %v4466_v39 }
 0x1e7   : > { %v5688_v44 = vsel %vm1227_vm2, %v6675_v30, %v6674_v8  ;;  %v5702_v61 = vsel %vm1227_vm2, %v6679_v16, %v6678_v48  ;;  %v6681_v19 = vld [vmem:[#allocation93_spill] sm:$0xff]  ;;  %v6683_v62 = vcombine.high %v6679_v16, %v6679_v16  ;;  %v5723_v48 = vsel %vm1227_vm2, %v6685_v17, %v6684_v51 }
 0x1e8   : > { %6680 = vst [vmem:[#allocation83_spill] sm:$0xff] %v5702_v61  ;;  %v5709_v8 = vsel %vm1227_vm2, %v6682_v11, %v6681_v19  ;;  %v6687_v61 = vld [vmem:[#allocation57_spill] sm:$0xff]  ;;  %v6688_v16 = vcombine.high %v6685_v17, %v6685_v17  ;;  %v6690_v52 = vrot.slane %v5112_v29, %v4466_v39  ;;  %v6692_v17 = vrot.slane %v5126_v26, %v4466_v39 }
 0x1e9   : > { %v5716_v30 = vsel %vm1227_vm2, %v6683_v62, %v5334_v14  ;;  %v5730_v19 = vsel %vm1227_vm2, %v6687_v61, %v6686_v6  ;;  %v6689_v35 = vcombine.high %v6687_v61, %v6687_v61  ;;  %v6691_v62 = vld [vmem:[#allocation56_spill] sm:$0xff]  ;;  %v6693_v6 = vld [vmem:[#allocation58_spill] sm:$0xff]  ;;  %v6697_v26 = vrot.slane %v5115_v10, %v4466_v39 }
 0x1ea   : > { %v5737_v14 = vsel %vm1227_vm2, %v6688_v16, %v5341_v47  ;;  %v5751_v51 = vsel %vm1227_vm2, %v6691_v62, %v6690_v52  ;;  %v5758_v47 = vsel %vm1227_vm2, %v6693_v6, %v6692_v17  ;;  %v6695_v61 = vcombine.high %v6691_v62, %v6691_v62  ;;  %v6699_v17 = vld [vmem:[#allocation78_spill] sm:$0xff] }
 0x1eb   : > { %v5744_v11 = vsel %vm1227_vm2, %v6689_v35, %v5344_v23  ;;  %6694 = vst [vmem:[#allocation84_spill] sm:$0xff] %v5758_v47  ;;  %v6696_v29 = vcombine.high %v6693_v6, %v6693_v6  ;;  %v6698_v35 = vld [vmem:[#allocation59_spill] sm:$0xff]  ;;  %v6700_v62 = vrot.slane %v6699_v17, %v4466_v39  ;;  %v6701_v47 = vld [vmem:[#allocation61_spill] sm:$0xff] }
 0x1ec   : > { %v5765_v23 = vsel %vm1227_vm2, %v6695_v61, %v5351_v54  ;;  %v5779_v52 = vsel %vm1227_vm2, %v6698_v35, %v6697_v26  ;;  %v6702_v6 = vcombine.high %v6698_v35, %v6698_v35  ;;  %v6703_v10 = vcombine.high %v6701_v47, %v6701_v47  ;;  %v6705_v26 = vld [vmem:[#allocation60_spill] sm:$0xff] }
 0x1ed   : > { %v5772_v16 = vsel %vm1227_vm2, %v6696_v29, %v5354_v3  ;;  %v5786_v54 = vsel %vm1227_vm2, %v6701_v47, %v6700_v62  ;;  %v6704_v29 = vrot.slane %v5123_v45, %v4466_v39  ;;  %v6706_v35 = vrot.slane %v5138_v18, %v4466_v39  ;;  %v6707_v62 = vld [vmem:[#allocation62_spill] sm:$0xff]  ;;  %v6710_v39 = vld [vmem:[#allocation23_spill] sm:$0xff] }
 0x1ee   : > { %v5793_v3 = vsel %vm1227_vm2, %v6702_v6, %v5364_v7  ;;  %v5800_v61 = vsel %vm1227_vm2, %v6703_v10, %v5367_v53  ;;  %v6708_v47 = vcombine.high %v6705_v26, %v6705_v26  ;;  %v6709_v45 = vcombine.high %v6707_v62, %v6707_v62 }
 0x1ef   : > { %v5807_v17 = vsel %vm1227_vm2, %v6705_v26, %v6704_v29  ;;  %v5814_v7 = vsel %vm1227_vm2, %v6707_v62, %v6706_v35  ;;  %v5832_v18 = vadd.f32 %v6710_v39, %v5387_v0  ;;  %v6711_v10 = vcombine.high %v6710_v39, %v6710_v39  ;;  %v6714_v62 = vld [vmem:[#allocation25_spill] sm:$0xff] }
 0x1f0   : > { %v5821_v53 = vsel %vm1227_vm2, %v6708_v47, %v5377_v20  ;;  %v5828_v6 = vsel %vm1227_vm2, %v6709_v45, %v5380_v55  ;;  %v6712_v20 = vld [vmem:[#allocation24_spill] sm:$0xff]  ;;  %v5852_v0 = vadd.f32 %v6714_v62, %v5415_v32  ;;  %v6715_v47 = vcombine.high %v6714_v62, %v6714_v62  ;;  %v6716_v45 = vld [vmem:[#allocation27_spill] sm:$0xff] }
 0x1f1   : > { %v5838_v29 = vadd.f32 %v6711_v10, %v5394_v40  ;;  %v5842_v26 = vadd.f32 %v6712_v20, %v5401_v42  ;;  %v6713_v35 = vcombine.high %v6712_v20, %v6712_v20  ;;  %v5862_v42 = vadd.f32 %v6716_v45, %v5429_v49  ;;  %v6718_v10 = vld [vmem:[#allocation26_spill] sm:$0xff] }
 0x1f2   : > { %v5858_v40 = vadd.f32 %v6715_v47, %v5422_v15  ;;  %v6717_v39 = vcombine.high %v6716_v45, %v6716_v45  ;;  %v5872_v32 = vadd.f32 %v6718_v10, %v5443_v60  ;;  %v6719_v20 = vcombine.high %v6718_v10, %v6718_v10  ;;  %v6722_v47 = vld [vmem:[#allocation30_spill] sm:$0xff] }
 0x1f3   : > { %v5848_v55 = vadd.f32 %v6713_v35, %v5408_v43  ;;  %v6720_v35 = vld [vmem:[#allocation29_spill] sm:$0xff]  ;;  %v5892_v60 = vadd.f32 %v6722_v47, %v5471_v12  ;;  %v6723_v45 = vcombine.high %v6722_v47, %v6722_v47 }
 0x1f4   : > { %v5868_v43 = vadd.f32 %v6717_v39, %v5436_v28  ;;  %v5878_v15 = vadd.f32 %v6719_v20, %v5450_v46  ;;  %v5882_v49 = vadd.f32 %v6720_v35, %v5457_v59  ;;  %v6721_v62 = vcombine.high %v6720_v35, %v6720_v35  ;;  %v6724_v39 = vld [vmem:[#allocation31_spill] sm:$0xff]  ;;  %v6726_v20 = vld [vmem:[#allocation28_spill] sm:$0xff] }
 0x1f5   : > { %v5898_v46 = vadd.f32 %v6723_v45, %v5478_v50  ;;  %v5902_v59 = vadd.f32 %v6724_v39, %v5485_v25  ;;  %v6725_v10 = vcombine.high %v6724_v39, %v6724_v39  ;;  %v5912_v12 = vadd.f32 %v6726_v20, %v5499_v5  ;;  %v6730_v45 = vld [vmem:[#allocation33_spill] sm:$0xff] }
 0x1f6   : > { %v5888_v28 = vadd.f32 %v6721_v62, %v5464_v41  ;;  %v6727_v35 = vcombine.high %v6726_v20, %v6726_v20  ;;  %v6728_v62 = vld [vmem:[#allocation32_spill] sm:$0xff]  ;;  %v5932_v5 = vadd.f32 %v6730_v45, %v5527_v1  ;;  %v6731_v39 = vcombine.high %v6730_v45, %v6730_v45  ;;  %v6738_v45 = vld [vmem:[#allocation37_spill] sm:$0xff] }
 0x1f7   : > { %v5908_v41 = vadd.f32 %v6725_v10, %v5492_v22  ;;  %v5922_v25 = vadd.f32 %v6728_v62, %v5513_v9  ;;  %v6729_v47 = vcombine.high %v6728_v62, %v6728_v62  ;;  %v6732_v10 = vld [vmem:[#allocation34_spill] sm:$0xff]  ;;  %v6736_v62 = vld [vmem:[#allocation68_spill] sm:$0xff] }
 0x1f8   : > { %v5918_v50 = vadd.f32 %v6727_v35, %v5506_v36  ;;  %v5938_v36 = vadd.f32 %v6731_v39, %v5534_v34  ;;  %v5942_v9 = vadd.f32 %v6732_v10, %v5541_v58  ;;  %v6733_v20 = vcombine.high %v6732_v10, %v6732_v10  ;;  %v6734_v35 = vld [vmem:[#allocation35_spill] sm:$0xff] }
 0x1f9   : > { %v5928_v22 = vadd.f32 %v6729_v47, %v5520_v57  ;;  %v5952_v1 = vadd.f32 %v6734_v35, %v5555_v2  ;;  %v6737_v47 = vcombine.high %v6734_v35, %v6734_v35  ;;  %v5962_v58 = vadd.f32 %v6738_v45, %v5569_v21  ;;  %v6741_v10 = vld [vmem:[#allocation79_spill] sm:$0xff] }
 0x1fa   : > { %v5948_v57 = vadd.f32 %v6733_v20, %v5548_v63  ;;  %v6740_v39 = vcombine.high %v6738_v45, %v6738_v45  ;;  %v6742_v20 = vld [vmem:[#allocation36_spill] sm:$0xff] }
 0x1fb   : > { %6735 = vst [vmem:[#allocation64_spill] sm:$0xff] %v5952_v1  ;;  %v5958_v34 = vadd.f32 %v6737_v47, %v6736_v62  ;;  %6739 = vst [vmem:[#allocation66_spill] sm:$0xff] %v5962_v58  ;;  %v5972_v2 = vadd.f32 %v6742_v20, %v6741_v10  ;;  %v6744_v1 = vld [vmem:[#allocation80_spill] sm:$0xff]  ;;  %v6745_v35 = vcombine.high %v6742_v20, %v6742_v20  ;;  %v6746_v47 = vld [vmem:[#allocation38_spill] sm:$0xff] }
 0x1fc   : > { %v5968_v63 = vadd.f32 %v6740_v39, %v5576_v27  ;;  %v5982_v21 = vadd.f32 %v6746_v47, %v5597_v31  ;;  %v6748_v45 = vcombine.high %v6746_v47, %v6746_v47  ;;  %v6749_v39 = vld [vmem:[#allocation67_spill] sm:$0xff] }
 0x1fd   : > { %6743 = vst [vmem:[#allocation85_spill] sm:$0xff] %v5972_v2  ;;  %v5978_v62 = vadd.f32 %v6745_v35, %v6744_v1  ;;  %v6750_v58 = vld [vmem:[#allocation39_spill] sm:$0xff]  ;;  %v6752_v2 = vld [vmem:[#allocation69_spill] sm:$0xff]  ;;  %v6754_v35 = vld [vmem:[#allocation40_spill] sm:$0xff] }
 0x1fe   : > { %6747 = vst [vmem:[#allocation86_spill] sm:$0xff] %v5982_v21  ;;  %v5988_v27 = vadd.f32 %v6748_v45, %v5604_v37  ;;  %v5992_v10 = vadd.f32 %v6750_v58, %v6749_v39  ;;  %v6753_v20 = vcombine.high %v6750_v58, %v6750_v58  ;;  %v6002_v31 = vadd.f32 %v6754_v35, %v5625_v38  ;;  %v6757_v45 = vld [vmem:[#allocation81_spill] sm:$0xff] }
 0x1ff   : > { %v6756_v47 = vcombine.high %v6754_v35, %v6754_v35  ;;  %v6758_v21 = vld [vmem:[#allocation41_spill] sm:$0xff] }
 0x200   : > { %6751 = vst [vmem:[#allocation70_spill] sm:$0xff] %v5992_v10  ;;  %v5998_v1 = vadd.f32 %v6753_v20, %v6752_v2  ;;  %6755 = vst [vmem:[#allocation73_spill] sm:$0xff] %v6002_v31  ;;  %v6012_v39 = vadd.f32 %v6758_v21, %v6757_v45  ;;  %v6760_v10 = vld [vmem:[#allocation82_spill] sm:$0xff]  ;;  %v6761_v58 = vcombine.high %v6758_v21, %v6758_v21  ;;  %v6765_v31 = vld [vmem:[#allocation43_spill] sm:$0xff] }
 0x201   : > { %v6008_v37 = vadd.f32 %v6756_v47, %v5632_v56  ;;  %v6762_v20 = vld [vmem:[#allocation42_spill] sm:$0xff]  ;;  %v6764_v47 = vld [vmem:[#allocation63_spill] sm:$0xff]  ;;  %v6768_v21 = vcombine.high %v6765_v31, %v6765_v31 }
 0x202   : > { %6759 = vst [vmem:[#allocation87_spill] sm:$0xff] %v6012_v39  ;;  %v6018_v2 = vadd.f32 %v6761_v58, %v6760_v10  ;;  %v6022_v38 = vadd.f32 %v6762_v20, %v5653_v33  ;;  %v6763_v35 = vcombine.high %v6762_v20, %v6762_v20  ;;  %v6032_v45 = vadd.f32 %v6765_v31, %v6764_v47  ;;  %v6767_v39 = vld [vmem:[#allocation65_spill] sm:$0xff]  ;;  %v6769_v58 = vld [vmem:[#allocation44_spill] sm:$0xff] }
 0x203   : > { %v6038_v10 = vadd.f32 %v6768_v21, %v6767_v39  ;;  %v6042_v33 = vadd.f32 %v6769_v58, %v5681_v24  ;;  %v6770_v20 = vcombine.high %v6769_v58, %v6769_v58  ;;  %v6774_v21 = vld [vmem:[#allocation46_spill] sm:$0xff] }
 0x204   : > { %v6028_v56 = vadd.f32 %v6763_v35, %v5660_v4  ;;  %6766 = vst [vmem:[#allocation88_spill] sm:$0xff] %v6032_v45  ;;  %v6771_v35 = vld [vmem:[#allocation45_spill] sm:$0xff]  ;;  %v6772_v45 = vld [vmem:[#allocation83_spill] sm:$0xff]  ;;  %v6062_v24 = vadd.f32 %v6774_v21, %v5709_v8  ;;  %v6775_v58 = vcombine.high %v6774_v21, %v6774_v21 }
 0x205   : > { %v6048_v4 = vadd.f32 %v6770_v20, %v5688_v44  ;;  %v6052_v47 = vadd.f32 %v6771_v35, %v5695_v13  ;;  %v6773_v31 = vcombine.high %v6771_v35, %v6771_v35  ;;  %v6776_v20 = vld [vmem:[#allocation47_spill] sm:$0xff] }
 0x206   : > { %v6068_v44 = vadd.f32 %v6775_v58, %v5716_v30  ;;  %v6072_v13 = vadd.f32 %v6776_v20, %v5723_v48  ;;  %v6778_v35 = vcombine.high %v6776_v20, %v6776_v20  ;;  %v6781_v58 = vld [vmem:[#allocation49_spill] sm:$0xff] }
 0x207   : > { %v6058_v39 = vadd.f32 %v6773_v31, %v6772_v45  ;;  %v6779_v31 = vld [vmem:[#allocation48_spill] sm:$0xff]  ;;  %v6092_v48 = vadd.f32 %v6781_v58, %v5751_v51  ;;  %v6783_v20 = vcombine.high %v6781_v58, %v6781_v58 }
 0x208   : > { %6777 = vst [vmem:[#allocation72_spill] sm:$0xff] %v6072_v13  ;;  %v6078_v45 = vadd.f32 %v6778_v35, %v5730_v19  ;;  %v6082_v8 = vadd.f32 %v6779_v31, %v5737_v14  ;;  %v6780_v21 = vcombine.high %v6779_v31, %v6779_v31  ;;  %v6782_v13 = vld [vmem:[#allocation84_spill] sm:$0xff]  ;;  %v6784_v35 = vld [vmem:[#allocation50_spill] sm:$0xff] }
 0x209   : > { %v6098_v19 = vadd.f32 %v6783_v20, %v6782_v13  ;;  %v6102_v14 = vadd.f32 %v6784_v35, %v5765_v23  ;;  %v6785_v31 = vcombine.high %v6784_v35, %v6784_v35  ;;  %v6788_v20 = vld [vmem:[#allocation52_spill] sm:$0xff] }
 0x20a   : > { %v6088_v30 = vadd.f32 %v6780_v21, %v5744_v11  ;;  %v6786_v21 = vld [vmem:[#allocation51_spill] sm:$0xff]  ;;  %v6122_v23 = vadd.f32 %v6788_v20, %v5793_v3  ;;  %v6789_v35 = vcombine.high %v6788_v20, %v6788_v20 }
 0x20b   : > { %v6108_v11 = vadd.f32 %v6785_v31, %v5772_v16  ;;  %v6112_v51 = vadd.f32 %v6786_v21, %v5779_v52  ;;  %v6787_v58 = vcombine.high %v6786_v21, %v6786_v21  ;;  %v6790_v31 = vld [vmem:[#allocation53_spill] sm:$0xff] }
 0x20c   : > { %v6128_v16 = vadd.f32 %v6789_v35, %v5800_v61  ;;  %v6132_v52 = vadd.f32 %v6790_v31, %v5807_v17  ;;  %v6791_v21 = vcombine.high %v6790_v31, %v6790_v31  ;;  %v3085_v17 = vcombine.low %v5832_v18, %v5838_v29  ;;  %v6794_v29 = vld [vmem:[#allocation22_spill] sm:$0xff] }
 0x20d   : > { %v6118_v13 = vadd.f32 %v6787_v58, %v5786_v54  ;;  %v6792_v58 = vld [vmem:[#allocation54_spill] sm:$0xff]  ;;  %v3086_v35 = vcombine.low %v5842_v26, %v5848_v55  ;;  %v3103_v31 = vcombine.low %v5862_v42, %v5868_v43  ;;  %v3137_v18 = vcombine.low %v5902_v59, %v5908_v41 }
 0x20e   : > { %v6138_v54 = vadd.f32 %v6791_v21, %v5814_v7  ;;  %v6142_v3 = vadd.f32 %v6792_v58, %v5821_v53  ;;  %v6793_v20 = vcombine.high %v6792_v58, %v6792_v58  ;;  %v3102_v7 = vcombine.low %v5852_v0, %v5858_v40 }
 0x20f   : > { %v3119_v53 = vcombine.low %v5872_v32, %v5878_v15  ;;  %v3120_v21 = vcombine.low %v5882_v49, %v5888_v28  ;;  %v6167_v26 = vrot.slane %v3085_v17, %v6794_v29  ;;  %v6170_v55 = vrot.slane %v3086_v35, %v6794_v29 }
 0x210   : > { %v6148_v61 = vadd.f32 %v6793_v20, %v5828_v6  ;;  %v3136_v6 = vcombine.low %v5892_v60, %v5898_v46  ;;  %v6173_v0 = vrot.slane %v3102_v7, %v6794_v29  ;;  %v6176_v40 = vrot.slane %v3103_v31, %v6794_v29 }
 0x211   : > { %v6179_v42 = vrot.slane %v3119_v53, %v6794_v29  ;;  %v6182_v43 = vrot.slane %v3120_v21, %v6794_v29  ;;  %v6188_v15 = vrot.slane %v3137_v18, %v6794_v29  ;;  %v3101_v49 = vcombine.low %v6167_v26, %v6170_v55  ;;  %v6797_v53 = vld [vmem:[#allocation85_spill] sm:$0xff] }
 0x212   : > { %v6185_v32 = vrot.slane %v3136_v6, %v6794_v29  ;;  %v3118_v28 = vcombine.low %v6173_v0, %v6176_v40  ;;  %v3153_v60 = vcombine.low %v5912_v12, %v5918_v50  ;;  %v3154_v46 = vcombine.low %v5922_v25, %v5928_v22  ;;  %v6795_v12 = vld [vmem:[#allocation64_spill] sm:$0xff]  ;;  %v6796_v25 = vld [vmem:[#allocation66_spill] sm:$0xff] }
 0x213   : > { %v3135_v59 = vcombine.low %v6179_v42, %v6182_v43  ;;  %v3170_v58 = vcombine.low %v5932_v5, %v5938_v36  ;;  %v3171_v20 = vcombine.low %v5942_v9, %v5948_v57  ;;  %v3187_v50 = vcombine.low %v6795_v12, %v5958_v34  ;;  %v6798_v36 = vld [vmem:[#allocation86_spill] sm:$0xff]  ;;  %3374 = vst.msk [vmem:[%s442_s12] sm:$0xff] %vm3373_vm4, %v3101_v49 }
 0x214   : > { %v3152_v41 = vcombine.low %v6185_v32, %v6188_v15  ;;  %v3161_v17 = vrot.slane %v3153_v60, %v6794_v29  ;;  %v3168_v35 = vrot.slane %v3154_v46, %v6794_v29  ;;  %v3188_v22 = vcombine.low %v6796_v25, %v5968_v63  ;;  %v6799_v34 = vld [vmem:[#allocation70_spill] sm:$0xff]  ;;  %v6800_v32 = vld [vmem:[#allocation73_spill] sm:$0xff]  ;;  %3375 = vst.msk [vmem:[%s442_s12 + $0x8] sm:$0xff] %vm3373_vm4, %v3118_v28 }
 0x215   : > { %v3178_v7 = vrot.slane %v3170_v58, %v6794_v29  ;;  %v3185_v31 = vrot.slane %v3171_v20, %v6794_v29  ;;  %v3204_v5 = vcombine.low %v6797_v53, %v5978_v62  ;;  %v3205_v9 = vcombine.low %v6798_v36, %v5988_v27  ;;  %v6801_v27 = vld [vmem:[#allocation87_spill] sm:$0xff]  ;;  %3376 = vst.msk [vmem:[%s442_s12 + $0x10] sm:$0xff] %vm3373_vm4, %v3135_v59 }
 0x216   : > { %v3169_v57 = vcombine.low %v3161_v17, %v3168_v35  ;;  %v3195_v21 = vrot.slane %v3187_v50, %v6794_v29  ;;  %v3202_v6 = vrot.slane %v3188_v22, %v6794_v29  ;;  %v3221_v18 = vcombine.low %v6799_v34, %v5998_v1  ;;  %v6802_v17 = vld [vmem:[#allocation88_spill] sm:$0xff]  ;;  %3377 = vst.msk [vmem:[%s442_s12 + $0x18] sm:$0xff] %vm3373_vm4, %v3152_v41 }
 0x217   : > { %v3186_v42 = vcombine.low %v3178_v7, %v3185_v31  ;;  %v3212_v63 = vrot.slane %v3204_v5, %v6794_v29  ;;  %v3219_v43 = vrot.slane %v3205_v9, %v6794_v29  ;;  %v3222_v15 = vcombine.low %v6800_v32, %v6008_v37 }
 0x218   : > { %v3203_v62 = vcombine.low %v3195_v21, %v3202_v6  ;;  %v3229_v60 = vrot.slane %v3221_v18, %v6794_v29  ;;  %v3238_v46 = vcombine.low %v6801_v27, %v6018_v2  ;;  %v3239_v58 = vcombine.low %v6022_v38, %v6028_v56  ;;  %3378 = vst.msk [vmem:[%s442_s12 + $0x20] sm:$0xff] %vm3373_vm4, %v3169_v57 }
 0x219   : > { %v3220_v20 = vcombine.low %v3212_v63, %v3219_v43  ;;  %v3236_v1 = vrot.slane %v3222_v15, %v6794_v29  ;;  %v3255_v35 = vcombine.low %v6802_v17, %v6038_v10  ;;  %v3256_v12 = vcombine.low %v6042_v33, %v6048_v4  ;;  %v6803_v10 = vld [vmem:[#allocation72_spill] sm:$0xff]  ;;  %3379 = vst.msk [vmem:[%s442_s12 + $0x28] sm:$0xff] %vm3373_vm4, %v3186_v42 }
 0x21a   : > { %v3246_v37 = vrot.slane %v3238_v46, %v6794_v29  ;;  %v3253_v50 = vrot.slane %v3239_v58, %v6794_v29  ;;  %v3272_v25 = vcombine.low %v6052_v47, %v6058_v39  ;;  %v3273_v2 = vcombine.low %v6062_v24, %v6068_v44  ;;  %3380 = vst.msk [vmem:[%s442_s12 + $0x30] sm:$0xff] %vm3373_vm4, %v3203_v62 }
 0x21b   : > { %v3237_v38 = vcombine.low %v3229_v60, %v3236_v1  ;;  %v3263_v56 = vrot.slane %v3255_v35, %v6794_v29  ;;  %v3270_v22 = vrot.slane %v3256_v12, %v6794_v29  ;;  %v3289_v7 = vcombine.low %v6803_v10, %v6078_v45  ;;  %3381 = vst.msk [vmem:[%s442_s12 + $0x38] sm:$0xff] %vm3373_vm4, %v3220_v20 }
 0x21c   : > { %v3254_v31 = vcombine.low %v3246_v37, %v3253_v50  ;;  %v3280_v33 = vrot.slane %v3272_v25, %v6794_v29  ;;  %v3287_v4 = vrot.slane %v3273_v2, %v6794_v29  ;;  %v3290_v53 = vcombine.low %v6082_v8, %v6088_v30 }
 0x21d   : > { %v3271_v47 = vcombine.low %v3263_v56, %v3270_v22  ;;  %v3297_v39 = vrot.slane %v3289_v7, %v6794_v29  ;;  %v3306_v24 = vcombine.low %v6092_v48, %v6098_v19  ;;  %v3307_v44 = vcombine.low %v6102_v14, %v6108_v11  ;;  %3382 = vst.msk [vmem:[%s442_s12 + $0x40] sm:$0xff] %vm3373_vm4, %v3237_v38 }
 0x21e   : > { %v3288_v5 = vcombine.low %v3280_v33, %v3287_v4  ;;  %v3304_v45 = vrot.slane %v3290_v53, %v6794_v29  ;;  %v3323_v36 = vcombine.low %v6112_v51, %v6118_v13  ;;  %v3324_v9 = vcombine.low %v6122_v23, %v6128_v16  ;;  %3383 = vst.msk [vmem:[%s442_s12 + $0x48] sm:$0xff] %vm3373_vm4, %v3254_v31 }
 0x21f   : > { %v3314_v8 = vrot.slane %v3306_v24, %v6794_v29  ;;  %v3321_v30 = vrot.slane %v3307_v44, %v6794_v29  ;;  %v3340_v48 = vcombine.low %v6132_v52, %v6138_v54  ;;  %v3341_v19 = vcombine.low %v6142_v3, %v6148_v61  ;;  %3384 = vst.msk [vmem:[%s442_s12 + $0x50] sm:$0xff] %vm3373_vm4, %v3271_v47 }
 0x220   : > { %v3305_v14 = vcombine.low %v3297_v39, %v3304_v45  ;;  %v3331_v11 = vrot.slane %v3323_v36, %v6794_v29  ;;  %v3338_v21 = vrot.slane %v3324_v9, %v6794_v29  ;;  %3385 = vst.msk [vmem:[%s442_s12 + $0x58] sm:$0xff] %vm3373_vm4, %v3288_v5 }
 0x221   : > { %v3322_v51 = vcombine.low %v3314_v8, %v3321_v30  ;;  %v3348_v13 = vrot.slane %v3340_v48, %v6794_v29  ;;  %v3355_v23 = vrot.slane %v3341_v19, %v6794_v29 }
 0x222   : > { %v3339_v16 = vcombine.low %v3331_v11, %v3338_v21  ;;  %3386 = vst.msk [vmem:[%s442_s12 + $0x60] sm:$0xff] %vm3373_vm4, %v3305_v14 }
 0x223   : > { %v3356_v52 = vcombine.low %v3348_v13, %v3355_v23  ;;  %3387 = vst.msk [vmem:[%s442_s12 + $0x68] sm:$0xff] %vm3373_vm4, %v3322_v51 }
 0x224   : > { %3388 = vst.msk [vmem:[%s442_s12 + $0x70] sm:$0xff] %vm3373_vm4, %v3339_v16 }
 0x225   : > { %3389 = vst.msk [vmem:[%s442_s12 + $0x78] sm:$0xff] %vm3373_vm4, %v3356_v52 }
 0x226   : > { %s3658_s7 = sshll.u32 %s3925_s24, 1  ;;  %s3659_s0 = sshll.u32 %s3929_s25, 5 }
 0x227   : > { %s3403_s13 = sadd.s32 %s3659_s0, %s3658_s7  ;;  %s3422_s11 = sshll.u32 %s442_s12, 4  ;;  %s3423_s11 = int_to_ptr.vmem [resolvable:$true] %s3422_s11 }
 0x228   : > { %s3660_s10 = sshll.u32 %s3403_s13, 7  ;;  %s3955_s26 = smov 256  }
 0x229   : > { %s3405_s16 = scalar_lea.hbm %s6348_s6, %s3660_s10  ;;  %p6805_p9 = scmp.ne.s32.totalorder %s6478_s14, 0 }
 0x22a   : > { %s3956_s30 = smov 512   ;;  %s3957_s27 = smov 2  }
 0x22b   : > { %3734 = sst [smem:[#allocation12]] (%p6805_p9), %s3955_s26  ;;  %s3958_s24 = smov 128  }
 0x22c   : > { %3735 = sst [smem:[#allocation12 + $0x1]] (%p6805_p9), %s3956_s30  ;;  %s3959_s25 = smov 8  }
 0x22d   : > { %3736 = sst [smem:[#allocation12 + $0x2]] (%p6805_p9), %s3957_s27  ;;  %s3960_s8 = smov [#allocation11]  }
 0x22e   : > { %3737 = sst [smem:[#allocation12 + $0x3]] (%p6805_p9), %s3958_s24  ;;  %s3961_s18 = smov 0  }
 0x22f   : > { %3738 = sst [smem:[#allocation12 + $0x4]] (%p6805_p9), %s3958_s24 }
 0x230   : > { %3739 = sst [smem:[#allocation12 + $0x5]] (%p6805_p9), %s3959_s25 }
 0x231   : > { %3740 = dma.general (%p6805_p9), %s3423_s11, 2048, %s3405_s16, %s3391_s29, %s3960_s8, [#allocation12], %s3961_s18, 0  }
 0x232 PF: > { %p3752_p13 = scmp.ge.s32.totalorder %s3941_s28, 2  ;;  %s3450_s2 = sand.u32 1, %s3913_s21  }
 0x233   : > { %p6806_p2 = scmp.ne.s32.totalorder %s6479_s17, 0  ;;  %s3451_s19 = scalar_lea.sflag [#allocation4], %s3450_s2 }
 0x235   : > { %p3747_p1 = pnand %p3752_p13, %p6806_p2 }
 0x237   : > { %3908 = dma.done.wait (!%p3747_p1), %s3451_s19, 2048  }
 0x238   : > { %3910 = vsyncadd (!%p3747_p1), %s3451_s19, 4294965248  ;;  %s23_s28 = sadd.s32 1, %s3941_s28   ;;  %s6807_s9 = sld [smem:[#allocation21_spill]] }
 0x239   : > { %p20_p4 = scmp.ge.s32.totalorder %s23_s28, 6   ;;  %s6808_s24 = sld [smem:[#allocation17_spill]] }
 0x23a   : > { %s6809_s25 = sld [smem:[#allocation18_spill]]  ;;  %s6810_s26 = sld [smem:[#allocation19_spill]] }
 0x23b   : > { %s6811_s27 = sld [smem:[#allocation20_spill]]  ;;  %s6812_s21 = smov %s3917_s22 }
 0x23c   : > { %s6813_s22 = smov %s3921_s23  ;;  %22 = sbr.rel (!%p20_p4) target bundleno = 11 (0xb), region = 156 }
 0x23e   : > { %s6814_s23 = smov %s6807_s9 }
 0x243   :  { %3456 = vsyncpa [#allocation3], 1 }
 0x244   :  { %3458 = vsyncpa [#allocation3 + $0x1], 1 }
 0x245   :  { %3459 = vsyncpa [#allocation4], 1 }
 0x246   :  { %3461 = vsyncpa [#allocation4 + $0x1], 1 }
 0x247   :  { %3462 = vsyncpa [#allocation5], 1 }
 0x248   :  { %3464 = vsyncpa [#allocation5 + $0x1], 1 }

</bundles_post_ra>
